<compile_context>
chip_gen: v7x
topology: tpu7x:2x2x1
jax: 0.10.0
libtpu: 0.0.40
codegen_flags: <defaults>
</compile_context>

<pallas_src>
import jax
import jax.numpy as jnp
from jax import lax
from jax.experimental import pallas as pl
from jax.experimental.pallas import tpu as pltpu


_VMEM_LIMIT = 32 * 1024 * 1024  # explicit scoped-VMEM limit (safe on v5e/v6e/v7x)


# ----------------------------- Pallas kernels ------------------------------

def _conv_pool_kernel(x_ref, w_ref, b_ref, rsel_ref, csel_ref, o_ref):
    """Fused valid KxK conv + bias + ReLU + 2x2 max-pool for one image.

    x_ref    : (H, W*Cin)                 image rows, (w, ci) flattened on lanes
    w_ref    : (K, W*Cin, Wo*Cout)        banded conv weight, one slab per kh
    b_ref    : (1, Wo*Cout)               bias tiled across W positions
    rsel_ref : (2, Ho//2, Ho)             0/1 even/odd output-row selectors
    csel_ref : (2, Wo*Cout, (Wo//2)*Cout) 0/1 even/odd output-col selectors
    o_ref    : (Ho//2, (Wo//2)*Cout)      pooled + ReLU'd output
    """
    k = w_ref.shape[0]
    ho = x_ref.shape[0] - k + 1
    acc = jnp.zeros((ho, w_ref.shape[2]), jnp.float32)
    for kh in range(k):  # static unroll, K = 5 shifted matmuls on the MXU
        acc = acc + jnp.dot(x_ref[kh:kh + ho, :], w_ref[kh],
                            preferred_element_type=jnp.float32)
    # bias + ReLU (ReLU commutes with 2x2 max-pool, so fusing here is exact)
    acc = jnp.maximum(acc + b_ref[...], 0.0)
    # 2x pool over output rows: select even/odd rows with 0/1 matmuls, then max
    even = jnp.dot(rsel_ref[0], acc, preferred_element_type=jnp.float32)
    odd = jnp.dot(rsel_ref[1], acc, preferred_element_type=jnp.float32)
    vmax = jnp.maximum(even, odd)
    # 2x pool over output W: select even/odd W-blocks with 0/1 matmuls, then max
    left = jnp.dot(vmax, csel_ref[0], preferred_element_type=jnp.float32)
    right = jnp.dot(vmax, csel_ref[1], preferred_element_type=jnp.float32)
    o_ref[...] = jnp.maximum(left, right)


def _fc_fused_kernel(x_ref, w1_ref, b1_ref, w2_ref, b2_ref, o_ref):
    """Linear(500,50) + bias + ReLU + Linear(50,nc) + bias, fused in-VMEM."""
    h = jnp.dot(x_ref[...], w1_ref[...], preferred_element_type=jnp.float32)
    h = jnp.maximum(h + b1_ref[...], 0.0)
    o_ref[...] = (jnp.dot(h, w2_ref[...], preferred_element_type=jnp.float32)
                  + b2_ref[...])


# ------------------------------ Pallas wrappers -----------------------------

def conv_pool(x2d, w_band, b_tiled, rsel, csel):
    """x2d: (N, H, W*Cin) -> (N, Ho//2, (Wo//2)*Cout) pooled+ReLU'd conv."""
    n, h, wc = x2d.shape
    ho2 = rsel.shape[1]
    out_lanes = csel.shape[2]
    return pl.pallas_call(
        _conv_pool_kernel,
        out_shape=jax.ShapeDtypeStruct((n, ho2, out_lanes), jnp.float32),
        grid=(n,),
        in_specs=[
            pl.BlockSpec((None, h, wc), lambda i: (i, 0, 0)),
            pl.BlockSpec(w_band.shape, lambda i: (0, 0, 0)),
            pl.BlockSpec(b_tiled.shape, lambda i: (0, 0)),
            pl.BlockSpec(rsel.shape, lambda i: (0, 0, 0)),
            pl.BlockSpec(csel.shape, lambda i: (0, 0, 0)),
        ],
        out_specs=pl.BlockSpec((None, ho2, out_lanes), lambda i: (i, 0, 0)),
        compiler_params=pltpu.CompilerParams(
            dimension_semantics=("parallel",),
            vmem_limit_bytes=_VMEM_LIMIT),
    )(x2d, w_band, b_tiled, rsel, csel)


def fc_fused(x, w1, b1, w2, b2):
    """Fused fc1 + ReLU + fc2 over a batch-tiled parallel grid."""
    n, d = x.shape
    nc = w2.shape[1]
    tb = n if n <= 256 else 256  # batch tile (multiple of 8 when tiling)
    return pl.pallas_call(
        _fc_fused_kernel,
        out_shape=jax.ShapeDtypeStruct((n, nc), jnp.float32),
        grid=(pl.cdiv(n, tb),),
        in_specs=[
            pl.BlockSpec((tb, d), lambda i: (i, 0)),
            pl.BlockSpec(w1.shape, lambda i: (0, 0)),
            pl.BlockSpec(b1.shape, lambda i: (0, 0)),
            pl.BlockSpec(w2.shape, lambda i: (0, 0)),
            pl.BlockSpec(b2.shape, lambda i: (0, 0)),
        ],
        out_specs=pl.BlockSpec((tb, nc), lambda i: (i, 0)),
        compiler_params=pltpu.CompilerParams(
            dimension_semantics=("parallel",),
            vmem_limit_bytes=_VMEM_LIMIT),
    )(x, w1, b1, w2, b2)


# --------------------- parameter init & layout packing ----------------------

def init_params(key, num_classes):
    """Parameters in PyTorch layout: conv (Cout,Cin,K,K), linear (out,in)."""
    ks = jax.random.split(key, 8)

    def u(k, shape, fan_in):
        bound = 1.0 / jnp.sqrt(jnp.float32(fan_in))
        return jax.random.uniform(k, shape, jnp.float32, -bound, bound)

    return {
        "conv1_w": u(ks[0], (10, 3, 5, 5), 3 * 25),
        "conv1_b": u(ks[1], (10,), 3 * 25),
        "conv2_w": u(ks[2], (20, 10, 5, 5), 10 * 25),
        "conv2_b": u(ks[3], (20,), 10 * 25),
        "fc1_w": u(ks[4], (50, 500), 500),
        "fc1_b": u(ks[5], (50,), 500),
        "fc2_w": u(ks[6], (num_classes, 50), 50),
        "fc2_b": u(ks[7], (num_classes,), 50),
    }


def _banded_conv_weight(w_t, w_in):
    """(Cout,Cin,K,K) torch weight -> (K, W_in*Cin, Wo*Cout) banded matmul weight.

    B[kh, w*Cin+ci, j*Cout+co] = w_t[co, ci, kh, w-j] if 0 <= w-j < K else 0,
    so  out_row[i] = sum_kh x_row[i+kh] @ B[kh]  is the valid conv.
    """
    c_out, c_in, k, _ = w_t.shape
    w_out = w_in - k + 1
    w = jnp.transpose(w_t, (2, 3, 1, 0))                  # (kh, kw, ci, co)
    kw = jnp.arange(w_in)[:, None] - jnp.arange(w_out)[None, :]   # (W_in, Wo)
    valid = (kw >= 0) & (kw < k)
    g = w[:, jnp.clip(kw, 0, k - 1), :, :]                # (kh, W_in, Wo, ci, co)
    g = jnp.where(valid[None, :, :, None, None], g, 0.0)
    g = jnp.transpose(g, (0, 1, 3, 2, 4))                 # (kh, W_in, ci, Wo, co)
    return g.reshape(k, w_in * c_in, w_out * c_out)


def _pool_row_selectors(h_out):
    eye = jnp.eye(h_out, dtype=jnp.float32)
    return jnp.stack([eye[0::2, :], eye[1::2, :]])        # (2, h_out//2, h_out)


def _pool_col_selectors(w_out, c_out):
    d = jnp.arange((w_out // 2) * c_out)
    j, c = d // c_out, d % c_out
    eye = jnp.eye(w_out * c_out, dtype=jnp.float32)
    return jnp.stack([eye[:, 2 * j * c_out + c],
                      eye[:, (2 * j + 1) * c_out + c]])   # (2, Wo*C, (Wo//2)*C)


def pack_params(p):
    """Pack torch-layout params into the kernel layouts (pure layout plumbing)."""
    packed = {
        # conv1: 32x32x3 -> 28x28x10 -> pool -> 14x14x10
        "c1_w": _banded_conv_weight(p["conv1_w"], 32),
        "c1_b": jnp.tile(p["conv1_b"], 28).reshape(1, 28 * 10),
        "c1_rsel": _pool_row_selectors(28),
        "c1_csel": _pool_col_selectors(28, 10),
        # conv2: 14x14x10 -> 10x10x20 -> pool -> 5x5x20
        "c2_w": _banded_conv_weight(p["conv2_w"], 14),
        "c2_b": jnp.tile(p["conv2_b"], 10).reshape(1, 10 * 20),
        "c2_rsel": _pool_row_selectors(10),
        "c2_csel": _pool_col_selectors(10, 20),
    }
    # fc1: permute rows so our NHWC-flatten matches torch's x.view(-1, 500)
    # (which flattens NCHW: index c*25 + h*5 + w).
    hh, ww, cc = jnp.meshgrid(jnp.arange(5), jnp.arange(5), jnp.arange(20),
                              indexing="ij")
    perm = (cc * 25 + hh * 5 + ww).reshape(-1)            # position h*100+w*20+c
    packed["fc1_w"] = p["fc1_w"].T[perm, :]               # (500, 50)
    packed["fc1_b"] = p["fc1_b"].reshape(1, -1)
    packed["fc2_w"] = p["fc2_w"].T                        # (50, nc)
    packed["fc2_b"] = p["fc2_b"].reshape(1, -1)
    return packed


# ------------------------------- forward pass -------------------------------

def cnn_forward(x_nchw, kp):
    n = x_nchw.shape[0]
    # NCHW -> (N, H, W*C) layout plumbing (lane axis = W*C)
    x = jnp.transpose(x_nchw, (0, 2, 3, 1)).astype(jnp.float32)
    x = x.reshape(n, 32, 32 * 3)
    # Conv1 + Dropout2d(id) + MaxPool + ReLU  -> (N, 14, 14*10)
    y1 = conv_pool(x, kp["c1_w"], kp["c1_b"], kp["c1_rsel"], kp["c1_csel"])
    # Conv2 + Dropout2d(id) + MaxPool + ReLU  -> (N, 5, 5*20)
    y2 = conv_pool(y1, kp["c2_w"], kp["c2_b"], kp["c2_rsel"], kp["c2_csel"])
    # Flatten (NHWC order; fc1 rows were pre-permuted to match torch's view)
    flat = y2.reshape(n, 500)
    # Linear(500,50) + Dropout(id) + ReLU + Linear(50,nc), fused in one kernel
    return fc_fused(flat, kp["fc1_w"], kp["fc1_b"], kp["fc2_w"], kp["fc2_b"])


# ------------------------- pure-JAX reference (check) ------------------------

def reference_forward(x_nchw, p):
    x = x_nchw.astype(jnp.float32)

    def conv(x, w, b):
        y = lax.conv_general_dilated(x, w, (1, 1), "VALID",
                                     dimension_numbers=("NCHW", "OIHW", "NCHW"))
        return y + b[None, :, None, None]

    def pool_relu(x):
        y = lax.reduce_window(x, -jnp.inf, lax.max,
                              (1, 1, 2, 2), (1, 1, 2, 2), "VALID")
        return jnp.maximum(y, 0.0)

    y = pool_relu(conv(x, p["conv1_w"], p["conv1_b"]))
    y = pool_relu(conv(y, p["conv2_w"], p["conv2_b"]))
    flat = y.reshape(y.shape[0], -1)                      # torch view(-1, 500)
    h = jnp.maximum(flat @ p["fc1_w"].T + p["fc1_b"], 0.0)
    return h @ p["fc2_w"].T + p["fc2_b"]


# ----------------------------------- main ------------------------------------

if __name__ == "__main__":
    num_classes = 10
    key = jax.random.PRNGKey(0)
    k_x, k_p = jax.random.split(key)

    # Flatten(-1, 500) implies 3x32x32 inputs (-> 20x5x5 before the flatten).
    x = jax.random.normal(k_x, (2, 3, 32, 32), dtype=jnp.float32)
    params = init_params(k_p, num_classes)
    kparams = pack_params(params)

    logits = jax.jit(cnn_forward)(x, kparams)
    jax.block_until_ready(logits)
    assert logits.shape == (2, num_classes), logits.shape

    # Correctness check against a pure-JAX/XLA reference of the same module.
    ref = jax.jit(reference_forward)(x, params)
    jax.block_until_ready(ref)
    assert jnp.allclose(logits, ref, atol=1e-2, rtol=1e-2), float(
        jnp.max(jnp.abs(logits - ref)))

    print("KERNEL_OK")
</pallas_src>

<mosaic_0001>
module attributes {stable_mosaic.version = 11 : i64} {
  func.func @_conv_pool_kernel(%arg0: i32, %arg1: memref<1x32x96xf32, #tpu.memory_space<vmem>>, %arg2: memref<5x96x280xf32, #tpu.memory_space<vmem>>, %arg3: memref<1x280xf32, #tpu.memory_space<vmem>>, %arg4: memref<2x14x28xf32, #tpu.memory_space<vmem>>, %arg5: memref<2x280x140xf32, #tpu.memory_space<vmem>>, %arg6: memref<1x14x140xf32, #tpu.memory_space<vmem>>) attributes {dimension_semantics = [#tpu.dimension_semantics<parallel>], iteration_bounds = array<i64: 2>, scalar_prefetch = 0 : i64, scratch_operands = 0 : i64, tpu.core_type = #tpu.core_type<tc>, window_params = [{transform_indices = @transform_0, window_bounds = array<i64: 1, 32, 96>}, {pipeline_mode = #tpu.pipeline_mode<synchronous>, transform_indices = @transform_1, window_bounds = array<i64: 5, 96, 280>}, {pipeline_mode = #tpu.pipeline_mode<synchronous>, transform_indices = @transform_2, window_bounds = array<i64: 1, 280>}, {pipeline_mode = #tpu.pipeline_mode<synchronous>, transform_indices = @transform_3, window_bounds = array<i64: 2, 14, 28>}, {pipeline_mode = #tpu.pipeline_mode<synchronous>, transform_indices = @transform_4, window_bounds = array<i64: 2, 280, 140>}, {transform_indices = @transform_5, window_bounds = array<i64: 1, 14, 140>}]} {
    %cst = arith.constant 0.000000e+00 : f32
    %0 = vector.broadcast %cst : f32 to vector<28x280xf32>
    %c0 = arith.constant 0 : index
    %c0_0 = arith.constant 0 : index
    %c0_1 = arith.constant 0 : index
    %1 = vector.load %arg1[%c0, %c0_0, %c0_1] : memref<1x32x96xf32, #tpu.memory_space<vmem>>, vector<1x28x96xf32>
    %2 = vector.shape_cast %1 : vector<1x28x96xf32> to vector<28x96xf32>
    %c0_2 = arith.constant 0 : index
    %c0_3 = arith.constant 0 : index
    %c0_4 = arith.constant 0 : index
    %3 = vector.load %arg2[%c0_2, %c0_3, %c0_4] : memref<5x96x280xf32, #tpu.memory_space<vmem>>, vector<1x96x280xf32>
    %4 = vector.shape_cast %3 : vector<1x96x280xf32> to vector<96x280xf32>
    %cst_5 = arith.constant dense<0.000000e+00> : vector<28x280xf32>
    %5 = tpu.matmul %2, %4, %cst_5 {dimension_numbers = #tpu.dot_dimension_numbers<[1], [0], [0], [1], [0, 0, 1, 1], [], []>} : vector<28x96xf32>, vector<96x280xf32>, vector<28x280xf32> -> vector<28x280xf32>
    %6 = arith.addf %0, %5 : vector<28x280xf32>
    %c0_6 = arith.constant 0 : index
    %c1 = arith.constant 1 : index
    %c0_7 = arith.constant 0 : index
    %7 = vector.load %arg1[%c0_6, %c1, %c0_7] : memref<1x32x96xf32, #tpu.memory_space<vmem>>, vector<1x28x96xf32>
    %8 = vector.shape_cast %7 : vector<1x28x96xf32> to vector<28x96xf32>
    %c1_8 = arith.constant 1 : index
    %c0_9 = arith.constant 0 : index
    %c0_10 = arith.constant 0 : index
    %9 = vector.load %arg2[%c1_8, %c0_9, %c0_10] : memref<5x96x280xf32, #tpu.memory_space<vmem>>, vector<1x96x280xf32>
    %10 = vector.shape_cast %9 : vector<1x96x280xf32> to vector<96x280xf32>
    %cst_11 = arith.constant dense<0.000000e+00> : vector<28x280xf32>
    %11 = tpu.matmul %8, %10, %cst_11 {dimension_numbers = #tpu.dot_dimension_numbers<[1], [0], [0], [1], [0, 0, 1, 1], [], []>} : vector<28x96xf32>, vector<96x280xf32>, vector<28x280xf32> -> vector<28x280xf32>
    %12 = arith.addf %6, %11 : vector<28x280xf32>
    %c0_12 = arith.constant 0 : index
    %c2 = arith.constant 2 : index
    %c0_13 = arith.constant 0 : index
    %13 = vector.load %arg1[%c0_12, %c2, %c0_13] : memref<1x32x96xf32, #tpu.memory_space<vmem>>, vector<1x28x96xf32>
    %14 = vector.shape_cast %13 : vector<1x28x96xf32> to vector<28x96xf32>
    %c2_14 = arith.constant 2 : index
    %c0_15 = arith.constant 0 : index
    %c0_16 = arith.constant 0 : index
    %15 = vector.load %arg2[%c2_14, %c0_15, %c0_16] : memref<5x96x280xf32, #tpu.memory_space<vmem>>, vector<1x96x280xf32>
    %16 = vector.shape_cast %15 : vector<1x96x280xf32> to vector<96x280xf32>
    %cst_17 = arith.constant dense<0.000000e+00> : vector<28x280xf32>
    %17 = tpu.matmul %14, %16, %cst_17 {dimension_numbers = #tpu.dot_dimension_numbers<[1], [0], [0], [1], [0, 0, 1, 1], [], []>} : vector<28x96xf32>, vector<96x280xf32>, vector<28x280xf32> -> vector<28x280xf32>
    %18 = arith.addf %12, %17 : vector<28x280xf32>
    %c0_18 = arith.constant 0 : index
    %c3 = arith.constant 3 : index
    %c0_19 = arith.constant 0 : index
    %19 = vector.load %arg1[%c0_18, %c3, %c0_19] : memref<1x32x96xf32, #tpu.memory_space<vmem>>, vector<1x28x96xf32>
    %20 = vector.shape_cast %19 : vector<1x28x96xf32> to vector<28x96xf32>
    %c3_20 = arith.constant 3 : index
    %c0_21 = arith.constant 0 : index
    %c0_22 = arith.constant 0 : index
    %21 = vector.load %arg2[%c3_20, %c0_21, %c0_22] : memref<5x96x280xf32, #tpu.memory_space<vmem>>, vector<1x96x280xf32>
    %22 = vector.shape_cast %21 : vector<1x96x280xf32> to vector<96x280xf32>
    %cst_23 = arith.constant dense<0.000000e+00> : vector<28x280xf32>
    %23 = tpu.matmul %20, %22, %cst_23 {dimension_numbers = #tpu.dot_dimension_numbers<[1], [0], [0], [1], [0, 0, 1, 1], [], []>} : vector<28x96xf32>, vector<96x280xf32>, vector<28x280xf32> -> vector<28x280xf32>
    %24 = arith.addf %18, %23 : vector<28x280xf32>
    %c0_24 = arith.constant 0 : index
    %c4 = arith.constant 4 : index
    %c0_25 = arith.constant 0 : index
    %25 = vector.load %arg1[%c0_24, %c4, %c0_25] : memref<1x32x96xf32, #tpu.memory_space<vmem>>, vector<1x28x96xf32>
    %26 = vector.shape_cast %25 : vector<1x28x96xf32> to vector<28x96xf32>
    %c4_26 = arith.constant 4 : index
    %c0_27 = arith.constant 0 : index
    %c0_28 = arith.constant 0 : index
    %27 = vector.load %arg2[%c4_26, %c0_27, %c0_28] : memref<5x96x280xf32, #tpu.memory_space<vmem>>, vector<1x96x280xf32>
    %28 = vector.shape_cast %27 : vector<1x96x280xf32> to vector<96x280xf32>
    %cst_29 = arith.constant dense<0.000000e+00> : vector<28x280xf32>
    %29 = tpu.matmul %26, %28, %cst_29 {dimension_numbers = #tpu.dot_dimension_numbers<[1], [0], [0], [1], [0, 0, 1, 1], [], []>} : vector<28x96xf32>, vector<96x280xf32>, vector<28x280xf32> -> vector<28x280xf32>
    %30 = arith.addf %24, %29 : vector<28x280xf32>
    %c0_30 = arith.constant 0 : index
    %c0_31 = arith.constant 0 : index
    %31 = vector.load %arg3[%c0_30, %c0_31] : memref<1x280xf32, #tpu.memory_space<vmem>>, vector<1x280xf32>
    %32 = vector.broadcast %31 : vector<1x280xf32> to vector<28x280xf32>
    %33 = arith.addf %30, %32 : vector<28x280xf32>
    %cst_32 = arith.constant 0.000000e+00 : f32
    %34 = vector.broadcast %cst_32 : f32 to vector<28x280xf32>
    %35 = arith.maximumf %33, %34 : vector<28x280xf32>
    %c0_33 = arith.constant 0 : index
    %c0_34 = arith.constant 0 : index
    %c0_35 = arith.constant 0 : index
    %36 = vector.load %arg4[%c0_33, %c0_34, %c0_35] : memref<2x14x28xf32, #tpu.memory_space<vmem>>, vector<1x14x28xf32>
    %37 = vector.shape_cast %36 : vector<1x14x28xf32> to vector<14x28xf32>
    %cst_36 = arith.constant dense<0.000000e+00> : vector<14x280xf32>
    %38 = tpu.matmul %37, %35, %cst_36 {dimension_numbers = #tpu.dot_dimension_numbers<[1], [0], [0], [1], [0, 0, 1, 1], [], []>} : vector<14x28xf32>, vector<28x280xf32>, vector<14x280xf32> -> vector<14x280xf32>
    %c1_37 = arith.constant 1 : index
    %c0_38 = arith.constant 0 : index
    %c0_39 = arith.constant 0 : index
    %39 = vector.load %arg4[%c1_37, %c0_38, %c0_39] : memref<2x14x28xf32, #tpu.memory_space<vmem>>, vector<1x14x28xf32>
    %40 = vector.shape_cast %39 : vector<1x14x28xf32> to vector<14x28xf32>
    %cst_40 = arith.constant dense<0.000000e+00> : vector<14x280xf32>
    %41 = tpu.matmul %40, %35, %cst_40 {dimension_numbers = #tpu.dot_dimension_numbers<[1], [0], [0], [1], [0, 0, 1, 1], [], []>} : vector<14x28xf32>, vector<28x280xf32>, vector<14x280xf32> -> vector<14x280xf32>
    %42 = arith.maximumf %38, %41 : vector<14x280xf32>
    %c0_41 = arith.constant 0 : index
    %c0_42 = arith.constant 0 : index
    %c0_43 = arith.constant 0 : index
    %43 = vector.load %arg5[%c0_41, %c0_42, %c0_43] : memref<2x280x140xf32, #tpu.memory_space<vmem>>, vector<1x280x140xf32>
    %44 = vector.shape_cast %43 : vector<1x280x140xf32> to vector<280x140xf32>
    %cst_44 = arith.constant dense<0.000000e+00> : vector<14x140xf32>
    %45 = tpu.matmul %42, %44, %cst_44 {dimension_numbers = #tpu.dot_dimension_numbers<[1], [0], [0], [1], [0, 0, 1, 1], [], []>} : vector<14x280xf32>, vector<280x140xf32>, vector<14x140xf32> -> vector<14x140xf32>
    %c1_45 = arith.constant 1 : index
    %c0_46 = arith.constant 0 : index
    %c0_47 = arith.constant 0 : index
    %46 = vector.load %arg5[%c1_45, %c0_46, %c0_47] : memref<2x280x140xf32, #tpu.memory_space<vmem>>, vector<1x280x140xf32>
    %47 = vector.shape_cast %46 : vector<1x280x140xf32> to vector<280x140xf32>
    %cst_48 = arith.constant dense<0.000000e+00> : vector<14x140xf32>
    %48 = tpu.matmul %42, %47, %cst_48 {dimension_numbers = #tpu.dot_dimension_numbers<[1], [0], [0], [1], [0, 0, 1, 1], [], []>} : vector<14x280xf32>, vector<280x140xf32>, vector<14x140xf32> -> vector<14x140xf32>
    %49 = arith.maximumf %45, %48 : vector<14x140xf32>
    %c0_49 = arith.constant 0 : index
    %c0_50 = arith.constant 0 : index
    %c0_51 = arith.constant 0 : index
    %50 = vector.load %arg6[%c0_49, %c0_50, %c0_51] : memref<1x14x140xf32, #tpu.memory_space<vmem>>, vector<1x14x140xf32>
    %51 = vector.shape_cast %50 : vector<1x14x140xf32> to vector<14x140xf32>
    %52 = vector.shape_cast %49 : vector<14x140xf32> to vector<1x14x140xf32>
    tpu.vector_store %arg6[%c0_49, %c0_50, %c0_51], %52 {strides = array<i32>} : memref<1x14x140xf32, #tpu.memory_space<vmem>>, vector<1x14x140xf32>,
    return
  }
  func.func @transform_0(%arg0: i32) -> (i32, i32, i32) {
    %c0_i32 = arith.constant 0 : i32
    %c0_i32_0 = arith.constant 0 : i32
    %c0_i32_1 = arith.constant 0 : i32
    return %arg0, %c0_i32, %c0_i32_0 : i32, i32, i32
  }
  func.func @transform_1(%arg0: i32) -> (i32, i32, i32) {
    %c0_i32 = arith.constant 0 : i32
    %c0_i32_0 = arith.constant 0 : i32
    %c0_i32_1 = arith.constant 0 : i32
    %c0_i32_2 = arith.constant 0 : i32
    return %c0_i32, %c0_i32_0, %c0_i32_1 : i32, i32, i32
  }
  func.func @transform_2(%arg0: i32) -> (i32, i32) {
    %c0_i32 = arith.constant 0 : i32
    %c0_i32_0 = arith.constant 0 : i32
    %c0_i32_1 = arith.constant 0 : i32
    return %c0_i32, %c0_i32_0 : i32, i32
  }
  func.func @transform_3(%arg0: i32) -> (i32, i32, i32) {
    %c0_i32 = arith.constant 0 : i32
    %c0_i32_0 = arith.constant 0 : i32
    %c0_i32_1 = arith.constant 0 : i32
    %c0_i32_2 = arith.constant 0 : i32
    return %c0_i32, %c0_i32_0, %c0_i32_1 : i32, i32, i32
  }
  func.func @transform_4(%arg0: i32) -> (i32, i32, i32) {
    %c0_i32 = arith.constant 0 : i32
    %c0_i32_0 = arith.constant 0 : i32
    %c0_i32_1 = arith.constant 0 : i32
    %c0_i32_2 = arith.constant 0 : i32
    return %c0_i32, %c0_i32_0, %c0_i32_1 : i32, i32, i32
  }
  func.func @transform_5(%arg0: i32) -> (i32, i32, i32) {
    %c0_i32 = arith.constant 0 : i32
    %c0_i32_0 = arith.constant 0 : i32
    %c0_i32_1 = arith.constant 0 : i32
    return %arg0, %c0_i32, %c0_i32_0 : i32, i32, i32
  }
}

module attributes {stable_mosaic.version = 11 : i64} {
  func.func @_conv_pool_kernel(%arg0: i32, %arg1: memref<1x14x140xf32, #tpu.memory_space<vmem>>, %arg2: memref<5x140x200xf32, #tpu.memory_space<vmem>>, %arg3: memref<1x200xf32, #tpu.memory_space<vmem>>, %arg4: memref<2x5x10xf32, #tpu.memory_space<vmem>>, %arg5: memref<2x200x100xf32, #tpu.memory_space<vmem>>, %arg6: memref<1x5x100xf32, #tpu.memory_space<vmem>>) attributes {dimension_semantics = [#tpu.dimension_semantics<parallel>], iteration_bounds = array<i64: 2>, scalar_prefetch = 0 : i64, scratch_operands = 0 : i64, tpu.core_type = #tpu.core_type<tc>, window_params = [{transform_indices = @transform_0, window_bounds = array<i64: 1, 14, 140>}, {pipeline_mode = #tpu.pipeline_mode<synchronous>, transform_indices = @transform_1, window_bounds = array<i64: 5, 140, 200>}, {pipeline_mode = #tpu.pipeline_mode<synchronous>, transform_indices = @transform_2, window_bounds = array<i64: 1, 200>}, {pipeline_mode = #tpu.pipeline_mode<synchronous>, transform_indices = @transform_3, window_bounds = array<i64: 2, 5, 10>}, {pipeline_mode = #tpu.pipeline_mode<synchronous>, transform_indices = @transform_4, window_bounds = array<i64: 2, 200, 100>}, {transform_indices = @transform_5, window_bounds = array<i64: 1, 5, 100>}]} {
    %cst = arith.constant 0.000000e+00 : f32
    %0 = vector.broadcast %cst : f32 to vector<10x200xf32>
    %c0 = arith.constant 0 : index
    %c0_0 = arith.constant 0 : index
    %c0_1 = arith.constant 0 : index
    %1 = vector.load %arg1[%c0, %c0_0, %c0_1] : memref<1x14x140xf32, #tpu.memory_space<vmem>>, vector<1x10x140xf32>
    %2 = vector.shape_cast %1 : vector<1x10x140xf32> to vector<10x140xf32>
    %c0_2 = arith.constant 0 : index
    %c0_3 = arith.constant 0 : index
    %c0_4 = arith.constant 0 : index
    %3 = vector.load %arg2[%c0_2, %c0_3, %c0_4] : memref<5x140x200xf32, #tpu.memory_space<vmem>>, vector<1x140x200xf32>
    %4 = vector.shape_cast %3 : vector<1x140x200xf32> to vector<140x200xf32>
    %cst_5 = arith.constant dense<0.000000e+00> : vector<10x200xf32>
    %5 = tpu.matmul %2, %4, %cst_5 {dimension_numbers = #tpu.dot_dimension_numbers<[1], [0], [0], [1], [0, 0, 1, 1], [], []>} : vector<10x140xf32>, vector<140x200xf32>, vector<10x200xf32> -> vector<10x200xf32>
    %6 = arith.addf %0, %5 : vector<10x200xf32>
    %c0_6 = arith.constant 0 : index
    %c1 = arith.constant 1 : index
    %c0_7 = arith.constant 0 : index
    %7 = vector.load %arg1[%c0_6, %c1, %c0_7] : memref<1x14x140xf32, #tpu.memory_space<vmem>>, vector<1x10x140xf32>
    %8 = vector.shape_cast %7 : vector<1x10x140xf32> to vector<10x140xf32>
    %c1_8 = arith.constant 1 : index
    %c0_9 = arith.constant 0 : index
    %c0_10 = arith.constant 0 : index
    %9 = vector.load %arg2[%c1_8, %c0_9, %c0_10] : memref<5x140x200xf32, #tpu.memory_space<vmem>>, vector<1x140x200xf32>
    %10 = vector.shape_cast %9 : vector<1x140x200xf32> to vector<140x200xf32>
    %cst_11 = arith.constant dense<0.000000e+00> : vector<10x200xf32>
    %11 = tpu.matmul %8, %10, %cst_11 {dimension_numbers = #tpu.dot_dimension_numbers<[1], [0], [0], [1], [0, 0, 1, 1], [], []>} : vector<10x140xf32>, vector<140x200xf32>, vector<10x200xf32> -> vector<10x200xf32>
    %12 = arith.addf %6, %11 : vector<10x200xf32>
    %c0_12 = arith.constant 0 : index
    %c2 = arith.constant 2 : index
    %c0_13 = arith.constant 0 : index
    %13 = vector.load %arg1[%c0_12, %c2, %c0_13] : memref<1x14x140xf32, #tpu.memory_space<vmem>>, vector<1x10x140xf32>
    %14 = vector.shape_cast %13 : vector<1x10x140xf32> to vector<10x140xf32>
    %c2_14 = arith.constant 2 : index
    %c0_15 = arith.constant 0 : index
    %c0_16 = arith.constant 0 : index
    %15 = vector.load %arg2[%c2_14, %c0_15, %c0_16] : memref<5x140x200xf32, #tpu.memory_space<vmem>>, vector<1x140x200xf32>
    %16 = vector.shape_cast %15 : vector<1x140x200xf32> to vector<140x200xf32>
    %cst_17 = arith.constant dense<0.000000e+00> : vector<10x200xf32>
    %17 = tpu.matmul %14, %16, %cst_17 {dimension_numbers = #tpu.dot_dimension_numbers<[1], [0], [0], [1], [0, 0, 1, 1], [], []>} : vector<10x140xf32>, vector<140x200xf32>, vector<10x200xf32> -> vector<10x200xf32>
    %18 = arith.addf %12, %17 : vector<10x200xf32>
    %c0_18 = arith.constant 0 : index
    %c3 = arith.constant 3 : index
    %c0_19 = arith.constant 0 : index
    %19 = vector.load %arg1[%c0_18, %c3, %c0_19] : memref<1x14x140xf32, #tpu.memory_space<vmem>>, vector<1x10x140xf32>
    %20 = vector.shape_cast %19 : vector<1x10x140xf32> to vector<10x140xf32>
    %c3_20 = arith.constant 3 : index
    %c0_21 = arith.constant 0 : index
    %c0_22 = arith.constant 0 : index
    %21 = vector.load %arg2[%c3_20, %c0_21, %c0_22] : memref<5x140x200xf32, #tpu.memory_space<vmem>>, vector<1x140x200xf32>
    %22 = vector.shape_cast %21 : vector<1x140x200xf32> to vector<140x200xf32>
    %cst_23 = arith.constant dense<0.000000e+00> : vector<10x200xf32>
    %23 = tpu.matmul %20, %22, %cst_23 {dimension_numbers = #tpu.dot_dimension_numbers<[1], [0], [0], [1], [0, 0, 1, 1], [], []>} : vector<10x140xf32>, vector<140x200xf32>, vector<10x200xf32> -> vector<10x200xf32>
    %24 = arith.addf %18, %23 : vector<10x200xf32>
    %c0_24 = arith.constant 0 : index
    %c4 = arith.constant 4 : index
    %c0_25 = arith.constant 0 : index
    %25 = vector.load %arg1[%c0_24, %c4, %c0_25] : memref<1x14x140xf32, #tpu.memory_space<vmem>>, vector<1x10x140xf32>
    %26 = vector.shape_cast %25 : vector<1x10x140xf32> to vector<10x140xf32>
    %c4_26 = arith.constant 4 : index
    %c0_27 = arith.constant 0 : index
    %c0_28 = arith.constant 0 : index
    %27 = vector.load %arg2[%c4_26, %c0_27, %c0_28] : memref<5x140x200xf32, #tpu.memory_space<vmem>>, vector<1x140x200xf32>
    %28 = vector.shape_cast %27 : vector<1x140x200xf32> to vector<140x200xf32>
    %cst_29 = arith.constant dense<0.000000e+00> : vector<10x200xf32>
    %29 = tpu.matmul %26, %28, %cst_29 {dimension_numbers = #tpu.dot_dimension_numbers<[1], [0], [0], [1], [0, 0, 1, 1], [], []>} : vector<10x140xf32>, vector<140x200xf32>, vector<10x200xf32> -> vector<10x200xf32>
    %30 = arith.addf %24, %29 : vector<10x200xf32>
    %c0_30 = arith.constant 0 : index
    %c0_31 = arith.constant 0 : index
    %31 = vector.load %arg3[%c0_30, %c0_31] : memref<1x200xf32, #tpu.memory_space<vmem>>, vector<1x200xf32>
    %32 = vector.broadcast %31 : vector<1x200xf32> to vector<10x200xf32>
    %33 = arith.addf %30, %32 : vector<10x200xf32>
    %cst_32 = arith.constant 0.000000e+00 : f32
    %34 = vector.broadcast %cst_32 : f32 to vector<10x200xf32>
    %35 = arith.maximumf %33, %34 : vector<10x200xf32>
    %c0_33 = arith.constant 0 : index
    %c0_34 = arith.constant 0 : index
    %c0_35 = arith.constant 0 : index
    %36 = vector.load %arg4[%c0_33, %c0_34, %c0_35] : memref<2x5x10xf32, #tpu.memory_space<vmem>>, vector<1x5x10xf32>
    %37 = vector.shape_cast %36 : vector<1x5x10xf32> to vector<5x10xf32>
    %cst_36 = arith.constant dense<0.000000e+00> : vector<5x200xf32>
    %38 = tpu.matmul %37, %35, %cst_36 {dimension_numbers = #tpu.dot_dimension_numbers<[1], [0], [0], [1], [0, 0, 1, 1], [], []>} : vector<5x10xf32>, vector<10x200xf32>, vector<5x200xf32> -> vector<5x200xf32>
    %c1_37 = arith.constant 1 : index
    %c0_38 = arith.constant 0 : index
    %c0_39 = arith.constant 0 : index
    %39 = vector.load %arg4[%c1_37, %c0_38, %c0_39] : memref<2x5x10xf32, #tpu.memory_space<vmem>>, vector<1x5x10xf32>
    %40 = vector.shape_cast %39 : vector<1x5x10xf32> to vector<5x10xf32>
    %cst_40 = arith.constant dense<0.000000e+00> : vector<5x200xf32>
    %41 = tpu.matmul %40, %35, %cst_40 {dimension_numbers = #tpu.dot_dimension_numbers<[1], [0], [0], [1], [0, 0, 1, 1], [], []>} : vector<5x10xf32>, vector<10x200xf32>, vector<5x200xf32> -> vector<5x200xf32>
    %42 = arith.maximumf %38, %41 : vector<5x200xf32>
    %c0_41 = arith.constant 0 : index
    %c0_42 = arith.constant 0 : index
    %c0_43 = arith.constant 0 : index
    %43 = vector.load %arg5[%c0_41, %c0_42, %c0_43] : memref<2x200x100xf32, #tpu.memory_space<vmem>>, vector<1x200x100xf32>
    %44 = vector.shape_cast %43 : vector<1x200x100xf32> to vector<200x100xf32>
    %cst_44 = arith.constant dense<0.000000e+00> : vector<5x100xf32>
    %45 = tpu.matmul %42, %44, %cst_44 {dimension_numbers = #tpu.dot_dimension_numbers<[1], [0], [0], [1], [0, 0, 1, 1], [], []>} : vector<5x200xf32>, vector<200x100xf32>, vector<5x100xf32> -> vector<5x100xf32>
    %c1_45 = arith.constant 1 : index
    %c0_46 = arith.constant 0 : index
    %c0_47 = arith.constant 0 : index
    %46 = vector.load %arg5[%c1_45, %c0_46, %c0_47] : memref<2x200x100xf32, #tpu.memory_space<vmem>>, vector<1x200x100xf32>
    %47 = vector.shape_cast %46 : vector<1x200x100xf32> to vector<200x100xf32>
    %cst_48 = arith.constant dense<0.000000e+00> : vector<5x100xf32>
    %48 = tpu.matmul %42, %47, %cst_48 {dimension_numbers = #tpu.dot_dimension_numbers<[1], [0], [0], [1], [0, 0, 1, 1], [], []>} : vector<5x200xf32>, vector<200x100xf32>, vector<5x100xf32> -> vector<5x100xf32>
    %49 = arith.maximumf %45, %48 : vector<5x100xf32>
    %c0_49 = arith.constant 0 : index
    %c0_50 = arith.constant 0 : index
    %c0_51 = arith.constant 0 : index
    %50 = vector.load %arg6[%c0_49, %c0_50, %c0_51] : memref<1x5x100xf32, #tpu.memory_space<vmem>>, vector<1x5x100xf32>
    %51 = vector.shape_cast %50 : vector<1x5x100xf32> to vector<5x100xf32>
    %52 = vector.shape_cast %49 : vector<5x100xf32> to vector<1x5x100xf32>
    tpu.vector_store %arg6[%c0_49, %c0_50, %c0_51], %52 {strides = array<i32>} : memref<1x5x100xf32, #tpu.memory_space<vmem>>, vector<1x5x100xf32>,
    return
  }
  func.func @transform_0(%arg0: i32) -> (i32, i32, i32) {
    %c0_i32 = arith.constant 0 : i32
    %c0_i32_0 = arith.constant 0 : i32
    %c0_i32_1 = arith.constant 0 : i32
    return %arg0, %c0_i32, %c0_i32_0 : i32, i32, i32
  }
  func.func @transform_1(%arg0: i32) -> (i32, i32, i32) {
    %c0_i32 = arith.constant 0 : i32
    %c0_i32_0 = arith.constant 0 : i32
    %c0_i32_1 = arith.constant 0 : i32
    %c0_i32_2 = arith.constant 0 : i32
    return %c0_i32, %c0_i32_0, %c0_i32_1 : i32, i32, i32
  }
  func.func @transform_2(%arg0: i32) -> (i32, i32) {
    %c0_i32 = arith.constant 0 : i32
    %c0_i32_0 = arith.constant 0 : i32
    %c0_i32_1 = arith.constant 0 : i32
    return %c0_i32, %c0_i32_0 : i32, i32
  }
  func.func @transform_3(%arg0: i32) -> (i32, i32, i32) {
    %c0_i32 = arith.constant 0 : i32
    %c0_i32_0 = arith.constant 0 : i32
    %c0_i32_1 = arith.constant 0 : i32
    %c0_i32_2 = arith.constant 0 : i32
    return %c0_i32, %c0_i32_0, %c0_i32_1 : i32, i32, i32
  }
  func.func @transform_4(%arg0: i32) -> (i32, i32, i32) {
    %c0_i32 = arith.constant 0 : i32
    %c0_i32_0 = arith.constant 0 : i32
    %c0_i32_1 = arith.constant 0 : i32
    %c0_i32_2 = arith.constant 0 : i32
    return %c0_i32, %c0_i32_0, %c0_i32_1 : i32, i32, i32
  }
  func.func @transform_5(%arg0: i32) -> (i32, i32, i32) {
    %c0_i32 = arith.constant 0 : i32
    %c0_i32_0 = arith.constant 0 : i32
    %c0_i32_1 = arith.constant 0 : i32
    return %arg0, %c0_i32, %c0_i32_0 : i32, i32, i32
  }
}

module attributes {stable_mosaic.version = 11 : i64} {
  func.func @_fc_fused_kernel(%arg0: i32, %arg1: memref<2x500xf32, #tpu.memory_space<vmem>>, %arg2: memref<500x50xf32, #tpu.memory_space<vmem>>, %arg3: memref<1x50xf32, #tpu.memory_space<vmem>>, %arg4: memref<50x10xf32, #tpu.memory_space<vmem>>, %arg5: memref<1x10xf32, #tpu.memory_space<vmem>>, %arg6: memref<2x10xf32, #tpu.memory_space<vmem>>) attributes {dimension_semantics = [#tpu.dimension_semantics<parallel>], iteration_bounds = array<i64: 1>, scalar_prefetch = 0 : i64, scratch_operands = 0 : i64, tpu.core_type = #tpu.core_type<tc>, window_params = [{transform_indices = @transform_0, window_bounds = array<i64: 2, 500>}, {pipeline_mode = #tpu.pipeline_mode<synchronous>, transform_indices = @transform_1, window_bounds = array<i64: 500, 50>}, {pipeline_mode = #tpu.pipeline_mode<synchronous>, transform_indices = @transform_2, window_bounds = array<i64: 1, 50>}, {pipeline_mode = #tpu.pipeline_mode<synchronous>, transform_indices = @transform_3, window_bounds = array<i64: 50, 10>}, {pipeline_mode = #tpu.pipeline_mode<synchronous>, transform_indices = @transform_4, window_bounds = array<i64: 1, 10>}, {transform_indices = @transform_5, window_bounds = array<i64: 2, 10>}]} {
    %c0 = arith.constant 0 : index
    %c0_0 = arith.constant 0 : index
    %0 = vector.load %arg1[%c0, %c0_0] : memref<2x500xf32, #tpu.memory_space<vmem>>, vector<2x500xf32>
    %c0_1 = arith.constant 0 : index
    %c0_2 = arith.constant 0 : index
    %1 = vector.load %arg2[%c0_1, %c0_2] : memref<500x50xf32, #tpu.memory_space<vmem>>, vector<500x50xf32>
    %cst = arith.constant dense<0.000000e+00> : vector<2x50xf32>
    %2 = tpu.matmul %0, %1, %cst {dimension_numbers = #tpu.dot_dimension_numbers<[1], [0], [0], [1], [0, 0, 1, 1], [], []>} : vector<2x500xf32>, vector<500x50xf32>, vector<2x50xf32> -> vector<2x50xf32>
    %c0_3 = arith.constant 0 : index
    %c0_4 = arith.constant 0 : index
    %3 = vector.load %arg3[%c0_3, %c0_4] : memref<1x50xf32, #tpu.memory_space<vmem>>, vector<1x50xf32>
    %4 = vector.broadcast %3 : vector<1x50xf32> to vector<2x50xf32>
    %5 = arith.addf %2, %4 : vector<2x50xf32>
    %cst_5 = arith.constant 0.000000e+00 : f32
    %6 = vector.broadcast %cst_5 : f32 to vector<2x50xf32>
    %7 = arith.maximumf %5, %6 : vector<2x50xf32>
    %c0_6 = arith.constant 0 : index
    %c0_7 = arith.constant 0 : index
    %8 = vector.load %arg4[%c0_6, %c0_7] : memref<50x10xf32, #tpu.memory_space<vmem>>, vector<50x10xf32>
    %cst_8 = arith.constant dense<0.000000e+00> : vector<2x10xf32>
    %9 = tpu.matmul %7, %8, %cst_8 {dimension_numbers = #tpu.dot_dimension_numbers<[1], [0], [0], [1], [0, 0, 1, 1], [], []>} : vector<2x50xf32>, vector<50x10xf32>, vector<2x10xf32> -> vector<2x10xf32>
    %c0_9 = arith.constant 0 : index
    %c0_10 = arith.constant 0 : index
    %10 = vector.load %arg5[%c0_9, %c0_10] : memref<1x10xf32, #tpu.memory_space<vmem>>, vector<1x10xf32>
    %11 = vector.broadcast %10 : vector<1x10xf32> to vector<2x10xf32>
    %12 = arith.addf %9, %11 : vector<2x10xf32>
    %c0_11 = arith.constant 0 : index
    %c0_12 = arith.constant 0 : index
    %13 = vector.load %arg6[%c0_11, %c0_12] : memref<2x10xf32, #tpu.memory_space<vmem>>, vector<2x10xf32>
    tpu.vector_store %arg6[%c0_11, %c0_12], %12 {strides = array<i32>} : memref<2x10xf32, #tpu.memory_space<vmem>>, vector<2x10xf32>,
    return
  }
  func.func @transform_0(%arg0: i32) -> (i32, i32) {
    %c0_i32 = arith.constant 0 : i32
    %c0_i32_0 = arith.constant 0 : i32
    return %arg0, %c0_i32 : i32, i32
  }
  func.func @transform_1(%arg0: i32) -> (i32, i32) {
    %c0_i32 = arith.constant 0 : i32
    %c0_i32_0 = arith.constant 0 : i32
    %c0_i32_1 = arith.constant 0 : i32
    return %c0_i32, %c0_i32_0 : i32, i32
  }
  func.func @transform_2(%arg0: i32) -> (i32, i32) {
    %c0_i32 = arith.constant 0 : i32
    %c0_i32_0 = arith.constant 0 : i32
    %c0_i32_1 = arith.constant 0 : i32
    return %c0_i32, %c0_i32_0 : i32, i32
  }
  func.func @transform_3(%arg0: i32) -> (i32, i32) {
    %c0_i32 = arith.constant 0 : i32
    %c0_i32_0 = arith.constant 0 : i32
    %c0_i32_1 = arith.constant 0 : i32
    return %c0_i32, %c0_i32_0 : i32, i32
  }
  func.func @transform_4(%arg0: i32) -> (i32, i32) {
    %c0_i32 = arith.constant 0 : i32
    %c0_i32_0 = arith.constant 0 : i32
    %c0_i32_1 = arith.constant 0 : i32
    return %c0_i32, %c0_i32_0 : i32, i32
  }
  func.func @transform_5(%arg0: i32) -> (i32, i32) {
    %c0_i32 = arith.constant 0 : i32
    %c0_i32_0 = arith.constant 0 : i32
    return %arg0, %c0_i32 : i32, i32
  }
}

</mosaic_0001>

<bundles_post_ra>
// kernel: cnn_forward.5
= control target key start
LH: loop header
LB: loop body
LE: loop exit
PB: predicated region body
PF: predicated region fallthrough
CT: control target
= control target key end

     0   :  { %v551_v3 = vmov 0.0|0.0   ;;  %v552_v29 = vmov 1983009808   ;;  %v97_v31 = vlaneseq  ;;  %s840_s0 = inlined_call_operand.vmem [shape: f32[2,500], index: 0, kind: input, shape index: {}]   ;;  %s841_s1 = inlined_call_operand.vmem [shape: f32[500,50], index: 1, kind: input, shape index: {}]   ;;  %s842_s2 = inlined_call_operand.vmem [shape: f32[1,50], index: 2, kind: input, shape index: {}]   ;;  %s843_s3 = inlined_call_operand.vmem [shape: f32[50,10], index: 3, kind: input, shape index: {}]   ;;  %s844_s4 = inlined_call_operand.vmem [shape: f32[1,10], index: 4, kind: input, shape index: {}]   ;;  %s845_s5 = inlined_call_operand.hbm [shape: f32[2,10], index: 5, kind: output, shape index: {}]  }
   0x1   :  { %v54_v0 = vld [vmem:[%s841_s1 + $0x100] sm:$0xff]  ;;  %v55_v1 = vld [vmem:[%s841_s1 + $0x108] sm:$0xff]  ;;  %v56_v2 = vld [vmem:[%s841_s1 + $0x110] sm:$0xff]  ;;  %467 = vmatprep.subr.bf16.mxu1 %v551_v3  ;;  %v95_v30 = vunpack.c.l.s4 %v552_v29 }
   0x2   :  { %v468_v4 = vpack.c.bf16 %v55_v1, %v54_v0  ;;  %v57_v5 = vld [vmem:[%s841_s1 + $0x118] sm:$0xff]  ;;  %v58_v7 = vld [vmem:[%s841_s1 + $0x120] sm:$0xff]  ;;  %v59_v8 = vld [vmem:[%s841_s1 + $0x128] sm:$0xff]  ;;  %v98_v42 = vshrl.u32 %v97_v31, 7 }
   0x3   :  { %v471_v6 = vpack.c.bf16 %v57_v5, %v56_v2  ;;  %v38_v9 = vld [vmem:[%s841_s1 + $0x80] sm:$0xff]  ;;  %v39_v10 = vld [vmem:[%s841_s1 + $0x88] sm:$0xff]  ;;  %v40_v15 = vld [vmem:[%s841_s1 + $0x90] sm:$0xff]  ;;  %v474_v18 = vpack.c.bf16 %v59_v8, %v58_v7  ;;  %v96_v41 = vunpack.c.0.s8 %v95_v30 }
   0x4   :  { %469 = vmatpush1.bf16.msra.mxu1 %v468_v4  ;;  %v22_v11 = vld [vmem:[%s841_s1] sm:$0xff]  ;;  %v435_v12 = vpack.c.bf16 %v39_v10, %v38_v9  ;;  %v23_v13 = vld [vmem:[%s841_s1 + $0x8] sm:$0xff]  ;;  %v41_v16 = vld [vmem:[%s841_s1 + $0x98] sm:$0xff] }
   0x5   :  { %470 = vmatprep.subr.bf16.mxu1 %v551_v3  ;;  %v437_v14 = vpack.c.bf16 %v23_v13, %v22_v11  ;;  %v24_v17 = vld [vmem:[%s841_s1 + $0x10] sm:$0xff]  ;;  %v439_v20 = vpack.c.bf16 %v41_v16, %v40_v15  ;;  %v25_v21 = vld [vmem:[%s841_s1 + $0x18] sm:$0xff]  ;;  %v42_v24 = vld [vmem:[%s841_s1 + $0xa0] sm:$0xff]  ;;  %v99_v52 = vsub.s32 %v96_v41, %v98_v42 }
   0x6   :  { %v60_v19 = vld [vmem:[%s841_s1 + $0x130] sm:$0xff]  ;;  %436 = vmatprep.subr.bf16.mxu0 %v435_v12  ;;  %v61_v22 = vld [vmem:[%s841_s1 + $0x138] sm:$0xff]  ;;  %v441_v23 = vpack.c.bf16 %v25_v21, %v24_v17  ;;  %v43_v25 = vld [vmem:[%s841_s1 + $0xa8] sm:$0xff] }
   0x7   :  { %438 = vmatpush3.bf16.msra.mxu0 %v437_v14  ;;  %v443_v26 = vpack.c.bf16 %v43_v25, %v42_v24  ;;  %v26_v27 = vld [vmem:[%s841_s1 + $0x20] sm:$0xff]  ;;  %v27_v28 = vld [vmem:[%s841_s1 + $0x28] sm:$0xff]  ;;  %v44_v32 = vld [vmem:[%s841_s1 + $0xb0] sm:$0xff]  ;;  %v477_v34 = vpack.c.bf16 %v61_v22, %v60_v19 }
   0x8   :  { %472 = vmatpush1.bf16.msra.mxu1 %v471_v6  ;;  %440 = vmatprep.subr.bf16.mxu0 %v439_v20  ;;  %v45_v33 = vld [vmem:[%s841_s1 + $0xb8] sm:$0xff]  ;;  %v62_v35 = vld [vmem:[%s841_s1 + $0x140] sm:$0xff]  ;;  %v63_v36 = vld [vmem:[%s841_s1 + $0x148] sm:$0xff]  ;;  %v445_v37 = vpack.c.bf16 %v27_v28, %v26_v27 }
   0x9   :  { %473 = vmatprep.subr.bf16.mxu1 %v551_v3  ;;  %v447_v38 = vpack.c.bf16 %v45_v33, %v44_v32  ;;  %v28_v39 = vld [vmem:[%s841_s1 + $0x30] sm:$0xff]  ;;  %v29_v40 = vld [vmem:[%s841_s1 + $0x38] sm:$0xff]  ;;  %v46_v43 = vld [vmem:[%s841_s1 + $0xc0] sm:$0xff]  ;;  %v480_v45 = vpack.c.bf16 %v63_v36, %v62_v35 }
   0xa   :  { %v47_v44 = vld [vmem:[%s841_s1 + $0xc8] sm:$0xff]  ;;  %v64_v46 = vld [vmem:[%s841_s1 + $0x150] sm:$0xff]  ;;  %v65_v47 = vld [vmem:[%s841_s1 + $0x158] sm:$0xff]  ;;  %v449_v48 = vpack.c.bf16 %v29_v40, %v28_v39 }
   0xb   :  { %442 = vmatpush3.bf16.msra.mxu0 %v441_v23  ;;  %v451_v49 = vpack.c.bf16 %v47_v44, %v46_v43  ;;  %v30_v50 = vld [vmem:[%s841_s1 + $0x40] sm:$0xff]  ;;  %v31_v51 = vld [vmem:[%s841_s1 + $0x48] sm:$0xff]  ;;  %v48_v53 = vld [vmem:[%s841_s1 + $0xd0] sm:$0xff]  ;;  %v483_v55 = vpack.c.bf16 %v65_v47, %v64_v46 }
   0xc   :  { %475 = vmatpush1.bf16.msra.mxu1 %v474_v18  ;;  %444 = vmatprep.subr.bf16.mxu0 %v443_v26  ;;  %v49_v54 = vld [vmem:[%s841_s1 + $0xd8] sm:$0xff]  ;;  %v66_v56 = vld [vmem:[%s841_s1 + $0x160] sm:$0xff]  ;;  %v67_v57 = vld [vmem:[%s841_s1 + $0x168] sm:$0xff]  ;;  %v453_v58 = vpack.c.bf16 %v31_v51, %v30_v50 }
   0xd   :  { %476 = vmatprep.subr.bf16.mxu1 %v551_v3  ;;  %v21_v59 = vld [vmem:[%s840_s0] sm:$0xff]  ;;  %v455_v60 = vpack.c.bf16 %v49_v54, %v48_v53  ;;  %v32_v61 = vld [vmem:[%s841_s1 + $0x50] sm:$0xff]  ;;  %v33_v62 = vld [vmem:[%s841_s1 + $0x58] sm:$0xff] }
   0xe   :  { %v93_v63 = vcombine.high %v21_v59, %v21_v59  ;;  %v100_v0 = vrot.slane %v21_v59, %v99_v52  ;;  %v50_v1 = vld [vmem:[%s841_s1 + $0xe0] sm:$0xff]  ;;  %v51_v2 = vld [vmem:[%s841_s1 + $0xe8] sm:$0xff] }
   0xf   :  { %446 = vmatpush3.bf16.msra.mxu0 %v445_v37 }
  0x10   :  { %478 = vmatpush1.bf16.msra.mxu1 %v477_v34  ;;  %448 = vmatprep.subr.bf16.mxu0 %v447_v38 }
  0x11   :  { %479 = vmatprep.subr.bf16.mxu1 %v551_v3 }
  0x13   :  { %450 = vmatpush3.bf16.msra.mxu0 %v449_v48 }
  0x14   :  { %481 = vmatpush1.bf16.msra.mxu1 %v480_v45  ;;  %452 = vmatprep.subr.bf16.mxu0 %v451_v49 }
  0x15   :  { %482 = vmatprep.subr.bf16.mxu1 %v551_v3 }
  0x16   :  { %10 = vsyncpa [#allocation3], 0  ;;  %v486_v4 = vpack.c.bf16 %v67_v57, %v66_v56  ;;  %v108_v5 = vcombine.high %v100_v0, %v100_v0  ;;  %v715_v6 = vrot.slane %v93_v63, %v99_v52  ;;  %v68_v7 = vld [vmem:[%s841_s1 + $0x170] sm:$0xff]  ;;  %v69_v8 = vld [vmem:[%s841_s1 + $0x178] sm:$0xff]  ;;  %v457_v9 = vpack.c.bf16 %v33_v62, %v32_v61  ;;  %s555_s9 = smov [#allocation2]  }
  0x17   :  { %454 = vmatpush3.bf16.msra.mxu0 %v453_v58  ;;  %vm113_vm0 = vcmask 949248   ;;  %v459_v10 = vpack.c.bf16 %v51_v2, %v50_v1  ;;  %v34_v11 = vld [vmem:[%s841_s1 + $0x60] sm:$0xff]  ;;  %v35_v12 = vld [vmem:[%s841_s1 + $0x68] sm:$0xff]  ;;  %v52_v14 = vld [vmem:[%s841_s1 + $0xf0] sm:$0xff]  ;;  %v489_v16 = vpack.c.bf16 %v69_v8, %v68_v7  ;;  %v553_v46 = vmov 0.0   ;;  %s361_s10 = sshll.u32 %s555_s9, 4  ;;  %s362_s10 = int_to_ptr.vmem [resolvable:$true] %s361_s10 }
  0x18   :  { %484 = vmatpush1.bf16.msra.mxu1 %v483_v55  ;;  %456 = vmatprep.subr.bf16.mxu0 %v455_v60  ;;  %v109_v13 = vcombine.high %v715_v6, %v715_v6  ;;  %v53_v15 = vld [vmem:[%s841_s1 + $0xf8] sm:$0xff]  ;;  %v70_v17 = vld [vmem:[%s841_s1 + $0x180] sm:$0xff]  ;;  %v71_v18 = vld [vmem:[%s841_s1 + $0x188] sm:$0xff]  ;;  %v461_v19 = vpack.c.bf16 %v35_v12, %v34_v11  ;;  %vm116_vm1 = vcmask 1043456   ;;  %vm279_vm2 = vcmask 1041408   ;;  %p532_p1 = scmp.lt.s32.totalorder %s362_s10, %s362_s10 }
  0x19   :  { %485 = vmatprep.subr.bf16.mxu1 %v551_v3  ;;  %184 = vmatprep.mubr.f32.mxu0 %v108_v5  ;;  %v463_v20 = vpack.c.bf16 %v53_v15, %v52_v14  ;;  %v36_v21 = vld [vmem:[%s841_s1 + $0x70] sm:$0xff]  ;;  %v37_v22 = vld [vmem:[%s841_s1 + $0x78] sm:$0xff]  ;;  %v492_v23 = vpack.c.bf16 %v71_v18, %v70_v17  ;;  %v261_v27 = vld [vmem:[%s843_s3] sm:$0xff]  ;;  %vm554_vm3 = vmmov 0   ;;  %vm275_vm4 = vcmask 408576  }
  0x1a   :  { %371 = vmatprep.mubr.msk.f32.mxu1 %vm113_vm0, %v109_v13  ;;  %v72_v24 = vld [vmem:[%s841_s1 + $0x190] sm:$0xff]  ;;  %v73_v25 = vld [vmem:[%s841_s1 + $0x198] sm:$0xff]  ;;  %v465_v26 = vpack.c.bf16 %v37_v22, %v36_v21  ;;  %v262_v28 = vld [vmem:[%s843_s3 + $0x8] sm:$0xff]  ;;  %vm353_vm5 = vcmask 74752  }
  0x1b   :  { %458 = vmatpush3.bf16.msra.mxu0 %v457_v9  ;;  %v495_v29 = vpack.c.bf16 %v73_v25, %v72_v24  ;;  %v74_v30 = vld [vmem:[%s841_s1 + $0x1a0] sm:$0xff]  ;;  %v75_v31 = vld [vmem:[%s841_s1 + $0x1a8] sm:$0xff]  ;;  %v513_v32 = vpack.c.bf16 %v262_v28, %v261_v27  ;;  %v76_v34 = vld [vmem:[%s841_s1 + $0x1b0] sm:$0xff] }
  0x1c   :  { %487 = vmatpush1.bf16.msra.mxu1 %v486_v4  ;;  %460 = vmatprep.subr.bf16.mxu0 %v459_v10  ;;  %v498_v33 = vpack.c.bf16 %v75_v31, %v74_v30  ;;  %v77_v35 = vld [vmem:[%s841_s1 + $0x1b8] sm:$0xff]  ;;  %v78_v37 = vld [vmem:[%s841_s1 + $0x1c0] sm:$0xff]  ;;  %v79_v38 = vld [vmem:[%s841_s1 + $0x1c8] sm:$0xff] }
  0x1d   :  { %488 = vmatprep.subr.bf16.mxu1 %v551_v3  ;;  %v501_v36 = vpack.c.bf16 %v77_v35, %v76_v34  ;;  %v504_v39 = vpack.c.bf16 %v79_v38, %v78_v37  ;;  %v80_v40 = vld [vmem:[%s841_s1 + $0x1d0] sm:$0xff]  ;;  %v81_v41 = vld [vmem:[%s841_s1 + $0x1d8] sm:$0xff]  ;;  %v82_v43 = vld [vmem:[%s841_s1 + $0x1e0] sm:$0xff] }
  0x1e   :  { %v507_v42 = vpack.c.bf16 %v81_v41, %v80_v40  ;;  %v83_v44 = vld [vmem:[%s841_s1 + $0x1e8] sm:$0xff]  ;;  %v84_v47 = vld [vmem:[%s841_s1 + $0x1f0] sm:$0xf]  ;;  %v264_v49 = vld [vmem:[%s843_s3 + $0x18] sm:$0xff] }
  0x1f   :  { %462 = vmatpush3.bf16.msra.mxu0 %v461_v19  ;;  %v510_v45 = vpack.c.bf16 %v83_v44, %v82_v43  ;;  %v263_v48 = vld [vmem:[%s843_s3 + $0x10] sm:$0xff]  ;;  %v265_v51 = vld [vmem:[%s843_s3 + $0x20] sm:$0xff]  ;;  %v266_v52 = vld [vmem:[%s843_s3 + $0x28] sm:$0xff] }
  0x20   :  { %490 = vmatpush1.bf16.msra.mxu1 %v489_v16  ;;  %464 = vmatprep.subr.bf16.mxu0 %v463_v20  ;;  %v516_v50 = vpack.c.bf16 %v264_v49, %v263_v48  ;;  %v519_v53 = vpack.c.bf16 %v266_v52, %v265_v51  ;;  %v267_v54 = vld [vmem:[%s843_s3 + $0x30] sm:$0x3]  ;;  %v369_v57 = vld [vmem:[%s842_s2] ss:$0 sm:$0xff]  ;;  %s527_s2 = scalar_lea.vmem %s362_s10, 32 }
  0x21   :  { %491 = vmatprep.subr.bf16.mxu1 %v551_v3  ;;  %v372_v63 = vld [vmem:[%s844_s4] ss:$0 sm:$0xff]  ;;  %p528_p0 = scmp.ne.s32.totalorder %s362_s10, %s527_s2  ;;  %p533_p2 = scmp.lt.s32.totalorder %s527_s2, %s527_s2 }
  0x23   :  { %466 = vmatpush3.bf16.msra.mxu0 %v465_v26  ;;  %p534_p3 = por %p533_p2, %p532_p1 }
  0x24   :  { %493 = vmatpush1.bf16.msra.mxu1 %v492_v23  ;;  %512 = vmatprep.subr.bf16.mxu0 %v551_v3 }
  0x25   :  { %494 = vmatprep.subr.bf16.mxu1 %v551_v3  ;;  %p535_p4 = pnand %p534_p3, %p528_p0 }
  0x26   :  { %185 = vmatmul.mubr.f32.vlgmr.msra.gmra.mrb[0].mxu0 %v100_v0 }
  0x27   :  { %514 = vmatpush3.bf16.msra.mxu0 %v513_v32  ;;  %432 = vmatprep.mubr.msk.f32.mxu0 %vm554_vm3, %v553_v46 }
  0x28   :  { %496 = vmatpush1.bf16.msra.mxu1 %v495_v29  ;;  %515 = vmatprep.subr.bf16.mxu0 %v551_v3 }
  0x29   :  { %497 = vmatprep.subr.bf16.mxu1 %v551_v3 }
  0x2b   :  { %517 = vmatpush3.bf16.msra.mxu0 %v516_v50 }
  0x2c   :  { %499 = vmatpush1.bf16.msra.mxu1 %v498_v33  ;;  %518 = vmatprep.subr.bf16.mxu0 %v551_v3 }
  0x2d   :  { %500 = vmatprep.subr.bf16.mxu1 %v551_v3 }
  0x2f   :  { %520 = vmatpush3.bf16.msra.mxu0 %v519_v53 }
  0x30   :  { %502 = vmatpush1.bf16.msra.mxu1 %v501_v36  ;;  %430 = vmatprep.subr.mxu0 %v553_v46 }
  0x31   :  { %503 = vmatprep.subr.bf16.mxu1 %v551_v3 }
  0x33   :  { %431 = vmatpush3.msk.msra.mxu0 %vm279_vm2, %v267_v54 }
  0x34   :  { %505 = vmatpush1.bf16.msra.mxu1 %v504_v39 }
  0x35   :  { %506 = vmatprep.subr.bf16.mxu1 %v551_v3 }
  0x38   :  { %508 = vmatpush1.bf16.msra.mxu1 %v507_v42 }
  0x39   :  { %509 = vmatprep.subr.bf16.mxu1 %v551_v3 }
  0x3c   :  { %511 = vmatpush1.bf16.msra.mxu1 %v510_v45 }
  0x3d   :  { %250 = vmatprep.subr.mxu1 %v553_v46 }
  0x40   :  { %370 = vmatpush1.msk.msra.mxu1 %vm116_vm1, %v84_v47 }
  0x41   :  { %255 = vmatmul.mubr.f32.vlgmr.msra.gmra.mrb[0].mxu1 %v715_v6 }
  0xf9   :  { %v407_v3 = vpop.f32.mrb[0].mxu0 }
  0xfa   :  { %v408_v55 = vpop.f32.mrb[1].mxu0 }
  0xfb   :  { %v409_v56 = vadd.f32 %v408_v55, %v407_v3 }
  0xfd   :  { %v187_v58 = vadd.f32 %v409_v56, %v369_v57 }
 0x114   :  { %v256_v59 = vpop.f32.mrb[0].mxu1 }
 0x115   :  { %v257_v60 = vadd.f32 %v256_v59, %v187_v58  ;;  %v258_v61 = vpop.f32.mrb[1].mxu1 }
 0x117   :  { %v260_v62 = vmax.f32 %v257_v60, 0.0 }
 0x119   :  { %433 = vmatmul.mubr.msk.f32.vlgmr.msra.gmra.mrb[2].mxu0 %vm275_vm4, %v260_v62 }
 0x1ec   :  { %v349_v0 = vpop.f32.mrb[2].mxu0 }
 0x1ed   :  { %v350_v1 = vadd.f32 %v372_v63, %v349_v0  ;;  %v434_v2 = vpop.f32.mrb[3].mxu0 }
 0x1ef   :  { %354 = vst.msk [vmem:[#allocation2] sm:$0x3] %vm353_vm5, %v350_v1 }
 0x1f0   :  { %538 = shalt.err (!%p535_p4)
}
 0x1f1   :  { %s539_s13 = scalar_lea.hbm %s845_s5, 32 }
 0x1f2   :  { %p540_p5 = scmp.ne.s32.totalorder %s845_s5, %s539_s13  ;;  %p543_p6 = scmp.lt.u32.totalorder %s539_s13, %s845_s5 }
 0x1f4   :  { %p545_p7 = pnand %p543_p6, %p540_p5 }
 0x1f6   :  { %548 = shalt.err (!%p545_p7)
}
 0x1f7   :  { %364 = dma.vmem_to_hbm [thread:$0]  %s362_s10, 32, %s845_s5, [#allocation3]  }
 0x1f8   :  { %549 = dma.done.wait [#allocation3], 32  }
 0x1f9   :  { %550 = vsyncadd [#allocation3], 4294967264 }
 0x1fa   :  { %368 = vsyncpa [#allocation3], 1 }

// kernel: cnn_forward.4
= control target key start
LH: loop header
LB: loop body
LE: loop exit
PB: predicated region body
PF: predicated region fallthrough
CT: control target
= control target key end

     0   :  { %s1912_s18 = smov 0   ;;  %s2782_s0 = inlined_call_operand.vmem [shape: f32[2,14,140], index: 0, kind: input, shape index: {}]   ;;  %s2783_s1 = inlined_call_operand.vmem [shape: f32[5,140,200], index: 1, kind: input, shape index: {}]   ;;  %s2784_s2 = inlined_call_operand.vmem [shape: f32[1,200], index: 2, kind: input, shape index: {}]   ;;  %s2785_s3 = inlined_call_operand.vmem [shape: f32[2,5,10], index: 3, kind: input, shape index: {}]   ;;  %s2786_s4 = inlined_call_operand.vmem [shape: f32[2,200,100], index: 4, kind: input, shape index: {}]   ;;  %s2787_s5 = inlined_call_operand.vmem [shape: f32[2,5,100], index: 5, kind: output, shape index: {}]  }
   0x1 LB: > { %s1361_s19 = sadd.s32 4294967295, %s1877_s18   ;;  %p1365_p0 = scmp.ge.s32.totalorder %s1877_s18, 1  ;;  %s1877_s18 = sphi %s1912_s18, %s15_s18  }
   0x2   : > { %p187_p1 = scmp.lt.s32.totalorder %s1877_s18, 3 }
   0x4   : > { %p188_p2 = pnand %p1365_p0, %p187_p1 }
   0x5   : > { %v228_v0 = vld [vmem:[%s2783_s1 + $0x8] sm:$0xff] (!%p188_p2)  ;;  %v230_v1 = vld [vmem:[%s2783_s1 + $0x18] sm:$0xff] (!%p188_p2)  ;;  %v227_v2 = vld [vmem:[%s2783_s1] sm:$0xff] (!%p188_p2)  ;;  %p214_p3 = scmp.lt.s32.totalorder (!%p188_p2), %s1361_s19, 1  ;;  %vm317_vm0 = vcmask (!%p188_p2), 97280   ;;  %vm322_vm1 = vcmask (!%p188_p2), 1043456  }
   0x6   : > { %191 = sbr.rel (%p188_p2) target bundleno = 866 (0x362), region = 40  ;;  %v1608_v3 = vpack.c.bf16 (!%p188_p2), %v230_v1, %v228_v0  ;;  %v229_v4 = vld [vmem:[%s2783_s1 + $0x10] sm:$0xff] (!%p188_p2)  ;;  %v232_v5 = vld [vmem:[%s2783_s1 + $0x28] sm:$0xff] (!%p188_p2)  ;;  %v234_v6 = vld [vmem:[%s2783_s1 + $0x38] sm:$0xff] (!%p188_p2)  ;;  %vm1879_vm2 = vmmov (!%p188_p2), 1   ;;  %vm540_vm4 = vcmask (!%p188_p2), 1045504  }
   0x7   : > { %v1610_v7 = vpack.c.bf16 (!%p188_p2), %v229_v4, %v227_v2  ;;  %v1612_v8 = vpack.c.bf16 (!%p188_p2), %v234_v6, %v232_v5  ;;  %v231_v9 = vld [vmem:[%s2783_s1 + $0x20] sm:$0xff] (!%p188_p2)  ;;  %v233_v10 = vld [vmem:[%s2783_s1 + $0x30] sm:$0xff] (!%p188_p2)  ;;  %v236_v11 = vld [vmem:[%s2783_s1 + $0x48] sm:$0xff] (!%p188_p2)  ;;  %vm308_vm5 = vcmask (!%p188_p2), 1046528   ;;  %vm685_vm6 = vcmask (!%p188_p2), 1044480  }
   0x8   : > { %1609 = vmatprep.subr.bf16.mxu0 (!%p188_p2), %v1608_v3  ;;  %v238_v12 = vld [vmem:[%s2783_s1 + $0x58] sm:$0xff] (!%p188_p2)  ;;  %v1614_v13 = vpack.c.bf16 (!%p188_p2), %v233_v10, %v231_v9  ;;  %v235_v15 = vld [vmem:[%s2783_s1 + $0x40] sm:$0xff] (!%p188_p2)  ;;  %v237_v16 = vld [vmem:[%s2783_s1 + $0x50] sm:$0xff] (!%p188_p2)  ;;  %vm954_vm7 = vcmask (!%p188_p2), 1041408   ;;  %vm950_vm9 = vcmask (!%p188_p2), 80896   ;;  %vm1135_vm10 = vcmask (!%p188_p2), 588800  }
   0x9   : > { %1611 = vmatpush1.bf16.msra.mxu0 (!%p188_p2), %v1610_v7  ;;  %v1616_v14 = vpack.c.bf16 (!%p188_p2), %v238_v12, %v236_v11  ;;  %v240_v17 = vld [vmem:[%s2783_s1 + $0x68] sm:$0xff] (!%p188_p2)  ;;  %v242_v18 = vld [vmem:[%s2783_s1 + $0x78] sm:$0xff] (!%p188_p2)  ;;  %v1618_v19 = vpack.c.bf16 (!%p188_p2), %v237_v16, %v235_v15  ;;  %v239_v21 = vld [vmem:[%s2783_s1 + $0x60] sm:$0xff] (!%p188_p2)  ;;  %vm1306_vm11 = vcmask (!%p188_p2), 815104  }
   0xa   : > { %1613 = vmatprep.subr.bf16.mxu0 (!%p188_p2), %v1612_v8  ;;  %v1620_v20 = vpack.c.bf16 (!%p188_p2), %v242_v18, %v240_v17  ;;  %v241_v22 = vld [vmem:[%s2783_s1 + $0x70] sm:$0xff] (!%p188_p2)  ;;  %v244_v23 = vld [vmem:[%s2783_s1 + $0x88] sm:$0xff] (!%p188_p2)  ;;  %v246_v24 = vld [vmem:[%s2783_s1 + $0x98] sm:$0xff] (!%p188_p2) }
   0xb   : > { %v1622_v25 = vpack.c.bf16 (!%p188_p2), %v241_v22, %v239_v21  ;;  %v1624_v27 = vpack.c.bf16 (!%p188_p2), %v246_v24, %v244_v23  ;;  %v243_v28 = vld [vmem:[%s2783_s1 + $0x80] sm:$0xff] (!%p188_p2)  ;;  %v245_v29 = vld [vmem:[%s2783_s1 + $0x90] sm:$0xff] (!%p188_p2)  ;;  %v248_v30 = vld [vmem:[%s2783_s1 + $0xa8] sm:$0xff] (!%p188_p2) }
   0xc   : > { %v250_v31 = vld [vmem:[%s2783_s1 + $0xb8] sm:$0xff] (!%p188_p2)  ;;  %v1626_v32 = vpack.c.bf16 (!%p188_p2), %v245_v29, %v243_v28  ;;  %v247_v34 = vld [vmem:[%s2783_s1 + $0xa0] sm:$0xff] (!%p188_p2)  ;;  %v249_v35 = vld [vmem:[%s2783_s1 + $0xb0] sm:$0xff] (!%p188_p2) }
   0xd   : > { %s2791_s19 = smov (!%p214_p3, %s1361_s19), 1  ;;  %1615 = vmatpush1.bf16.msra.mxu0 %v1614_v13  ;;  %v1628_v33 = vpack.c.bf16 %v250_v31, %v248_v30  ;;  %v252_v36 = vld [vmem:[%s2783_s1 + $0xc8] sm:$0xff]  ;;  %v254_v37 = vld [vmem:[%s2783_s1 + $0xd8] sm:$0xff]  ;;  %v1630_v38 = vpack.c.bf16 %v249_v35, %v247_v34  ;;  %v251_v40 = vld [vmem:[%s2783_s1 + $0xc0] sm:$0xff] }
   0xe   : > { %s1569_s25 = sshll.u32 %s2791_s19, 5  ;;  %1617 = vmatprep.subr.bf16.mxu0 %v1616_v14  ;;  %v1632_v39 = vpack.c.bf16 %v254_v37, %v252_v36  ;;  %v253_v41 = vld [vmem:[%s2783_s1 + $0xd0] sm:$0xff]  ;;  %v256_v42 = vld [vmem:[%s2783_s1 + $0xe8] sm:$0xff]  ;;  %v258_v43 = vld [vmem:[%s2783_s1 + $0xf8] sm:$0xff]  ;;  %s1368_s16 = sshll.u32 %s2791_s19, 3 }
   0xf   : > { %s1974_s7 = scalar_lea.vmem %s2782_s0, %s1569_s25  ;;  %v1634_v44 = vpack.c.bf16 %v253_v41, %v251_v40  ;;  %v1636_v45 = vpack.c.bf16 %v258_v43, %v256_v42  ;;  %v255_v46 = vld [vmem:[%s2783_s1 + $0xe0] sm:$0xff]  ;;  %v257_v47 = vld [vmem:[%s2783_s1 + $0xf0] sm:$0xff]  ;;  %v260_v48 = vld [vmem:[%s2783_s1 + $0x108] sm:$0xff]  ;;  %s222_s21 = scalar_lea.vmem %s2787_s5, %s1368_s16 }
  0x10   : > { %v224_v26 = vld [vmem:[%s1974_s7 + $0x8] sm:$0xff]  ;;  %v262_v49 = vld [vmem:[%s2783_s1 + $0x118] sm:$0xf]  ;;  %v1638_v50 = vpack.c.bf16 %v257_v47, %v255_v46  ;;  %v259_v52 = vld [vmem:[%s2783_s1 + $0x100] sm:$0xff] }
  0x11   : > { %1619 = vmatpush1.bf16.msra.mxu0 %v1618_v19  ;;  %1411 = vmatprep.mubr.msk.f32.mxu0 %vm317_vm0, %v224_v26  ;;  %v1640_v51 = vpack.c.bf16 %v262_v49, %v260_v48  ;;  %v261_v53 = vld [vmem:[%s2783_s1 + $0x110] sm:$0xf]  ;;  %vm2040_vm3 = vmpackc.low %vm322_vm1, %vm1879_vm2  ;;  %v1414_v55 = vld [vmem:[%s2783_s1 + $0x248] sm:$0xff] }
  0x12   : > { %1621 = vmatprep.subr.bf16.mxu0 %v1620_v20  ;;  %v1416_v56 = vld [vmem:[%s2783_s1 + $0x258] sm:$0xff]  ;;  %v1643_v57 = vpack.c.bf16 %v261_v53, %v259_v52  ;;  %v1413_v59 = vld [vmem:[%s2783_s1 + $0x240] sm:$0xff]  ;;  %v1415_v60 = vld [vmem:[%s2783_s1 + $0x250] sm:$0xff] }
  0x13   : > { %v1646_v58 = vpack.c.bf16 %v1416_v56, %v1414_v55  ;;  %v1418_v61 = vld [vmem:[%s2783_s1 + $0x268] sm:$0xff]  ;;  %v1420_v62 = vld [vmem:[%s2783_s1 + $0x278] sm:$0xff]  ;;  %v223_v1 = vld [vmem:[%s1974_s7] sm:$0xff]  ;;  %v1648_v2 = vpack.c.bf16 %v1415_v60, %v1413_v59 }
  0x14   : > { %v496_v63 = vld [vmem:[%s1974_s7 + $0x8] sm:$0xfc]  ;;  %v2066_v0 = vld [vmem:[%s1974_s7 + $0x18] sm:$0xf]  ;;  %v1650_v3 = vpack.c.bf16 %v1420_v62, %v1418_v61  ;;  %v1417_v4 = vld [vmem:[%s2783_s1 + $0x260] sm:$0xff] }
  0x15   : > { %1623 = vmatpush1.bf16.msra.mxu0 %v1622_v25  ;;  %v1419_v5 = vld [vmem:[%s2783_s1 + $0x270] sm:$0xff]  ;;  %v226_v6 = vld [vmem:[%s1974_s7 + $0x18] sm:$0x3]  ;;  %v544_v7 = vrot.slane %v496_v63, 2  ;;  %v545_v8 = vrot.slane %v2066_v0, 2  ;;  %v1422_v9 = vld [vmem:[%s2783_s1 + $0x288] sm:$0xff] }
  0x16   : > { %1625 = vmatprep.subr.bf16.mxu0 %v1624_v27  ;;  %v1424_v10 = vld [vmem:[%s2783_s1 + $0x298] sm:$0xff]  ;;  %v1370_v11 = vld [vmem:[%s2783_s1 + $0x128] sm:$0xff]  ;;  %v1369_v13 = vld [vmem:[%s2783_s1 + $0x120] sm:$0xff]  ;;  %v1652_v14 = vpack.c.bf16 %v1419_v5, %v1417_v4 }
  0x17   : > { %v1372_v12 = vld [vmem:[%s2783_s1 + $0x138] sm:$0xff]  ;;  %v225_v15 = vld [vmem:[%s1974_s7 + $0x10] sm:$0x3]  ;;  %v1654_v18 = vpack.c.bf16 %v1424_v10, %v1422_v9  ;;  %v1421_v19 = vld [vmem:[%s2783_s1 + $0x280] sm:$0xff]  ;;  %v546_v21 = vsel %vm540_vm4, %v544_v7, %v545_v8 }
  0x18   : > { %v1570_v16 = vpack.c.bf16 %v1372_v12, %v1370_v11  ;;  %v1371_v17 = vld [vmem:[%s2783_s1 + $0x130] sm:$0xff]  ;;  %v1426_v23 = vld [vmem:[%s2783_s1 + $0x2a8] sm:$0xff]  ;;  %v1428_v24 = vld [vmem:[%s2783_s1 + $0x2b8] sm:$0xff] }
  0x19   : > { %1627 = vmatpush1.bf16.msra.mxu0 %v1626_v32  ;;  %v1423_v20 = vld [vmem:[%s2783_s1 + $0x290] sm:$0xff]  ;;  %v1572_v22 = vpack.c.bf16 %v1371_v17, %v1369_v13  ;;  %v1374_v25 = vld [vmem:[%s2783_s1 + $0x148] sm:$0xff]  ;;  %v1376_v26 = vld [vmem:[%s2783_s1 + $0x158] sm:$0xff] }
  0x1a   : > { %1629 = vmatprep.subr.bf16.mxu0 %v1628_v33  ;;  %1571 = vmatprep.subr.bf16.mxu1 %v1570_v16  ;;  %v1373_v27 = vld [vmem:[%s2783_s1 + $0x140] sm:$0xff]  ;;  %v1656_v28 = vpack.c.bf16 %v1423_v20, %v1421_v19  ;;  %v1427_v30 = vld [vmem:[%s2783_s1 + $0x2b0] sm:$0xff]  ;;  %v1574_v31 = vpack.c.bf16 %v1376_v26, %v1374_v25  ;;  %v1658_v33 = vpack.c.bf16 %v1428_v24, %v1426_v23  ;;  %v1430_v34 = vld [vmem:[%s2783_s1 + $0x2c8] sm:$0xff] }
  0x1b   : > { %1573 = vmatpush1.bf16.msra.mxu1 %v1572_v22  ;;  %v1425_v29 = vld [vmem:[%s2783_s1 + $0x2a0] sm:$0xff]  ;;  %v1375_v32 = vld [vmem:[%s2783_s1 + $0x150] sm:$0xff]  ;;  %v1432_v35 = vld [vmem:[%s2783_s1 + $0x2d8] sm:$0xff] }
  0x1c   : > { %v1576_v36 = vpack.c.bf16 %v1375_v32, %v1373_v27  ;;  %v1378_v37 = vld [vmem:[%s2783_s1 + $0x168] sm:$0xff]  ;;  %1575 = vmatprep.subr.bf16.mxu1 %v1574_v31  ;;  %v1379_v40 = vld [vmem:[%s2783_s1 + $0x170] sm:$0xff]  ;;  %v1660_v43 = vpack.c.bf16 %v1427_v30, %v1425_v29  ;;  %v1384_v46 = vld [vmem:[%s2783_s1 + $0x198] sm:$0xff]  ;;  %v1662_v47 = vpack.c.bf16 %v1432_v35, %v1430_v34 }
  0x1d   : > { %1631 = vmatpush1.bf16.msra.mxu0 %v1630_v38  ;;  %v1380_v38 = vld [vmem:[%s2783_s1 + $0x178] sm:$0xff]  ;;  %v1431_v48 = vld [vmem:[%s2783_s1 + $0x2d0] sm:$0xff]  ;;  %v1434_v52 = vld [vmem:[%s2783_s1 + $0x2e8] sm:$0xff] }
  0x1e   : > { %1633 = vmatprep.subr.bf16.mxu0 %v1632_v39  ;;  %v1377_v39 = vld [vmem:[%s2783_s1 + $0x160] sm:$0xff]  ;;  %v1578_v41 = vpack.c.bf16 %v1380_v38, %v1378_v37  ;;  %v1436_v53 = vld [vmem:[%s2783_s1 + $0x2f8] sm:$0xff]  ;;  %v1386_v56 = vld [vmem:[%s2783_s1 + $0x1a8] sm:$0xff] }
  0x1f   : > { %1577 = vmatpush1.bf16.msra.mxu1 %v1576_v36  ;;  %v1580_v42 = vpack.c.bf16 %v1379_v40, %v1377_v39  ;;  %v1385_v60 = vld [vmem:[%s2783_s1 + $0x1a0] sm:$0xff]  ;;  %v1387_v61 = vld [vmem:[%s2783_s1 + $0x1b0] sm:$0xff]  ;;  %v1666_v62 = vpack.c.bf16 %v1436_v53, %v1434_v52  ;;  %v1440_v4 = vld [vmem:[%s2783_s1 + $0x318] sm:$0xff] }
  0x20   : > { %1579 = vmatprep.subr.bf16.mxu1 %v1578_v41  ;;  %v1433_v63 = vld [vmem:[%s2783_s1 + $0x2e0] sm:$0xff]  ;;  %v1392_v5 = vld [vmem:[%s2783_s1 + $0x1d8] sm:$0xff]  ;;  %v1391_v12 = vld [vmem:[%s2783_s1 + $0x1d0] sm:$0xff] }
  0x21   : > { %1635 = vmatpush1.bf16.msra.mxu0 %v1634_v44  ;;  %v1429_v44 = vld [vmem:[%s2783_s1 + $0x2c0] sm:$0xff]  ;;  %v1396_v16 = vld [vmem:[%s2783_s1 + $0x1f8] sm:$0xff]  ;;  %v1442_v17 = vld [vmem:[%s2783_s1 + $0x328] sm:$0xff] }
  0x22   : > { %1637 = vmatprep.subr.bf16.mxu0 %v1636_v45  ;;  %v1382_v45 = vld [vmem:[%s2783_s1 + $0x188] sm:$0xff]  ;;  %v1437_v9 = vld [vmem:[%s2783_s1 + $0x300] sm:$0xff]  ;;  %v1443_v22 = vld [vmem:[%s2783_s1 + $0x330] sm:$0xff] }
  0x23   : > { %v1582_v49 = vpack.c.bf16 %v1384_v46, %v1382_v45  ;;  %1581 = vmatpush1.bf16.msra.mxu1 %v1580_v42  ;;  %v1389_v11 = vld [vmem:[%s2783_s1 + $0x1c0] sm:$0xff]  ;;  %v1395_v25 = vld [vmem:[%s2783_s1 + $0x1f0] sm:$0xff]  ;;  %v1400_v29 = vld [vmem:[%s2783_s1 + $0x218] sm:$0xff] }
  0x24   : > { %v1441_v19 = vld [vmem:[%s2783_s1 + $0x320] sm:$0xff]  ;;  %v1592_v20 = vpack.c.bf16 %v1391_v12, %v1389_v11  ;;  %v1446_v30 = vld [vmem:[%s2783_s1 + $0x348] sm:$0xff]  ;;  %v1448_v31 = vld [vmem:[%s2783_s1 + $0x358] sm:$0xf] }
  0x25   : > { %1639 = vmatpush1.bf16.msra.mxu0 %v1638_v50  ;;  %v1381_v50 = vld [vmem:[%s2783_s1 + $0x180] sm:$0xff]  ;;  %1583 = vmatprep.subr.bf16.mxu1 %v1582_v49  ;;  %v2257_v32 = vld [vmem:[%s1974_s7 + $0x10] sm:$0xf]  ;;  %v1676_v37 = vpack.c.bf16 %v1443_v22, %v1441_v19  ;;  %v1454_v38 = vld [vmem:[%s2783_s1 + $0x368] sm:$0xff]  ;;  %v1678_v45 = vpack.c.bf16 %v1448_v31, %v1446_v30 }
  0x26   : > { %1642 = vmatprep.subr.msk.bf16.mxu0 %vm2040_vm3, %v1640_v51  ;;  %v1383_v51 = vld [vmem:[%s2783_s1 + $0x190] sm:$0xff]  ;;  %v1393_v24 = vld [vmem:[%s2783_s1 + $0x1e0] sm:$0xff]  ;;  %v1456_v39 = vld [vmem:[%s2783_s1 + $0x378] sm:$0xff]  ;;  %v542_v46 = vrot.slane %v2257_v32, 2 }
  0x27   : > { %v1584_v55 = vpack.c.bf16 %v1383_v51, %v1381_v50  ;;  %v2242_v27 = vld [vmem:[%s1974_s7] sm:$0xfc]  ;;  %v1447_v34 = vld [vmem:[%s2783_s1 + $0x350] sm:$0xf]  ;;  %v1596_v35 = vpack.c.bf16 %v1395_v25, %v1393_v24  ;;  %v786_v53 = vld [vmem:[%s1974_s7 + $0x8] sm:$0xf0] }
  0x28   : > { %v1397_v36 = vld [vmem:[%s2783_s1 + $0x200] sm:$0xff]  ;;  %v541_v40 = vrot.slane %v2242_v27, 2  ;;  %v1399_v42 = vld [vmem:[%s2783_s1 + $0x210] sm:$0xff]  ;;  %v1460_v11 = vld [vmem:[%s2783_s1 + $0x398] sm:$0xff] }
  0x29   : > { %1645 = vmatpush1.bf16.msk.msra.mxu0 %vm2040_vm3, %v1643_v57  ;;  %v1388_v57 = vld [vmem:[%s2783_s1 + $0x1b8] sm:$0xff]  ;;  %1585 = vmatpush1.bf16.msra.mxu1 %v1584_v55  ;;  %v1401_v51 = vld [vmem:[%s2783_s1 + $0x220] sm:$0xff]  ;;  %v1403_v52 = vld [vmem:[%s2783_s1 + $0x230] sm:$0xf] }
  0x2a   : > { %1647 = vmatprep.subr.bf16.mxu0 %v1646_v58  ;;  %v1664_v58 = vpack.c.bf16 %v1431_v48, %v1429_v44  ;;  %v1586_v59 = vpack.c.bf16 %v1388_v57, %v1386_v56  ;;  %v2280_v44 = vld [vmem:[%s1974_s7 + $0x18] sm:$0x7]  ;;  %v1600_v56 = vpack.c.bf16 %v1399_v42, %v1397_v36  ;;  %v641_v12 = vld [vmem:[%s1974_s7 + $0x8] sm:$0xf8]  ;;  %v1459_v22 = vld [vmem:[%s2783_s1 + $0x390] sm:$0xff] }
  0x2b   : > { %v1404_v48 = vld [vmem:[%s2783_s1 + $0x238] sm:$0xf]  ;;  %v313_v50 = vrot.slane %v2280_v44, 1  ;;  %v1462_v25 = vld [vmem:[%s2783_s1 + $0x3a8] sm:$0xff]  ;;  %v1461_v30 = vld [vmem:[%s2783_s1 + $0x3a0] sm:$0xff] }
  0x2c   : > { %483 = vmatmul.mubr.f32.vlgmr.msra.gmra.mrb[0].mxu0 %v223_v1  ;;  %v1435_v1 = vld [vmem:[%s2783_s1 + $0x2f0] sm:$0xff]  ;;  %1587 = vmatprep.subr.bf16.mxu1 %v1586_v59  ;;  %v2298_v55 = vld [vmem:[%s1974_s7 + $0x18] sm:$0x3f]  ;;  %v1466_v0 = vld [vmem:[%s2783_s1 + $0x3c8] sm:$0xff] }
  0x2d   : > { %1649 = vmatpush1.bf16.msra.mxu0 %v1648_v2  ;;  %1412 = vmatprep.mubr.msk.f32.mxu0 %vm317_vm0, %v226_v6  ;;  %v1390_v2 = vld [vmem:[%s2783_s1 + $0x1c8] sm:$0xff]  ;;  %v1588_v6 = vpack.c.bf16 %v1387_v61, %v1385_v60  ;;  %v1668_v7 = vpack.c.bf16 %v1435_v1, %v1433_v63  ;;  %v834_v59 = vrot.slane %v2298_v55, 4  ;;  %v785_v60 = vld [vmem:[%s1974_s7] sm:$0xf0]  ;;  %v2306_v61 = vld [vmem:[%s1974_s7 + $0x10] sm:$0x3f] }
  0x2e   : > { %1651 = vmatprep.subr.bf16.mxu0 %v1650_v3  ;;  %v1438_v3 = vld [vmem:[%s2783_s1 + $0x308] sm:$0xff]  ;;  %v1590_v10 = vpack.c.bf16 %v1392_v5, %v1390_v2  ;;  %v263_v1 = vld [vmem:[%s1974_s7] sm:$0xfe]  ;;  %v265_v2 = vld [vmem:[%s1974_s7 + $0x10] sm:$0x7]  ;;  %v1684_v5 = vpack.c.bf16 %v1456_v39, %v1454_v38 }
  0x2f   : > { %v1670_v13 = vpack.c.bf16 %v1440_v4, %v1438_v3  ;;  %1589 = vmatpush1.bf16.msra.mxu1 %v1588_v6  ;;  %v830_v3 = vrot.slane %v785_v60, 4  ;;  %v831_v4 = vrot.slane %v2306_v61, 4  ;;  %v1453_v6 = vld [vmem:[%s2783_s1 + $0x360] sm:$0xff]  ;;  %v1463_v31 = vld [vmem:[%s2783_s1 + $0x3b0] sm:$0xff]  ;;  %v1470_v32 = vld [vmem:[%s2783_s1 + $0x3e8] sm:$0xff] }
  0x30   : > { %489 = vmatmul.mubr.f32.gmra.mrb[2].mxu0 %v225_v15  ;;  %v1394_v15 = vld [vmem:[%s2783_s1 + $0x1e8] sm:$0xff]  ;;  %1591 = vmatprep.subr.bf16.mxu1 %v1590_v10  ;;  %v1465_v36 = vld [vmem:[%s2783_s1 + $0x3c0] sm:$0xff]  ;;  %v1472_v38 = vld [vmem:[%s2783_s1 + $0x3f8] sm:$0xff] }
  0x31   : > { %1653 = vmatpush1.bf16.msra.mxu0 %v1652_v14  ;;  %1451 = vmatprep.mubr.msk.f32.mxu0 %vm317_vm0, %v546_v21  ;;  %v1439_v14 = vld [vmem:[%s2783_s1 + $0x310] sm:$0xff]  ;;  %v1594_v23 = vpack.c.bf16 %v1396_v16, %v1394_v15  ;;  %v1605_v15 = vpack.c.bf16 %v1403_v52, %v1401_v51  ;;  %v309_v16 = vrot.slane %v263_v1, 1  ;;  %v1476_v44 = vld [vmem:[%s2783_s1 + $0x418] sm:$0xff]  ;;  %vm1761_vm8 = vmpackc.low %vm954_vm7, %vm1879_vm2 }
  0x32   : > { %1655 = vmatprep.subr.bf16.mxu0 %v1654_v18  ;;  %v1444_v18 = vld [vmem:[%s2783_s1 + $0x338] sm:$0xff]  ;;  %v1672_v21 = vpack.c.bf16 %v1439_v14, %v1437_v9  ;;  %v1458_v9 = vld [vmem:[%s2783_s1 + $0x388] sm:$0xff]  ;;  %v2338_v14 = vsel %vm322_vm1, %v830_v3, %v831_v4  ;;  %v1471_v42 = vld [vmem:[%s2783_s1 + $0x3f0] sm:$0xff] }
  0x33   : > { %v1674_v26 = vpack.c.bf16 %v1444_v18, %v1442_v17  ;;  %1593 = vmatpush1.bf16.msra.mxu1 %v1592_v20  ;;  %v310_v17 = vrot.slane %v265_v2, 1  ;;  %v543_v18 = vsel %vm540_vm4, %v541_v40, %v542_v46  ;;  %v1688_v20 = vpack.c.bf16 %v1460_v11, %v1458_v9  ;;  %v1483_v1 = vld [vmem:[%s2783_s1 + $0x450] sm:$0xff]  ;;  %v1486_v2 = vld [vmem:[%s2783_s1 + $0x468] sm:$0xff]  ;;  %v1488_v3 = vld [vmem:[%s2783_s1 + $0x478] sm:$0xf] }
  0x34   : > { %1595 = vmatprep.subr.bf16.mxu1 %v1594_v23  ;;  %v689_v23 = vrot.slane %v641_v12, 3  ;;  %v1700_v40 = vpack.c.bf16 %v1472_v38, %v1470_v32  ;;  %v1487_v9 = vld [vmem:[%s2783_s1 + $0x470] sm:$0xf]  ;;  %v640_v11 = vld [vmem:[%s1974_s7] sm:$0xf8] }
  0x35   : > { %1657 = vmatpush1.bf16.msra.mxu0 %v1656_v28  ;;  %v1398_v28 = vld [vmem:[%s2783_s1 + $0x208] sm:$0xff]  ;;  %v311_v27 = vsel %vm308_vm5, %v309_v16, %v310_v17  ;;  %v642_v12 = vld [vmem:[%s1974_s7 + $0x10] sm:$0x1f]  ;;  %v1496_v16 = vld [vmem:[%s2783_s1 + $0x498] sm:$0xff] }
  0x36   : > { %1659 = vmatprep.subr.bf16.mxu0 %v1658_v33  ;;  %v1445_v33 = vld [vmem:[%s2783_s1 + $0x340] sm:$0xff]  ;;  %v1598_v41 = vpack.c.bf16 %v1400_v29, %v1398_v28  ;;  %v1507_v38 = vld [vmem:[%s2783_s1 + $0x4f0] sm:$0xff] }
  0x37   : > { %1597 = vmatpush1.bf16.msra.mxu1 %v1596_v35  ;;  %v1505_v32 = vld [vmem:[%s2783_s1 + $0x4e0] sm:$0xff] }
  0x38   : > { %1599 = vmatprep.subr.bf16.mxu1 %v1598_v41  ;;  %v1469_v41 = vld [vmem:[%s2783_s1 + $0x3e0] sm:$0xff] }
  0x39   : > { %1661 = vmatpush1.bf16.msra.mxu0 %v1660_v43  ;;  %v264_v43 = vld [vmem:[%s1974_s7 + $0x8] sm:$0xfe] }
  0x3a   : > { %1663 = vmatprep.subr.bf16.mxu0 %v1662_v47  ;;  %v1402_v47 = vld [vmem:[%s2783_s1 + $0x228] sm:$0xff]  ;;  %v312_v49 = vrot.slane %v264_v43, 1 }
  0x3b   : > { %v1602_v63 = vpack.c.bf16 %v1404_v48, %v1402_v47  ;;  %1601 = vmatpush1.bf16.msra.mxu1 %v1600_v56  ;;  %v1474_v43 = vld [vmem:[%s2783_s1 + $0x408] sm:$0xff]  ;;  %v1473_v47 = vld [vmem:[%s2783_s1 + $0x400] sm:$0xff]  ;;  %v1475_v48 = vld [vmem:[%s2783_s1 + $0x410] sm:$0xff] }
  0x3c   : > { %v314_v57 = vsel %vm308_vm5, %v312_v49, %v313_v50  ;;  %v1478_v49 = vld [vmem:[%s2783_s1 + $0x428] sm:$0xff]  ;;  %v1706_v51 = vpack.c.bf16 %v1475_v48, %v1473_v47  ;;  %v1479_v56 = vld [vmem:[%s2783_s1 + $0x430] sm:$0xff]  ;;  %v1513_v48 = vld [vmem:[%s2783_s1 + $0x520] sm:$0xff] }
  0x3d   : > { %1665 = vmatpush1.bf16.msra.mxu0 %v1664_v58  ;;  %v833_v58 = vrot.slane %v786_v53, 4  ;;  %1407 = vmatprep.mubr.msk.f32.mxu1 %vm317_vm0, %v314_v57  ;;  %v1477_v53 = vld [vmem:[%s2783_s1 + $0x420] sm:$0xff]  ;;  %v1482_v57 = vld [vmem:[%s2783_s1 + $0x448] sm:$0xff] }
  0x3e   : > { %1667 = vmatprep.subr.bf16.mxu0 %v1666_v62  ;;  %v1681_v62 = vpack.c.bf16 %v1447_v34, %v1445_v33  ;;  %1604 = vmatprep.subr.msk.bf16.mxu1 %vm2040_vm3, %v1602_v63  ;;  %v1694_v34 = vpack.c.bf16 %v1463_v31, %v1461_v30  ;;  %v1710_v60 = vpack.c.bf16 %v1479_v56, %v1477_v53  ;;  %v1481_v63 = vld [vmem:[%s2783_s1 + $0x440] sm:$0xff]  ;;  %v1499_v30 = vld [vmem:[%s2783_s1 + $0x4b0] sm:$0xff]  ;;  %v1502_v31 = vld [vmem:[%s2783_s1 + $0x4c8] sm:$0xff] }
  0x3f   : > { %v2326_v10 = vsel %vm322_vm1, %v833_v58, %v834_v59  ;;  %1607 = vmatpush1.bf16.msk.msra.mxu1 %vm2040_vm3, %v1605_v15  ;;  %v1484_v58 = vld [vmem:[%s2783_s1 + $0x458] sm:$0xff]  ;;  %v1494_v15 = vld [vmem:[%s2783_s1 + $0x488] sm:$0xff]  ;;  %v1517_v56 = vld [vmem:[%s2783_s1 + $0x540] sm:$0xff] }
  0x41   : > { %1669 = vmatpush1.bf16.msra.mxu0 %v1668_v7  ;;  %v1455_v7 = vld [vmem:[%s2783_s1 + $0x370] sm:$0xff] }
  0x42   : > { %1671 = vmatprep.subr.bf16.mxu0 %v1670_v13  ;;  %v2333_v13 = vld [vmem:[%s1974_s7 + $0x18] sm:$0x1f]  ;;  %v1686_v19 = vpack.c.bf16 %v1455_v7, %v1453_v6  ;;  %394 = vmatmul.mubr.f32.vlgmr.msra.gmra.mrb[0].mxu1 %v311_v27  ;;  %v1485_v6 = vld [vmem:[%s2783_s1 + $0x460] sm:$0xff]  ;;  %v1716_v7 = vpack.c.bf16 %v1488_v3, %v1486_v2  ;;  %v1523_v2 = vld [vmem:[%s2783_s1 + $0x570] sm:$0xff] }
  0x43   : > { %v690_v24 = vrot.slane %v2333_v13, 3  ;;  %1408 = vmatprep.mubr.msk.f32.mxu1 %vm317_vm0, %v313_v50  ;;  %v1480_v50 = vld [vmem:[%s2783_s1 + $0x438] sm:$0xff]  ;;  %v1526_v3 = vld [vmem:[%s2783_s1 + $0x588] sm:$0xff] }
  0x44   : > { %v1708_v52 = vpack.c.bf16 %v1480_v50, %v1478_v49  ;;  %v1508_v13 = vld [vmem:[%s2783_s1 + $0x4f8] sm:$0xff]  ;;  %v1515_v49 = vld [vmem:[%s2783_s1 + $0x530] sm:$0xff]  ;;  %v1518_v50 = vld [vmem:[%s2783_s1 + $0x548] sm:$0xff] }
  0x45   : > { %1673 = vmatpush1.bf16.msra.mxu0 %v1672_v21  ;;  %v1457_v21 = vld [vmem:[%s2783_s1 + $0x380] sm:$0xff]  ;;  %v691_v33 = vsel %vm685_vm6, %v689_v23, %v690_v24  ;;  %v1498_v23 = vld [vmem:[%s2783_s1 + $0x4a8] sm:$0xff] }
  0x46   : > { %1675 = vmatprep.subr.bf16.mxu0 %v1674_v26  ;;  %v1464_v26 = vld [vmem:[%s2783_s1 + $0x3b8] sm:$0xff]  ;;  %v1690_v28 = vpack.c.bf16 %v1459_v22, %v1457_v21  ;;  %400 = vmatmul.mubr.f32.gmra.mrb[2].mxu1 %v310_v17  ;;  %v1719_v17 = vpack.c.bf16 %v1487_v9, %v1485_v6  ;;  %v1493_v21 = vld [vmem:[%s2783_s1 + $0x480] sm:$0xff]  ;;  %v1495_v22 = vld [vmem:[%s2783_s1 + $0x490] sm:$0xff] }
  0x47   : > { %v1692_v29 = vpack.c.bf16 %v1464_v26, %v1462_v25  ;;  %v1500_v25 = vld [vmem:[%s2783_s1 + $0x4b8] sm:$0xff]  ;;  %v1724_v27 = vpack.c.bf16 %v1495_v22, %v1493_v21  ;;  %v1525_v9 = vld [vmem:[%s2783_s1 + $0x580] sm:$0xff] }
  0x49   : > { %1677 = vmatpush1.bf16.msra.mxu0 %v1676_v37  ;;  %v1467_v37 = vld [vmem:[%s2783_s1 + $0x3d0] sm:$0xff] }
  0x4a   : > { %1680 = vmatprep.subr.msk.bf16.mxu0 %vm2040_vm3, %v1678_v45  ;;  %v1698_v39 = vpack.c.bf16 %v1467_v37, %v1465_v36  ;;  %v1702_v45 = vpack.c.bf16 %v1471_v42, %v1469_v41  ;;  %v1506_v36 = vld [vmem:[%s2783_s1 + $0x4e8] sm:$0xff]  ;;  %v1509_v42 = vld [vmem:[%s2783_s1 + $0x500] sm:$0xff] }
  0x4b   : > { %v1734_v37 = vpack.c.bf16 %v1508_v13, %v1506_v36 }
  0x4d   : > { %1683 = vmatpush1.bf16.msk.msra.mxu0 %vm2040_vm3, %v1681_v62  ;;  %v1712_v62 = vpack.c.bf16 %v1484_v58, %v1482_v57  ;;  %v1519_v57 = vld [vmem:[%s2783_s1 + $0x550] sm:$0xff]  ;;  %v1522_v58 = vld [vmem:[%s2783_s1 + $0x568] sm:$0xff] }
  0x4e   : > { %1685 = vmatprep.subr.bf16.mxu0 %v1684_v5  ;;  %v1714_v5 = vpack.c.bf16 %v1483_v1, %v1481_v63  ;;  %v1521_v1 = vld [vmem:[%s2783_s1 + $0x560] sm:$0xff] }
  0x4f   : > { %v1752_v6 = vpack.c.bf16 %v1523_v2, %v1521_v1  ;;  %v1125_v1 = vld [vmem:[%s2786_s4 + $0x78] sm:$0xff] }
  0x50   : > { %624 = vmatmul.mubr.f32.vlgmr.msra.gmra.mrb[0].mxu0 %v543_v18  ;;  %v686_v18 = vrot.slane %v640_v11, 3  ;;  %v1527_v11 = vld [vmem:[%s2783_s1 + $0x590] sm:$0xf] }
  0x51   : > { %1687 = vmatpush1.bf16.msra.mxu0 %v1686_v19  ;;  %1452 = vmatprep.mubr.msk.f32.mxu0 %vm317_vm0, %v545_v8  ;;  %v1468_v8 = vld [vmem:[%s2783_s1 + $0x3d8] sm:$0xff]  ;;  %v687_v19 = vrot.slane %v642_v12, 3  ;;  %v1757_v12 = vpack.c.bf16 %v1527_v11, %v1525_v9 }
  0x52   : > { %1689 = vmatprep.subr.bf16.mxu0 %v1688_v20  ;;  %v1696_v35 = vpack.c.bf16 %v1468_v8, %v1466_v0  ;;  %v1722_v20 = vpack.c.bf16 %v1496_v16, %v1494_v15  ;;  %v1880_v15 = vmov 0.0   ;;  %v1129_v9 = vld [vmem:[%s2786_s4 + $0x98] sm:$0xff] }
  0x53   : > { %v688_v26 = vsel %vm685_vm6, %v686_v18, %v687_v19  ;;  %1025 = vmatprep.mubr.f32.mxu1 %v1880_v15 }
  0x54   : > { %630 = vmatmul.mubr.f32.gmra.mrb[2].mxu0 %v542_v46  ;;  %v1704_v46 = vpack.c.bf16 %v1476_v44, %v1474_v43  ;;  %v1511_v43 = vld [vmem:[%s2783_s1 + $0x510] sm:$0xff]  ;;  %v1514_v44 = vld [vmem:[%s2783_s1 + $0x528] sm:$0xff] }
  0x55   : > { %1691 = vmatpush1.bf16.msra.mxu0 %v1690_v28  ;;  %1491 = vmatprep.mubr.msk.f32.mxu0 %vm317_vm0, %v691_v33  ;;  %v1726_v28 = vpack.c.bf16 %v1500_v25, %v1498_v23  ;;  %v1504_v33 = vld [vmem:[%s2783_s1 + $0x4d8] sm:$0xff] }
  0x56   : > { %1693 = vmatprep.subr.bf16.mxu0 %v1692_v29  ;;  %v1497_v29 = vld [vmem:[%s2783_s1 + $0x4a0] sm:$0xff]  ;;  %v1730_v8 = vpack.c.bf16 %v1504_v33, %v1502_v31 }
  0x57   : > { %v1728_v0 = vpack.c.bf16 %v1499_v30, %v1497_v29 }
  0x59   : > { %1695 = vmatpush1.bf16.msra.mxu0 %v1694_v34  ;;  %v1501_v34 = vld [vmem:[%s2783_s1 + $0x4c0] sm:$0xff] }
  0x5a   : > { %1697 = vmatprep.subr.bf16.mxu0 %v1696_v35  ;;  %v1503_v35 = vld [vmem:[%s2783_s1 + $0x4d0] sm:$0xff] }
  0x5d   : > { %1699 = vmatpush1.bf16.msra.mxu0 %v1698_v39  ;;  %v1510_v39 = vld [vmem:[%s2783_s1 + $0x508] sm:$0xff] }
  0x5e   : > { %1701 = vmatprep.subr.bf16.mxu0 %v1700_v40  ;;  %v1512_v40 = vld [vmem:[%s2783_s1 + $0x518] sm:$0xff] }
  0x5f   : > { %v1738_v41 = vpack.c.bf16 %v1512_v40, %v1510_v39  ;;  %v1536_v39 = vld [vmem:[%s2785_s3 + $0x8] sm:$0x1f] }
  0x61   : > { %1703 = vmatpush1.bf16.msra.mxu0 %v1702_v45  ;;  %v1516_v45 = vld [vmem:[%s2783_s1 + $0x538] sm:$0xff] }
  0x62   : > { %1705 = vmatprep.subr.bf16.mxu0 %v1704_v46  ;;  %v1740_v46 = vpack.c.bf16 %v1511_v43, %v1509_v42  ;;  %v1742_v47 = vpack.c.bf16 %v1516_v45, %v1514_v44  ;;  %v1113_v42 = vld [vmem:[%s2786_s4 + $0x18] sm:$0xff]  ;;  %v1114_v44 = vld [vmem:[%s2786_s4 + $0x20] sm:$0xff]  ;;  %v1115_v45 = vld [vmem:[%s2786_s4 + $0x28] sm:$0xff] }
  0x65   : > { %1707 = vmatpush1.bf16.msra.mxu0 %v1706_v51  ;;  %v1520_v51 = vld [vmem:[%s2783_s1 + $0x558] sm:$0xff] }
  0x66   : > { %1709 = vmatprep.subr.bf16.mxu0 %v1708_v52  ;;  %v1744_v52 = vpack.c.bf16 %v1515_v49, %v1513_v48  ;;  %v1746_v53 = vpack.c.bf16 %v1520_v51, %v1518_v50  ;;  %v1117_v48 = vld [vmem:[%s2786_s4 + $0x38] sm:$0xff]  ;;  %v1118_v50 = vld [vmem:[%s2786_s4 + $0x40] sm:$0xff]  ;;  %v1119_v51 = vld [vmem:[%s2786_s4 + $0x48] sm:$0xff] }
  0x69   : > { %1711 = vmatpush1.bf16.msra.mxu0 %v1710_v60  ;;  %v1524_v60 = vld [vmem:[%s2783_s1 + $0x578] sm:$0xff] }
  0x6a   : > { %1713 = vmatprep.subr.bf16.mxu0 %v1712_v62  ;;  %v1748_v62 = vpack.c.bf16 %v1519_v57, %v1517_v56  ;;  %v1750_v63 = vpack.c.bf16 %v1524_v60, %v1522_v58  ;;  %v1121_v56 = vld [vmem:[%s2786_s4 + $0x58] sm:$0xff]  ;;  %v1122_v58 = vld [vmem:[%s2786_s4 + $0x60] sm:$0xff]  ;;  %v1123_v60 = vld [vmem:[%s2786_s4 + $0x68] sm:$0xff] }
  0x6d   : > { %1715 = vmatpush1.bf16.msra.mxu0 %v1714_v5  ;;  %v1528_v5 = vld [vmem:[%s2783_s1 + $0x598] sm:$0xf] }
  0x6e   : > { %1718 = vmatprep.subr.msk.bf16.mxu0 %vm2040_vm3, %v1716_v7  ;;  %v1754_v7 = vpack.c.bf16 %v1528_v5, %v1526_v3  ;;  %v1126_v3 = vld [vmem:[%s2786_s4 + $0x80] sm:$0xff]  ;;  %v1127_v5 = vld [vmem:[%s2786_s4 + $0x88] sm:$0xff] }
  0x71   : > { %1721 = vmatpush1.bf16.msk.msra.mxu0 %vm2040_vm3, %v1719_v17 }
  0x72   : > { %1723 = vmatprep.subr.bf16.mxu0 %v1722_v20  ;;  %v931_v20 = vlaneseq }
  0x74   : > { %769 = vmatmul.mubr.f32.vlgmr.msra.gmra.mrb[0].mxu0 %v688_v26  ;;  %v932_v21 = vshrl.u32 %v931_v20, 7 }
  0x75   : > { %1725 = vmatpush1.bf16.msra.mxu0 %v1724_v27  ;;  %1492 = vmatprep.mubr.msk.f32.mxu0 %vm317_vm0, %v690_v24  ;;  %v1732_v24 = vpack.c.bf16 %v1503_v35, %v1501_v34 }
  0x76   : > { %1727 = vmatprep.subr.bf16.mxu0 %v1726_v28  ;;  %v933_v54 = vsub.s32 0, %v932_v21  ;;  %v937_v55 = vsub.s32 1, %v932_v21  ;;  %v1134_v21 = vld [vmem:[%s2786_s4 + $0xc0] sm:$0xff] }
  0x78   : > { %775 = vmatmul.mubr.f32.gmra.mrb[2].mxu0 %v687_v19 }
  0x79   : > { %1729 = vmatpush1.bf16.msra.mxu0 %v1728_v0  ;;  %1531 = vmatprep.mubr.msk.f32.mxu0 %vm317_vm0, %v2326_v10  ;;  %v1736_v10 = vpack.c.bf16 %v1507_v38, %v1505_v32  ;;  %v1110_v32 = vld [vmem:[%s2786_s4] sm:$0xff]  ;;  %v1111_v38 = vld [vmem:[%s2786_s4 + $0x8] sm:$0xff] }
  0x7a   : > { %1731 = vmatprep.subr.bf16.mxu0 %v1730_v8  ;;  %v1773_v40 = vpack.c.bf16 %v1111_v38, %v1110_v32  ;;  %v1553_v32 = vld [vmem:[%s2786_s4 + $0x128] sm:$0xff]  ;;  %v1554_v38 = vld [vmem:[%s2786_s4 + $0x130] sm:$0xff] }
  0x7d   : > { %1733 = vmatpush1.bf16.msra.mxu0 %v1732_v24 }
  0x7e   : > { %1735 = vmatprep.subr.bf16.mxu0 %v1734_v37  ;;  %v949_v37 = vld [vmem:[%s2785_s3] sm:$0x1f] }
  0x81   : > { %1737 = vmatpush1.bf16.msra.mxu0 %v1736_v10  ;;  %v1881_v10 = vmov 0.0|0.0  }
  0x82   : > { %1739 = vmatprep.subr.bf16.mxu0 %v1738_v41  ;;  %v1112_v41 = vld [vmem:[%s2786_s4 + $0x10] sm:$0xff] }
  0x83   : > { %v1776_v43 = vpack.c.bf16 %v1113_v42, %v1112_v41  ;;  %v1556_v41 = vld [vmem:[%s2786_s4 + $0x140] sm:$0xff] }
  0x85   : > { %1741 = vmatpush1.bf16.msra.mxu0 %v1740_v46  ;;  %v1779_v46 = vpack.c.bf16 %v1115_v45, %v1114_v44  ;;  %v1558_v44 = vld [vmem:[%s2786_s4 + $0x150] sm:$0xff] }
  0x86   : > { %1743 = vmatprep.subr.bf16.mxu0 %v1742_v47  ;;  %v1116_v47 = vld [vmem:[%s2786_s4 + $0x30] sm:$0xff] }
  0x87   : > { %v1782_v49 = vpack.c.bf16 %v1117_v48, %v1116_v47  ;;  %v1560_v47 = vld [vmem:[%s2786_s4 + $0x160] sm:$0xff] }
  0x89   : > { %1745 = vmatpush1.bf16.msra.mxu0 %v1744_v52  ;;  %v1785_v52 = vpack.c.bf16 %v1119_v51, %v1118_v50  ;;  %v1562_v50 = vld [vmem:[%s2786_s4 + $0x170] sm:$0xff] }
  0x8a   : > { %1747 = vmatprep.subr.bf16.mxu0 %v1746_v53  ;;  %v1120_v53 = vld [vmem:[%s2786_s4 + $0x50] sm:$0xff] }
  0x8b   : > { %v1788_v57 = vpack.c.bf16 %v1121_v56, %v1120_v53  ;;  %v1564_v53 = vld [vmem:[%s2786_s4 + $0x180] sm:$0xff] }
  0x8d   : > { %1749 = vmatpush1.bf16.msra.mxu0 %v1748_v62  ;;  %v1791_v62 = vpack.c.bf16 %v1123_v60, %v1122_v58 }
  0x8e   : > { %1751 = vmatprep.subr.bf16.mxu0 %v1750_v63  ;;  %v1124_v63 = vld [vmem:[%s2786_s4 + $0x70] sm:$0xff] }
  0x8f   : > { %v1794_v2 = vpack.c.bf16 %v1125_v1, %v1124_v63 }
  0x91   : > { %1753 = vmatpush1.bf16.msra.mxu0 %v1752_v6  ;;  %v1797_v6 = vpack.c.bf16 %v1127_v5, %v1126_v3 }
  0x92   : > { %1756 = vmatprep.subr.msk.bf16.mxu0 %vm2040_vm3, %v1754_v7  ;;  %v1128_v7 = vld [vmem:[%s2786_s4 + $0x90] sm:$0xff] }
  0x93   : > { %v1800_v11 = vpack.c.bf16 %v1129_v9, %v1128_v7 }
  0x95   : > { %1759 = vmatpush1.bf16.msk.msra.mxu0 %vm2040_vm3, %v1757_v12  ;;  %v1130_v12 = vld [vmem:[%s2786_s4 + $0xa0] sm:$0xff] }
  0x98   : > { %913 = vmatmul.mubr.f32.vlgmr.msra.gmra.mrb[0].mxu0 %v2338_v14  ;;  %v929_v14 = vld [vmem:[%s2784_s2] sm:$0x3] }
  0x99   : > { %1532 = vmatprep.mubr.msk.f32.mxu0 %vm317_vm0, %v834_v59  ;;  %v934_v23 = vrot.slane %v929_v14, %v933_v54  ;;  %v938_v25 = vrot.slane %v929_v14, %v937_v55  ;;  %v1541_v55 = vld [vmem:[%s2786_s4 + $0xc8] sm:$0xff] }
  0x9c   : > { %919 = vmatmul.mubr.f32.gmra.mrb[2].mxu0 %v831_v4 }
 0x115   : > { %v395_v16 = vpop.f32.mrb[0].mxu1 }
 0x116   : > { %v397_v17 = vpop.f32.mrb[1].mxu1 }
 0x119   : > { %v401_v18 = vpop.f32.mrb[2].mxu1 }
 0x11a   : > { %v403_v19 = vpop.f32.mrb[3].mxu1 }
 0x16b   : > { %v914_v22 = vpop.f32.mrb[0].mxu0 }
 0x16c   : > { %v1844_v59 = vadd.f32 %v914_v22, %v395_v16  ;;  %v916_v61 = vpop.f32.mrb[1].mxu0  ;;  %v1131_v16 = vld [vmem:[%s2786_s4 + $0xa8] sm:$0xff]  ;;  %v1542_v22 = vld [vmem:[%s2786_s4 + $0xd0] sm:$0xff] }
 0x16d   : > { %v1845_v4 = vadd.f32 %v916_v61, %v397_v17  ;;  %v1803_v17 = vpack.c.bf16 %v1131_v16, %v1130_v12 }
 0x16e   : > { %v941_v27 = vadd.f32 %v1844_v59, %v934_v23 }
 0x16f   : > { %v920_v26 = vpop.f32.mrb[2].mxu0  ;;  %v942_v30 = vadd.f32 %v1845_v4, %v938_v25 }
 0x170   : > { %v1846_v28 = vadd.f32 %v920_v26, %v401_v18  ;;  %v922_v29 = vpop.f32.mrb[3].mxu0  ;;  %v945_v8 = vmax.f32 %v941_v27, 0.0  ;;  %v1132_v18 = vld [vmem:[%s2786_s4 + $0xb0] sm:$0xff]  ;;  %v1543_v26 = vld [vmem:[%s2786_s4 + $0xd8] sm:$0xff]  ;;  %v1544_v27 = vld [vmem:[%s2786_s4 + $0xe0] sm:$0xff] }
 0x171   : > { %v1847_v31 = vadd.f32 %v922_v29, %v403_v19  ;;  %v946_v35 = vmax.f32 %v942_v30, 0.0  ;;  %v1133_v19 = vld [vmem:[%s2786_s4 + $0xb8] sm:$0xff]  ;;  %v1545_v29 = vld [vmem:[%s2786_s4 + $0xe8] sm:$0xff]  ;;  %v1546_v30 = vld [vmem:[%s2786_s4 + $0xf0] sm:$0xff] }
 0x172   : > { %v943_v33 = vadd.f32 %v1846_v28, %v934_v23  ;;  %v1806_v20 = vpack.c.bf16 %v1133_v19, %v1132_v18  ;;  %v1812_v28 = vpack.c.bf16 %v1544_v27, %v1543_v26 }
 0x173   : > { %v944_v0 = vadd.f32 %v1847_v31, %v938_v25  ;;  %v1809_v25 = vpack.c.bf16 %v1542_v22, %v1541_v55  ;;  %v1815_v31 = vpack.c.bf16 %v1546_v30, %v1545_v29 }
 0x174   : > { %v947_v34 = vmax.f32 %v943_v33, 0.0  ;;  %v1547_v33 = vld [vmem:[%s2786_s4 + $0xf8] sm:$0xff] }
 0x175   : > { %v948_v36 = vmax.f32 %v944_v0, 0.0  ;;  %v1548_v0 = vld [vmem:[%s2786_s4 + $0x100] sm:$0xff] }
 0x176   : > { %v1763_v13 = vpack.c.bf16 %v947_v34, %v945_v8  ;;  %v1818_v8 = vpack.c.bf16 %v1548_v0, %v1547_v33  ;;  %v1549_v34 = vld [vmem:[%s2786_s4 + $0x108] sm:$0xff] }
 0x177   : > { %v1760_v24 = vpack.c.bf16 %v948_v36, %v946_v35  ;;  %v1550_v35 = vld [vmem:[%s2786_s4 + $0x110] sm:$0xff] }
 0x178   : > { %v1821_v36 = vpack.c.bf16 %v1550_v35, %v1549_v34 }
 0x179   : > { %1762 = vmatprep.subr.msk.bf16.mxu1 %vm1761_vm8, %v1760_v24 }
 0x17a   : > { %1765 = vmatpush1.bf16.msk.msra.mxu1 %vm1761_vm8, %v1763_v13 }
 0x17b   : > { %1768 = vmatprep.subr.msk.bf16.mxu1 %vm1761_vm8, %v1760_v24  ;;  %v1552_v24 = vld [vmem:[%s2786_s4 + $0x120] sm:$0xff] }
 0x17d   : > { %1535 = vmatmul.mubr.msk.f32.vlgmr.msra.gmra.mrb[4].mxu1 %vm950_vm9, %v949_v37 }
 0x17e   : > { %1771 = vmatpush1.bf16.msk.msra.mxu1 %vm1761_vm8, %v1763_v13  ;;  %1101 = vmatprep.mubr.f32.mxu1 %v1880_v15  ;;  %v1551_v13 = vld [vmem:[%s2786_s4 + $0x118] sm:$0xff] }
 0x17f   : > { %1772 = vmatprep.subr.bf16.mxu1 %v1881_v10  ;;  %v1824_v37 = vpack.c.bf16 %v1552_v24, %v1551_v13 }
 0x181   : > { %1539 = vmatmul.mubr.msk.f32.vlgmr.msra.gmra.mrb[6].mxu1 %vm950_vm9, %v1536_v39  ;;  %v1827_v39 = vpack.c.bf16 %v1554_v38, %v1553_v32 }
 0x182   : > { %1774 = vmatpush1.bf16.msra.mxu1 %v1773_v40  ;;  %v1555_v40 = vld [vmem:[%s2786_s4 + $0x138] sm:$0xff] }
 0x183   : > { %1775 = vmatprep.subr.bf16.mxu1 %v1881_v10  ;;  %v1830_v42 = vpack.c.bf16 %v1556_v41, %v1555_v40 }
 0x186   : > { %1777 = vmatpush1.bf16.msra.mxu1 %v1776_v43  ;;  %v1557_v43 = vld [vmem:[%s2786_s4 + $0x148] sm:$0xff] }
 0x187   : > { %1778 = vmatprep.subr.bf16.mxu1 %v1881_v10  ;;  %v1833_v45 = vpack.c.bf16 %v1558_v44, %v1557_v43 }
 0x18a   : > { %1780 = vmatpush1.bf16.msra.mxu1 %v1779_v46  ;;  %v1559_v46 = vld [vmem:[%s2786_s4 + $0x158] sm:$0xff] }
 0x18b   : > { %1781 = vmatprep.subr.bf16.mxu1 %v1881_v10  ;;  %v1836_v48 = vpack.c.bf16 %v1560_v47, %v1559_v46 }
 0x18e   : > { %1783 = vmatpush1.bf16.msra.mxu1 %v1782_v49  ;;  %v1561_v49 = vld [vmem:[%s2786_s4 + $0x168] sm:$0xff] }
 0x18f   : > { %1784 = vmatprep.subr.bf16.mxu1 %v1881_v10  ;;  %v1839_v51 = vpack.c.bf16 %v1562_v50, %v1561_v49 }
 0x192   : > { %1786 = vmatpush1.bf16.msra.mxu1 %v1785_v52  ;;  %v1563_v52 = vld [vmem:[%s2786_s4 + $0x178] sm:$0xff] }
 0x193   : > { %1787 = vmatprep.subr.bf16.mxu1 %v1881_v10  ;;  %v1842_v56 = vpack.c.bf16 %v1564_v53, %v1563_v52 }
 0x196   : > { %1789 = vmatpush1.bf16.msra.mxu1 %v1788_v57  ;;  %v1565_v57 = vld [vmem:[%s2786_s4 + $0x188] sm:$0xff] }
 0x197   : > { %1790 = vmatprep.subr.bf16.mxu1 %v1881_v10 }
 0x19a   : > { %1792 = vmatpush1.bf16.msra.mxu1 %v1791_v62 }
 0x19b   : > { %1793 = vmatprep.subr.bf16.mxu1 %v1881_v10 }
 0x19e   : > { %1795 = vmatpush1.bf16.msra.mxu1 %v1794_v2 }
 0x19f   : > { %1796 = vmatprep.subr.bf16.mxu1 %v1881_v10 }
 0x1a2   : > { %1798 = vmatpush1.bf16.msra.mxu1 %v1797_v6 }
 0x1a3   : > { %1799 = vmatprep.subr.bf16.mxu1 %v1881_v10 }
 0x1a6   : > { %1801 = vmatpush1.bf16.msra.mxu1 %v1800_v11 }
 0x1a7   : > { %1802 = vmatprep.subr.bf16.mxu1 %v1881_v10 }
 0x1aa   : > { %1804 = vmatpush1.bf16.msra.mxu1 %v1803_v17 }
 0x1ab   : > { %1805 = vmatprep.subr.bf16.mxu1 %v1881_v10 }
 0x1ae   : > { %1807 = vmatpush1.bf16.msra.mxu1 %v1806_v20 }
 0x1af   : > { %1187 = vmatprep.subr.mxu1 %v1880_v15 }
 0x1b2   : > { %1188 = vmatpush1.msra.mxu1 %v1134_v21 }
 0x1b3   : > { %1808 = vmatprep.subr.bf16.mxu1 %v1881_v10 }
 0x250   : > { %v1027_v54 = vpop.f32.mrb[4].mxu1 }
 0x251   : > { %v1029_v14 = vpop.f32.mrb[5].mxu1 }
 0x254   : > { %v1103_v59 = vpop.f32.mrb[6].mxu1 }
 0x255   : > { %v2690_v23 = vmax.f32 %v1027_v54, %v1103_v59  ;;  %v1105_v61 = vpop.f32.mrb[7].mxu1 }
 0x256   : > { %v1109_v4 = vmax.f32 %v1029_v14, %v1105_v61 }
 0x258   : > { %1540 = vmatprep.mubr.msk.f32.mxu1 %vm1135_vm10, %v1109_v4 }
 0x259   : > { %1204 = vmatmul.mubr.f32.vlgmr.msra.gmra.mrb[8].mxu1 %v2690_v23 }
 0x25a   : > { %1810 = vmatpush1.bf16.msra.mxu1 %v1809_v25  ;;  %1566 = vmatprep.mubr.msk.f32.mxu1 %vm1135_vm10, %v1109_v4 }
 0x25b   : > { %1811 = vmatprep.subr.bf16.mxu1 %v1881_v10 }
 0x25e   : > { %1813 = vmatpush1.bf16.msra.mxu1 %v1812_v28 }
 0x25f   : > { %1814 = vmatprep.subr.bf16.mxu1 %v1881_v10 }
 0x262   : > { %1816 = vmatpush1.bf16.msra.mxu1 %v1815_v31 }
 0x263   : > { %1817 = vmatprep.subr.bf16.mxu1 %v1881_v10 }
 0x266   : > { %1819 = vmatpush1.bf16.msra.mxu1 %v1818_v8 }
 0x267   : > { %1820 = vmatprep.subr.bf16.mxu1 %v1881_v10 }
 0x26a   : > { %1822 = vmatpush1.bf16.msra.mxu1 %v1821_v36 }
 0x26b   : > { %1823 = vmatprep.subr.bf16.mxu1 %v1881_v10 }
 0x26e   : > { %1825 = vmatpush1.bf16.msra.mxu1 %v1824_v37 }
 0x26f   : > { %1826 = vmatprep.subr.bf16.mxu1 %v1881_v10 }
 0x272   : > { %1828 = vmatpush1.bf16.msra.mxu1 %v1827_v39 }
 0x273   : > { %1829 = vmatprep.subr.bf16.mxu1 %v1881_v10 }
 0x276   : > { %1831 = vmatpush1.bf16.msra.mxu1 %v1830_v42 }
 0x277   : > { %1832 = vmatprep.subr.bf16.mxu1 %v1881_v10 }
 0x27a   : > { %1834 = vmatpush1.bf16.msra.mxu1 %v1833_v45 }
 0x27b   : > { %1835 = vmatprep.subr.bf16.mxu1 %v1881_v10 }
 0x27e   : > { %1837 = vmatpush1.bf16.msra.mxu1 %v1836_v48 }
 0x27f   : > { %1838 = vmatprep.subr.bf16.mxu1 %v1881_v10 }
 0x282   : > { %1840 = vmatpush1.bf16.msra.mxu1 %v1839_v51 }
 0x283   : > { %1841 = vmatprep.subr.bf16.mxu1 %v1881_v10 }
 0x286   : > { %1843 = vmatpush1.bf16.msra.mxu1 %v1842_v56 }
 0x287   : > { %1283 = vmatprep.subr.mxu1 %v1880_v15 }
 0x28a   : > { %1284 = vmatpush1.msra.mxu1 %v1565_v57 }
 0x28b   : > { %1300 = vmatmul.mubr.f32.vlgmr.msra.gmra.mrb[10].mxu1 %v2690_v23 }
 0x32c   : > { %v1205_v58 = vpop.f32.mrb[8].mxu1 }
 0x32d   : > { %v1207_v60 = vpop.f32.mrb[9].mxu1 }
 0x35e   : > { %v1301_v62 = vpop.f32.mrb[10].mxu1 }
 0x35f   : > { %v1305_v10 = vmax.f32 %v1205_v58, %v1301_v62  ;;  %v1303_v63 = vpop.f32.mrb[11].mxu1 }
 0x361   : > { %1307 = vst.msk [vmem:[%s222_s21] sm:$0x1f] %vm1306_vm11, %v1305_v10 }
 0x362 PF: > { %s15_s18 = sadd.s32 1, %s1877_s18  }
 0x363   : > { %p12_p4 = scmp.ge.s32.totalorder %s15_s18, 4  }
 0x365   :  { %14 = sbr.rel (!%p12_p4) target bundleno = 1 (0x1), region = 76 }

// kernel: cnn_forward.3
= control target key start
LH: loop header
LB: loop body
LE: loop exit
PB: predicated region body
PF: predicated region fallthrough
CT: control target
= control target key end

     0   :  { %s3373_s18 = smov 0   ;;  %s4507_s0 = inlined_call_operand.vmem [shape: f32[2,32,96], index: 0, kind: input, shape index: {}]   ;;  %s4508_s1 = inlined_call_operand.vmem [shape: f32[5,96,280], index: 1, kind: input, shape index: {}]   ;;  %s4509_s2 = inlined_call_operand.vmem [shape: f32[1,280], index: 2, kind: input, shape index: {}]   ;;  %s4510_s3 = inlined_call_operand.vmem [shape: f32[2,14,28], index: 3, kind: input, shape index: {}]   ;;  %s4511_s4 = inlined_call_operand.vmem [shape: f32[2,280,140], index: 4, kind: input, shape index: {}]   ;;  %s4512_s5 = inlined_call_operand.vmem [shape: f32[2,14,140], index: 5, kind: output, shape index: {}]  }
   0x1 LB: > { %s2296_s19 = sadd.s32 4294967295, %s3339_s18   ;;  %p2300_p0 = scmp.ge.s32.totalorder %s3339_s18, 1  ;;  %s3339_s18 = sphi %s3373_s18, %s15_s18  }
   0x2   : > { %p187_p1 = scmp.lt.s32.totalorder %s3339_s18, 3 }
   0x4   : > { %p188_p2 = pnand %p2300_p0, %p187_p1 }
   0x5   : > { %v2306_v0 = vld [vmem:[%s4508_s1 + $0x128] sm:$0xff] (!%p188_p2)  ;;  %v2309_v1 = vld [vmem:[%s4508_s1 + $0x140] sm:$0xff] (!%p188_p2)  ;;  %v2307_v2 = vld [vmem:[%s4508_s1 + $0x130] sm:$0xff] (!%p188_p2)  ;;  %p215_p3 = scmp.lt.s32.totalorder (!%p188_p2), %s2296_s19, 1  ;;  %v3341_v7 = vmov (!%p188_p2), 0.0   ;;  %vm306_vm0 = vcmask (!%p188_p2), 785408  }
   0x6   : > { %191 = sbr.rel (%p188_p2) target bundleno = 821 (0x335), region = 40  ;;  %v2847_v3 = vpack.c.bf16 (!%p188_p2), %v2309_v1, %v2306_v0  ;;  %v2310_v4 = vld [vmem:[%s4508_s1 + $0x148] sm:$0xff] (!%p188_p2)  ;;  %v2305_v5 = vld [vmem:[%s4508_s1 + $0x120] sm:$0xff] (!%p188_p2)  ;;  %v2308_v6 = vld [vmem:[%s4508_s1 + $0x138] sm:$0xff] (!%p188_p2)  ;;  %383 = vmatprep.mubr.f32.mxu0 (!%p188_p2), %v3341_v7  ;;  %vm1439_vm1 = vcmask (!%p188_p2), 228352   ;;  %vm1446_vm2 = vcmask (!%p188_p2), 1043456  }
   0x7   : > { %v2871_v8 = vpack.c.bf16 (!%p188_p2), %v2310_v4, %v2307_v2  ;;  %v2849_v9 = vpack.c.bf16 (!%p188_p2), %v2308_v6, %v2305_v5  ;;  %v2312_v10 = vld [vmem:[%s4508_s1 + $0x158] sm:$0xff] (!%p188_p2)  ;;  %v2315_v11 = vld [vmem:[%s4508_s1 + $0x170] sm:$0xff] (!%p188_p2)  ;;  %v2313_v12 = vld [vmem:[%s4508_s1 + $0x160] sm:$0xff] (!%p188_p2)  ;;  %vm3342_vm3 = vmmov (!%p188_p2), 1   ;;  %vm1845_vm5 = vcmask (!%p188_p2), 195584  }
   0x8   : > { %2848 = vmatprep.subr.bf16.mxu0 (!%p188_p2), %v2847_v3  ;;  %v2851_v13 = vpack.c.bf16 (!%p188_p2), %v2315_v11, %v2312_v10  ;;  %v2316_v14 = vld [vmem:[%s4508_s1 + $0x178] sm:$0xff] (!%p188_p2)  ;;  %v2311_v15 = vld [vmem:[%s4508_s1 + $0x150] sm:$0xff] (!%p188_p2)  ;;  %v2314_v16 = vld [vmem:[%s4508_s1 + $0x168] sm:$0xff] (!%p188_p2)  ;;  %vm2236_vm6 = vcmask (!%p188_p2), 97280   ;;  %vm2239_vm7 = vcmask (!%p188_p2), 95232  }
   0x9   : > { %2872 = vmatprep.subr.bf16.mxu1 (!%p188_p2), %v2871_v8  ;;  %2850 = vmatpush1.bf16.msra.mxu0 (!%p188_p2), %v2849_v9  ;;  %v2875_v17 = vpack.c.bf16 (!%p188_p2), %v2316_v14, %v2313_v12  ;;  %v2853_v18 = vpack.c.bf16 (!%p188_p2), %v2314_v16, %v2311_v15  ;;  %v2318_v19 = vld [vmem:[%s4508_s1 + $0x188] sm:$0xff] (!%p188_p2)  ;;  %v2321_v20 = vld [vmem:[%s4508_s1 + $0x1a0] sm:$0xff] (!%p188_p2)  ;;  %v2319_v21 = vld [vmem:[%s4508_s1 + $0x190] sm:$0xff] (!%p188_p2) }
   0xa   : > { %2874 = vmatpush3.bf16.msra.mxu1 (!%p188_p2), %v2871_v8  ;;  %2852 = vmatprep.subr.bf16.mxu0 (!%p188_p2), %v2851_v13  ;;  %v2855_v22 = vpack.c.bf16 (!%p188_p2), %v2321_v20, %v2318_v19  ;;  %v2322_v23 = vld [vmem:[%s4508_s1 + $0x1a8] sm:$0xff] (!%p188_p2)  ;;  %v2317_v24 = vld [vmem:[%s4508_s1 + $0x180] sm:$0xff] (!%p188_p2)  ;;  %v2320_v25 = vld [vmem:[%s4508_s1 + $0x198] sm:$0xff] (!%p188_p2) }
   0xb   : > { %2876 = vmatprep.subr.bf16.mxu1 (!%p188_p2), %v2875_v17  ;;  %v2879_v26 = vpack.c.bf16 (!%p188_p2), %v2322_v23, %v2319_v21  ;;  %v2324_v27 = vld [vmem:[%s4508_s1 + $0x1b8] sm:$0xff] (!%p188_p2)  ;;  %v2327_v28 = vld [vmem:[%s4508_s1 + $0x1d0] sm:$0xff] (!%p188_p2)  ;;  %v2325_v29 = vld [vmem:[%s4508_s1 + $0x1c0] sm:$0xff] (!%p188_p2)  ;;  %v2857_v31 = vpack.c.bf16 (!%p188_p2), %v2320_v25, %v2317_v24 }
   0xc   : > { %v2328_v30 = vld [vmem:[%s4508_s1 + $0x1d8] sm:$0xff] (!%p188_p2)  ;;  %v2859_v32 = vpack.c.bf16 (!%p188_p2), %v2327_v28, %v2324_v27  ;;  %v2323_v33 = vld [vmem:[%s4508_s1 + $0x1b0] sm:$0xff] (!%p188_p2)  ;;  %v2326_v34 = vld [vmem:[%s4508_s1 + $0x1c8] sm:$0xff] (!%p188_p2) }
   0xd   : > { %s4516_s19 = smov (!%p215_p3, %s2296_s19), 1  ;;  %2854 = vmatpush1.bf16.msra.mxu0 %v2853_v18  ;;  %v2883_v35 = vpack.c.bf16 %v2328_v30, %v2325_v29  ;;  %v2330_v36 = vld [vmem:[%s4508_s1 + $0x1e8] sm:$0xff]  ;;  %v2333_v37 = vld [vmem:[%s4508_s1 + $0x200] sm:$0xff]  ;;  %v2331_v38 = vld [vmem:[%s4508_s1 + $0x1f0] sm:$0xff]  ;;  %v2861_v40 = vpack.c.bf16 %v2326_v34, %v2323_v33 }
   0xe   : > { %s2581_s12 = sshll.u32 %s4516_s19, 5  ;;  %2878 = vmatpush3.bf16.msra.mxu1 %v2875_v17  ;;  %2856 = vmatprep.subr.bf16.mxu0 %v2855_v22  ;;  %v2334_v39 = vld [vmem:[%s4508_s1 + $0x208] sm:$0xff]  ;;  %v2863_v42 = vpack.c.bf16 %v2333_v37, %v2330_v36  ;;  %v2329_v43 = vld [vmem:[%s4508_s1 + $0x1e0] sm:$0xff]  ;;  %v2332_v44 = vld [vmem:[%s4508_s1 + $0x1f8] sm:$0xff] }
   0xf   : > { %s3462_s25 = scalar_lea.vmem %s4507_s0, %s2581_s12  ;;  %2880 = vmatprep.subr.bf16.mxu1 %v2879_v26  ;;  %v2887_v45 = vpack.c.bf16 %v2334_v39, %v2331_v38  ;;  %v2336_v46 = vld [vmem:[%s4508_s1 + $0x218] sm:$0xff]  ;;  %v2339_v47 = vld [vmem:[%s4508_s1 + $0x230] sm:$0xff]  ;;  %v2337_v48 = vld [vmem:[%s4508_s1 + $0x220] sm:$0xff]  ;;  %v2865_v50 = vpack.c.bf16 %v2332_v44, %v2329_v43  ;;  %s224_s28 = scalar_lea.vmem %s4512_s5, %s2581_s12 }
  0x10   : > { %v265_v41 = vld [vmem:[%s3462_s25 + $0x1] sm:$0xff]  ;;  %v2340_v49 = vld [vmem:[%s4508_s1 + $0x238] sm:$0xff]  ;;  %v2867_v51 = vpack.c.bf16 %v2339_v47, %v2336_v46  ;;  %v2335_v52 = vld [vmem:[%s4508_s1 + $0x210] sm:$0xff] }
  0x11   : > { %2858 = vmatpush1.bf16.msra.mxu0 %v2857_v31  ;;  %2699 = vmatprep.mubr.msk.f32.mxu1 %vm306_vm0, %v265_v41  ;;  %v2338_v53 = vld [vmem:[%s4508_s1 + $0x228] sm:$0xff]  ;;  %v2891_v54 = vpack.c.bf16 %v2340_v49, %v2337_v48  ;;  %v233_v56 = vld [vmem:[%s4508_s1 + $0x20] sm:$0xff]  ;;  %v231_v57 = vld [vmem:[%s4508_s1 + $0x10] sm:$0xff] }
  0x12   : > { %2882 = vmatpush3.bf16.msra.mxu1 %v2879_v26  ;;  %2860 = vmatprep.subr.bf16.mxu0 %v2859_v32  ;;  %v230_v55 = vld [vmem:[%s4508_s1 + $0x8] sm:$0xff]  ;;  %v2869_v59 = vpack.c.bf16 %v2338_v53, %v2335_v52  ;;  %v229_v61 = vld [vmem:[%s4508_s1] sm:$0xff]  ;;  %v232_v62 = vld [vmem:[%s4508_s1 + $0x18] sm:$0xff] }
  0x13   : > { %2884 = vmatprep.subr.bf16.mxu1 %v2883_v35  ;;  %v234_v58 = vld [vmem:[%s4508_s1 + $0x28] sm:$0xff]  ;;  %v2895_v60 = vpack.c.bf16 %v233_v56, %v230_v55  ;;  %v236_v0 = vld [vmem:[%s4508_s1 + $0x38] sm:$0xff]  ;;  %v239_v1 = vld [vmem:[%s4508_s1 + $0x50] sm:$0xff]  ;;  %v2897_v4 = vpack.c.bf16 %v232_v62, %v229_v61 }
  0x14   : > { %v2919_v63 = vpack.c.bf16 %v234_v58, %v231_v57  ;;  %v237_v2 = vld [vmem:[%s4508_s1 + $0x40] sm:$0xff]  ;;  %v240_v3 = vld [vmem:[%s4508_s1 + $0x58] sm:$0xff]  ;;  %v266_v5 = vld [vmem:[%s3462_s25 + $0x9] sm:$0xff]  ;;  %v2899_v6 = vpack.c.bf16 %v239_v1, %v236_v0 }
  0x15   : > { %2862 = vmatpush1.bf16.msra.mxu0 %v2861_v40  ;;  %v235_v8 = vld [vmem:[%s4508_s1 + $0x30] sm:$0xff]  ;;  %v238_v9 = vld [vmem:[%s4508_s1 + $0x48] sm:$0xff]  ;;  %v2923_v10 = vpack.c.bf16 %v240_v3, %v237_v2  ;;  %v245_v12 = vld [vmem:[%s4508_s1 + $0x80] sm:$0xff] }
  0x16   : > { %2886 = vmatpush3.bf16.msra.mxu1 %v2883_v35  ;;  %2864 = vmatprep.subr.bf16.mxu0 %v2863_v42  ;;  %v242_v11 = vld [vmem:[%s4508_s1 + $0x68] sm:$0xff]  ;;  %v243_v13 = vld [vmem:[%s4508_s1 + $0x70] sm:$0xff]  ;;  %v2901_v15 = vpack.c.bf16 %v238_v9, %v235_v8  ;;  %v241_v17 = vld [vmem:[%s4508_s1 + $0x60] sm:$0xff] }
  0x17   : > { %2888 = vmatprep.subr.bf16.mxu1 %v2887_v45  ;;  %v246_v14 = vld [vmem:[%s4508_s1 + $0x88] sm:$0xff]  ;;  %v2903_v16 = vpack.c.bf16 %v245_v12, %v242_v11  ;;  %v244_v18 = vld [vmem:[%s4508_s1 + $0x78] sm:$0xff]  ;;  %v251_v21 = vld [vmem:[%s4508_s1 + $0xb0] sm:$0xff] }
  0x18   : > { %v2927_v19 = vpack.c.bf16 %v246_v14, %v243_v13  ;;  %v248_v20 = vld [vmem:[%s4508_s1 + $0x98] sm:$0xff]  ;;  %v249_v23 = vld [vmem:[%s4508_s1 + $0xa0] sm:$0xff]  ;;  %v2905_v26 = vpack.c.bf16 %v244_v18, %v241_v17  ;;  %v247_v29 = vld [vmem:[%s4508_s1 + $0x90] sm:$0xff] }
  0x19   : > { %2866 = vmatpush1.bf16.msra.mxu0 %v2865_v50  ;;  %v267_v22 = vld [vmem:[%s3462_s25 + $0x11] sm:$0xff]  ;;  %v268_v25 = vld [vmem:[%s3462_s25 + $0x19] sm:$0xf]  ;;  %v3578_v27 = vld [vmem:[%s3462_s25] sm:$0xff]  ;;  %v2907_v28 = vpack.c.bf16 %v251_v21, %v248_v20 }
  0x1a   : > { %2890 = vmatpush3.bf16.msra.mxu1 %v2887_v45  ;;  %2868 = vmatprep.subr.bf16.mxu0 %v2867_v51  ;;  %v252_v24 = vld [vmem:[%s4508_s1 + $0xb8] sm:$0xff]  ;;  %v250_v30 = vld [vmem:[%s4508_s1 + $0xa8] sm:$0xff]  ;;  %v257_v33 = vld [vmem:[%s4508_s1 + $0xe0] sm:$0xff] }
  0x1b   : > { %2892 = vmatprep.subr.bf16.mxu1 %v2891_v54  ;;  %v2931_v31 = vpack.c.bf16 %v252_v24, %v249_v23  ;;  %v254_v32 = vld [vmem:[%s4508_s1 + $0xc8] sm:$0xff]  ;;  %v255_v34 = vld [vmem:[%s4508_s1 + $0xd0] sm:$0xff]  ;;  %v2909_v36 = vpack.c.bf16 %v250_v30, %v247_v29  ;;  %v253_v38 = vld [vmem:[%s4508_s1 + $0xc0] sm:$0xff] }
  0x1c   : > { %v258_v35 = vld [vmem:[%s4508_s1 + $0xe8] sm:$0xff]  ;;  %v2911_v37 = vpack.c.bf16 %v257_v33, %v254_v32  ;;  %v256_v39 = vld [vmem:[%s4508_s1 + $0xd8] sm:$0xff]  ;;  %v263_v42 = vld [vmem:[%s4508_s1 + $0x110] sm:$0xff] }
  0x1d   : > { %2870 = vmatpush1.bf16.msra.mxu0 %v2869_v59  ;;  %v2935_v40 = vpack.c.bf16 %v258_v35, %v255_v34  ;;  %v261_v43 = vld [vmem:[%s4508_s1 + $0x100] sm:$0xff]  ;;  %v264_v44 = vld [vmem:[%s4508_s1 + $0x118] sm:$0xff]  ;;  %v2913_v45 = vpack.c.bf16 %v256_v39, %v253_v38  ;;  %v259_v47 = vld [vmem:[%s4508_s1 + $0xf0] sm:$0xff] }
  0x1e   : > { %2894 = vmatpush3.bf16.msra.mxu1 %v2891_v54  ;;  %2896 = vmatprep.subr.bf16.mxu0 %v2895_v60  ;;  %v262_v48 = vld [vmem:[%s4508_s1 + $0x108] sm:$0xff]  ;;  %v2939_v49 = vpack.c.bf16 %v264_v44, %v261_v43  ;;  %v2361_v51 = vld [vmem:[%s4508_s1 + $0x260] sm:$0xff]  ;;  %v2359_v52 = vld [vmem:[%s4508_s1 + $0x250] sm:$0xff] }
  0x1f   : > { %2920 = vmatprep.subr.bf16.mxu1 %v2919_v63  ;;  %v2358_v50 = vld [vmem:[%s4508_s1 + $0x248] sm:$0xff]  ;;  %v2917_v54 = vpack.c.bf16 %v262_v48, %v259_v47  ;;  %v2357_v56 = vld [vmem:[%s4508_s1 + $0x240] sm:$0xff]  ;;  %v2360_v57 = vld [vmem:[%s4508_s1 + $0x258] sm:$0xff] }
  0x20   : > { %2341 = vmatmul.mubr.msk.f32.vlgmr.msra.gmra.mrb[0].mxu0 %vm306_vm0, %v265_v41  ;;  %v260_v41 = vld [vmem:[%s4508_s1 + $0xf8] sm:$0xff]  ;;  %v2362_v53 = vld [vmem:[%s4508_s1 + $0x268] sm:$0xff]  ;;  %v2943_v55 = vpack.c.bf16 %v2361_v51, %v2358_v50  ;;  %v2367_v60 = vld [vmem:[%s4508_s1 + $0x290] sm:$0xff] }
  0x21   : > { %2700 = vmatmul.mubr.msk.f32.vlgmr.msra.gmra.mrb[0].mxu1 %vm306_vm0, %v266_v5  ;;  %2898 = vmatpush1.bf16.msra.mxu0 %v2897_v4  ;;  %v2915_v46 = vpack.c.bf16 %v263_v42, %v260_v41  ;;  %v2967_v58 = vpack.c.bf16 %v2362_v53, %v2359_v52  ;;  %v2364_v59 = vld [vmem:[%s4508_s1 + $0x278] sm:$0xff]  ;;  %v2365_v61 = vld [vmem:[%s4508_s1 + $0x280] sm:$0xff]  ;;  %v226_v0 = vld [vmem:[%s3462_s25 + $0x8] sm:$0xff] }
  0x22   : > { %2922 = vmatpush3.bf16.msra.mxu1 %v2919_v63  ;;  %2900 = vmatprep.subr.bf16.mxu0 %v2899_v6  ;;  %v2368_v62 = vld [vmem:[%s4508_s1 + $0x298] sm:$0xff]  ;;  %v2945_v63 = vpack.c.bf16 %v2360_v57, %v2357_v56  ;;  %v2947_v1 = vpack.c.bf16 %v2367_v60, %v2364_v59  ;;  %v2363_v2 = vld [vmem:[%s4508_s1 + $0x270] sm:$0xff]  ;;  %v2366_v3 = vld [vmem:[%s4508_s1 + $0x288] sm:$0xff] }
  0x23   : > { %2924 = vmatprep.subr.bf16.mxu1 %v2923_v10  ;;  %389 = vmatprep.mubr.f32.mxu0 %v3341_v7  ;;  %v2971_v4 = vpack.c.bf16 %v2368_v62, %v2365_v61  ;;  %v2373_v6 = vld [vmem:[%s4508_s1 + $0x2c0] sm:$0xff]  ;;  %v2371_v8 = vld [vmem:[%s4508_s1 + $0x2b0] sm:$0xff]  ;;  %v2374_v9 = vld [vmem:[%s4508_s1 + $0x2c8] sm:$0xff] }
  0x24   : > { %2342 = vmatmul.mubr.msk.f32.gmra.mrb[2].mxu0 %vm306_vm0, %v266_v5  ;;  %2702 = vmatprep.mubr.msk.f32.mxu1 %vm306_vm0, %v267_v22  ;;  %v2370_v5 = vld [vmem:[%s4508_s1 + $0x2a8] sm:$0xff]  ;;  %v2369_v12 = vld [vmem:[%s4508_s1 + $0x2a0] sm:$0xff]  ;;  %v2372_v13 = vld [vmem:[%s4508_s1 + $0x2b8] sm:$0xff]  ;;  %v2975_v14 = vpack.c.bf16 %v2374_v9, %v2371_v8 }
  0x25   : > { %2902 = vmatpush1.bf16.msra.mxu0 %v2901_v15  ;;  %395 = vmatprep.mubr.f32.mxu0 %v3341_v7  ;;  %v2951_v11 = vpack.c.bf16 %v2373_v6, %v2370_v5  ;;  %v2376_v15 = vld [vmem:[%s4508_s1 + $0x2d8] sm:$0xff]  ;;  %v227_v17 = vld [vmem:[%s3462_s25 + $0x10] sm:$0xff]  ;;  %v2377_v18 = vld [vmem:[%s4508_s1 + $0x2e0] sm:$0xff]  ;;  %v2953_v21 = vpack.c.bf16 %v2372_v13, %v2369_v12 }
  0x26   : > { %2926 = vmatpush3.bf16.msra.mxu1 %v2923_v10  ;;  %2904 = vmatprep.subr.bf16.mxu0 %v2903_v16  ;;  %v2949_v10 = vpack.c.bf16 %v2366_v3, %v2363_v2  ;;  %v2379_v16 = vld [vmem:[%s4508_s1 + $0x2f0] sm:$0xff]  ;;  %v228_v20 = vld [vmem:[%s3462_s25 + $0x18] sm:$0xf]  ;;  %v2386_v30 = vld [vmem:[%s4508_s1 + $0x328] sm:$0xff] }
  0x27   : > { %2928 = vmatprep.subr.bf16.mxu1 %v2927_v19  ;;  %2703 = vmatmul.mubr.msk.f32.gmra.mrb[2].mxu1 %vm306_vm0, %v268_v25  ;;  %v2955_v23 = vpack.c.bf16 %v2379_v16, %v2376_v15  ;;  %v2375_v24 = vld [vmem:[%s4508_s1 + $0x2d0] sm:$0xff]  ;;  %v2381_v33 = vld [vmem:[%s4508_s1 + $0x300] sm:$0xff]  ;;  %v2384_v34 = vld [vmem:[%s4508_s1 + $0x318] sm:$0xff] }
  0x28   : > { %2343 = vmatmul.mubr.msk.f32.gmra.mrb[4].mxu0 %vm306_vm0, %v267_v22  ;;  %2729 = vmatprep.mubr.msk.f32.mxu1 %vm306_vm0, %v3578_v27  ;;  %v3706_v22 = vld [vmem:[%s3462_s25 + $0x2] sm:$0xff]  ;;  %v2383_v29 = vld [vmem:[%s4508_s1 + $0x310] sm:$0xff]  ;;  %v2392_v39 = vld [vmem:[%s4508_s1 + $0x358] sm:$0xff] }
  0x29   : > { %2906 = vmatpush1.bf16.msra.mxu0 %v2905_v26  ;;  %401 = vmatprep.mubr.f32.mxu0 %v3341_v7  ;;  %v2983_v35 = vpack.c.bf16 %v2386_v30, %v2383_v29  ;;  %v2389_v38 = vld [vmem:[%s4508_s1 + $0x340] sm:$0xff]  ;;  %v2387_v42 = vld [vmem:[%s4508_s1 + $0x330] sm:$0xff]  ;;  %v2390_v43 = vld [vmem:[%s4508_s1 + $0x348] sm:$0xff] }
  0x2a   : > { %2930 = vmatpush3.bf16.msra.mxu1 %v2927_v19  ;;  %2908 = vmatprep.subr.bf16.mxu0 %v2907_v28  ;;  %v2380_v19 = vld [vmem:[%s4508_s1 + $0x2f8] sm:$0xff]  ;;  %v2385_v28 = vld [vmem:[%s4508_s1 + $0x320] sm:$0xff]  ;;  %v2987_v44 = vpack.c.bf16 %v2392_v39, %v2389_v38  ;;  %v2403_v47 = vld [vmem:[%s4508_s1 + $0x370] sm:$0xff] }
  0x2b   : > { %2932 = vmatprep.subr.bf16.mxu1 %v2931_v31  ;;  %v2979_v26 = vpack.c.bf16 %v2380_v19, %v2377_v18  ;;  %v2406_v48 = vld [vmem:[%s4508_s1 + $0x388] sm:$0xff]  ;;  %v2401_v51 = vld [vmem:[%s4508_s1 + $0x360] sm:$0xff]  ;;  %v2404_v52 = vld [vmem:[%s4508_s1 + $0x378] sm:$0xff] }
  0x2c   : > { %2344 = vmatmul.mubr.msk.f32.gmra.mrb[6].mxu0 %vm306_vm0, %v268_v25  ;;  %v2378_v25 = vld [vmem:[%s4508_s1 + $0x2e8] sm:$0xff]  ;;  %v3015_v53 = vpack.c.bf16 %v2406_v48, %v2403_v47  ;;  %v2409_v56 = vld [vmem:[%s4508_s1 + $0x3a0] sm:$0xff]  ;;  %v2412_v57 = vld [vmem:[%s4508_s1 + $0x3b8] sm:$0xff] }
  0x2d   : > { %2910 = vmatpush1.bf16.msra.mxu0 %v2909_v36  ;;  %569 = vmatprep.mubr.f32.mxu0 %v3341_v7  ;;  %v2388_v36 = vld [vmem:[%s4508_s1 + $0x338] sm:$0xff]  ;;  %v680_v59 = vld [vmem:[%s3462_s25 + $0xa] sm:$0xff]  ;;  %v2413_v6 = vld [vmem:[%s4508_s1 + $0x3c0] sm:$0xff] }
  0x2e   : > { %2934 = vmatpush3.bf16.msra.mxu1 %v2931_v31  ;;  %2912 = vmatprep.subr.bf16.mxu0 %v2911_v37  ;;  %v2957_v31 = vpack.c.bf16 %v2378_v25, %v2375_v24  ;;  %v2391_v37 = vld [vmem:[%s4508_s1 + $0x350] sm:$0xff]  ;;  %v2410_v62 = vld [vmem:[%s4508_s1 + $0x3a8] sm:$0xff]  ;;  %v2416_v8 = vld [vmem:[%s4508_s1 + $0x3d8] sm:$0xff] }
  0x2f   : > { %2936 = vmatprep.subr.bf16.mxu1 %v2935_v40  ;;  %v2963_v41 = vpack.c.bf16 %v2391_v37, %v2388_v36  ;;  %v2407_v61 = vld [vmem:[%s4508_s1 + $0x390] sm:$0xff]  ;;  %v2418_v3 = vld [vmem:[%s4508_s1 + $0x3e8] sm:$0xff]  ;;  %v2421_v13 = vld [vmem:[%s4508_s1 + $0x400] sm:$0xff]  ;;  %v3001_v16 = vpack.c.bf16 %v2416_v8, %v2413_v6 }
  0x30   : > { %v2415_v2 = vld [vmem:[%s4508_s1 + $0x3d0] sm:$0xff]  ;;  %v682_v15 = vld [vmem:[%s3462_s25 + $0x1a] sm:$0xf]  ;;  %v2430_v25 = vld [vmem:[%s4508_s1 + $0x448] sm:$0xff] }
  0x31   : > { %2914 = vmatpush1.bf16.msra.mxu0 %v2913_v45  ;;  %v2402_v45 = vld [vmem:[%s4508_s1 + $0x368] sm:$0xff]  ;;  %v3023_v9 = vpack.c.bf16 %v2418_v3, %v2415_v2  ;;  %v681_v12 = vld [vmem:[%s3462_s25 + $0x12] sm:$0xff]  ;;  %v2465_v8 = vld [vmem:[%s4508_s1 + $0x520] sm:$0xff] }
  0x32   : > { %2938 = vmatpush3.bf16.msra.mxu1 %v2935_v40  ;;  %2916 = vmatprep.subr.bf16.mxu0 %v2915_v46  ;;  %v2961_v40 = vpack.c.bf16 %v2384_v34, %v2381_v33  ;;  %v2405_v46 = vld [vmem:[%s4508_s1 + $0x380] sm:$0xff]  ;;  %v2419_v19 = vld [vmem:[%s4508_s1 + $0x3f0] sm:$0xff]  ;;  %v2428_v29 = vld [vmem:[%s4508_s1 + $0x438] sm:$0xff] }
  0x33   : > { %2940 = vmatprep.subr.bf16.mxu1 %v2939_v49  ;;  %v2991_v50 = vpack.c.bf16 %v2405_v46, %v2402_v45  ;;  %v2427_v24 = vld [vmem:[%s4508_s1 + $0x430] sm:$0xff]  ;;  %v2433_v33 = vld [vmem:[%s4508_s1 + $0x460] sm:$0xff]  ;;  %v2436_v34 = vld [vmem:[%s4508_s1 + $0x478] sm:$0xff] }
  0x34   : > { %v3031_v30 = vpack.c.bf16 %v2430_v25, %v2427_v24  ;;  %v2431_v37 = vld [vmem:[%s4508_s1 + $0x450] sm:$0xff]  ;;  %v2434_v38 = vld [vmem:[%s4508_s1 + $0x468] sm:$0xff]  ;;  %v3035_v39 = vpack.c.bf16 %v2436_v34, %v2433_v33  ;;  %v2445_v46 = vld [vmem:[%s4508_s1 + $0x480] sm:$0xff] }
  0x35   : > { %2918 = vmatpush1.bf16.msra.mxu0 %v2917_v54  ;;  %v2408_v54 = vld [vmem:[%s4508_s1 + $0x398] sm:$0xff]  ;;  %v2478_v33 = vld [vmem:[%s4508_s1 + $0x588] sm:$0xff]  ;;  %vm4035_vm4 = vmpackc.low %vm1446_vm2, %vm3342_vm3 }
  0x36   : > { %2942 = vmatpush3.bf16.msra.mxu1 %v2939_v49  ;;  %2944 = vmatprep.subr.bf16.mxu0 %v2943_v55  ;;  %v2965_v49 = vpack.c.bf16 %v2390_v43, %v2387_v42  ;;  %v2411_v55 = vld [vmem:[%s4508_s1 + $0x3b0] sm:$0xff]  ;;  %v2450_v43 = vld [vmem:[%s4508_s1 + $0x4a8] sm:$0xff]  ;;  %v2448_v47 = vld [vmem:[%s4508_s1 + $0x498] sm:$0xff] }
  0x37   : > { %2968 = vmatprep.subr.bf16.mxu1 %v2967_v58  ;;  %v2995_v60 = vpack.c.bf16 %v2411_v55, %v2408_v54  ;;  %v2447_v42 = vld [vmem:[%s4508_s1 + $0x490] sm:$0xff]  ;;  %v2460_v2 = vld [vmem:[%s4508_s1 + $0x4f8] sm:$0xff] }
  0x38   : > { %2349 = vmatmul.mubr.msk.f32.vlgmr.msra.gmra.mrb[0].mxu0 %vm306_vm0, %v3578_v27  ;;  %v2382_v27 = vld [vmem:[%s4508_s1 + $0x308] sm:$0xff]  ;;  %v3063_v48 = vpack.c.bf16 %v2450_v43, %v2447_v42  ;;  %v920_v6 = vld [vmem:[%s3462_s25 + $0x13] sm:$0xff]  ;;  %v1396_v43 = vld [vmem:[%s4509_s2] sm:$0x7] }
  0x39   : > { %2730 = vmatmul.mubr.msk.f32.vlgmr.msra.gmra.mrb[0].mxu1 %vm306_vm0, %v226_v0  ;;  %2946 = vmatpush1.bf16.msra.mxu0 %v2945_v63  ;;  %v2959_v32 = vpack.c.bf16 %v2385_v28, %v2382_v27  ;;  %v3019_v63 = vpack.c.bf16 %v2412_v57, %v2409_v56  ;;  %v2425_v28 = vld [vmem:[%s4508_s1 + $0x420] sm:$0xff]  ;;  %v919_v54 = vld [vmem:[%s3462_s25 + $0xb] sm:$0xff]  ;;  %v2472_v24 = vld [vmem:[%s4508_s1 + $0x558] sm:$0xff] }
  0x3a   : > { %2970 = vmatpush3.bf16.msra.mxu1 %v2967_v58  ;;  %2948 = vmatprep.subr.bf16.mxu0 %v2947_v1  ;;  %v2993_v58 = vpack.c.bf16 %v2404_v52, %v2401_v51  ;;  %v2417_v1 = vld [vmem:[%s4508_s1 + $0x3e0] sm:$0xff]  ;;  %v2456_v52 = vld [vmem:[%s4508_s1 + $0x4d8] sm:$0xff]  ;;  %v2451_v56 = vld [vmem:[%s4508_s1 + $0x4b0] sm:$0xff] }
  0x3b   : > { %2972 = vmatprep.subr.bf16.mxu1 %v2971_v4  ;;  %575 = vmatprep.mubr.f32.mxu0 %v3341_v7  ;;  %v2453_v51 = vld [vmem:[%s4508_s1 + $0x4c0] sm:$0xff]  ;;  %v2454_v57 = vld [vmem:[%s4508_s1 + $0x4c8] sm:$0xff] }
  0x3c   : > { %2350 = vmatmul.mubr.msk.f32.gmra.mrb[2].mxu0 %vm306_vm0, %v226_v0  ;;  %2732 = vmatprep.mubr.msk.f32.mxu1 %vm306_vm0, %v227_v17  ;;  %v2414_v0 = vld [vmem:[%s4508_s1 + $0x3c8] sm:$0xff] }
  0x3d   : > { %2950 = vmatpush1.bf16.msra.mxu0 %v2949_v10  ;;  %581 = vmatprep.mubr.f32.mxu0 %v3341_v7  ;;  %v2999_v5 = vpack.c.bf16 %v2417_v1, %v2414_v0  ;;  %v2420_v10 = vld [vmem:[%s4508_s1 + $0x3f8] sm:$0xff]  ;;  %v2457_v1 = vld [vmem:[%s4508_s1 + $0x4e0] sm:$0xff] }
  0x3e   : > { %2974 = vmatpush3.bf16.msra.mxu1 %v2971_v4  ;;  %2952 = vmatprep.subr.bf16.mxu0 %v2951_v11  ;;  %v2997_v4 = vpack.c.bf16 %v2410_v62, %v2407_v61  ;;  %v2423_v11 = vld [vmem:[%s4508_s1 + $0x410] sm:$0xff]  ;;  %v2462_v62 = vld [vmem:[%s4508_s1 + $0x508] sm:$0xff] }
  0x3f   : > { %2976 = vmatprep.subr.bf16.mxu1 %v2975_v14  ;;  %2733 = vmatmul.mubr.msk.f32.gmra.mrb[2].mxu1 %vm306_vm0, %v228_v20  ;;  %v3003_v18 = vpack.c.bf16 %v2423_v11, %v2420_v10  ;;  %v2459_v61 = vld [vmem:[%s4508_s1 + $0x4f0] sm:$0xff]  ;;  %v921_v10 = vld [vmem:[%s3462_s25 + $0x1b] sm:$0xf]  ;;  %v3049_v11 = vpack.c.bf16 %v2460_v2, %v2457_v1 }
  0x40   : > { %2351 = vmatmul.mubr.msk.f32.gmra.mrb[4].mxu0 %vm306_vm0, %v227_v17  ;;  %2759 = vmatprep.mubr.msk.f32.mxu1 %vm306_vm0, %v3706_v22  ;;  %v3834_v17 = vld [vmem:[%s3462_s25 + $0x3] sm:$0xff]  ;;  %v3071_v3 = vpack.c.bf16 %v2462_v62, %v2459_v61 }
  0x41   : > { %2954 = vmatpush1.bf16.msra.mxu0 %v2953_v21  ;;  %587 = vmatprep.mubr.f32.mxu0 %v3341_v7 }
  0x42   : > { %2978 = vmatpush3.bf16.msra.mxu1 %v2975_v14  ;;  %2956 = vmatprep.subr.bf16.mxu0 %v2955_v23  ;;  %v2424_v14 = vld [vmem:[%s4508_s1 + $0x418] sm:$0xff]  ;;  %v2429_v23 = vld [vmem:[%s4508_s1 + $0x440] sm:$0xff] }
  0x43   : > { %2980 = vmatprep.subr.bf16.mxu1 %v2979_v26  ;;  %v3027_v21 = vpack.c.bf16 %v2424_v14, %v2421_v13  ;;  %v2463_v14 = vld [vmem:[%s4508_s1 + $0x510] sm:$0xff] }
  0x44   : > { %2352 = vmatmul.mubr.msk.f32.gmra.mrb[6].mxu0 %vm306_vm0, %v228_v20  ;;  %v2422_v20 = vld [vmem:[%s4508_s1 + $0x408] sm:$0xff] }
  0x45   : > { %2958 = vmatpush1.bf16.msra.mxu0 %v2957_v31  ;;  %796 = vmatprep.mubr.f32.mxu0 %v3341_v7  ;;  %v2432_v31 = vld [vmem:[%s4508_s1 + $0x458] sm:$0xff] }
  0x46   : > { %2982 = vmatpush3.bf16.msra.mxu1 %v2979_v26  ;;  %2960 = vmatprep.subr.bf16.mxu0 %v2959_v32  ;;  %v3005_v26 = vpack.c.bf16 %v2422_v20, %v2419_v19  ;;  %v2435_v32 = vld [vmem:[%s4508_s1 + $0x470] sm:$0xff]  ;;  %v2474_v20 = vld [vmem:[%s4508_s1 + $0x568] sm:$0xff] }
  0x47   : > { %2984 = vmatprep.subr.bf16.mxu1 %v2983_v35  ;;  %v3011_v36 = vpack.c.bf16 %v2435_v32, %v2432_v31  ;;  %v2471_v19 = vld [vmem:[%s4508_s1 + $0x550] sm:$0xff] }
  0x48   : > { %v3079_v25 = vpack.c.bf16 %v2474_v20, %v2471_v19  ;;  %v2475_v32 = vld [vmem:[%s4508_s1 + $0x570] sm:$0xff] }
  0x49   : > { %2962 = vmatpush1.bf16.msra.mxu0 %v2961_v40  ;;  %v2446_v40 = vld [vmem:[%s4508_s1 + $0x488] sm:$0xff] }
  0x4a   : > { %2986 = vmatpush3.bf16.msra.mxu1 %v2983_v35  ;;  %2964 = vmatprep.subr.bf16.mxu0 %v2963_v41  ;;  %v3009_v35 = vpack.c.bf16 %v2428_v29, %v2425_v28  ;;  %v2449_v41 = vld [vmem:[%s4508_s1 + $0x4a0] sm:$0xff]  ;;  %v2480_v29 = vld [vmem:[%s4508_s1 + $0x598] sm:$0xff] }
  0x4b   : > { %2988 = vmatprep.subr.bf16.mxu1 %v2987_v44  ;;  %v3039_v45 = vpack.c.bf16 %v2449_v41, %v2446_v40  ;;  %v2477_v28 = vld [vmem:[%s4508_s1 + $0x580] sm:$0xff]  ;;  %v1398_v40 = vlaneseq }
  0x4c   : > { %v3083_v34 = vpack.c.bf16 %v2480_v29, %v2477_v28  ;;  %v2508_v29 = vld [vmem:[%s4511_s4 + $0x238] sm:$0xff] }
  0x4d   : > { %2966 = vmatpush1.bf16.msra.mxu0 %v2965_v49  ;;  %v2452_v49 = vld [vmem:[%s4508_s1 + $0x4b8] sm:$0xff]  ;;  %v1399_v41 = vshrl.u32 %v1398_v40, 7  ;;  %v1776_v40 = vld [vmem:[%s4511_s4 + $0x8] sm:$0xff] }
  0x4e   : > { %2990 = vmatpush3.bf16.msra.mxu1 %v2987_v44  ;;  %2992 = vmatprep.subr.bf16.mxu0 %v2991_v50  ;;  %v3013_v44 = vpack.c.bf16 %v2434_v38, %v2431_v37  ;;  %v2455_v50 = vld [vmem:[%s4508_s1 + $0x4d0] sm:$0xff]  ;;  %v1160_v38 = vld [vmem:[%s3462_s25 + $0x1c] sm:$0xf] }
  0x4f   : > { %3016 = vmatprep.subr.bf16.mxu1 %v3015_v53  ;;  %v3043_v55 = vpack.c.bf16 %v2455_v50, %v2452_v49  ;;  %v1159_v37 = vld [vmem:[%s3462_s25 + $0x14] sm:$0xff]  ;;  %v1408_v42 = vsub.s32 2, %v1399_v41 }
  0x50   : > { %2393 = vmatmul.mubr.msk.f32.vlgmr.msra.gmra.mrb[0].mxu0 %vm306_vm0, %v3706_v22  ;;  %v2426_v22 = vld [vmem:[%s4508_s1 + $0x428] sm:$0xff] }
  0x51   : > { %2760 = vmatmul.mubr.msk.f32.vlgmr.msra.gmra.mrb[0].mxu1 %vm306_vm0, %v680_v59  ;;  %2994 = vmatpush1.bf16.msra.mxu0 %v2993_v58  ;;  %v3007_v27 = vpack.c.bf16 %v2429_v23, %v2426_v22  ;;  %v3067_v58 = vpack.c.bf16 %v2456_v52, %v2453_v51  ;;  %v2469_v23 = vld [vmem:[%s4508_s1 + $0x540] sm:$0xff] }
  0x52   : > { %3018 = vmatpush3.bf16.msra.mxu1 %v3015_v53  ;;  %2996 = vmatprep.subr.bf16.mxu0 %v2995_v60  ;;  %v3041_v53 = vpack.c.bf16 %v2448_v47, %v2445_v46  ;;  %v2461_v60 = vld [vmem:[%s4508_s1 + $0x500] sm:$0xff]  ;;  %v1409_v46 = vrot.slane %v1396_v43, %v1408_v42 }
  0x53   : > { %3020 = vmatprep.subr.bf16.mxu1 %v3019_v63  ;;  %802 = vmatprep.mubr.f32.mxu0 %v3341_v7 }
  0x54   : > { %2394 = vmatmul.mubr.msk.f32.gmra.mrb[2].mxu0 %vm306_vm0, %v680_v59  ;;  %2762 = vmatprep.mubr.msk.f32.mxu1 %vm306_vm0, %v681_v12  ;;  %v2458_v59 = vld [vmem:[%s4508_s1 + $0x4e8] sm:$0xff] }
  0x55   : > { %2998 = vmatpush1.bf16.msra.mxu0 %v2997_v4  ;;  %808 = vmatprep.mubr.f32.mxu0 %v3341_v7  ;;  %v3047_v0 = vpack.c.bf16 %v2461_v60, %v2458_v59  ;;  %v2464_v4 = vld [vmem:[%s4508_s1 + $0x518] sm:$0xff] }
  0x56   : > { %3022 = vmatpush3.bf16.msra.mxu1 %v3019_v63  ;;  %3000 = vmatprep.subr.bf16.mxu0 %v2999_v5  ;;  %v3045_v63 = vpack.c.bf16 %v2454_v57, %v2451_v56  ;;  %v2467_v5 = vld [vmem:[%s4508_s1 + $0x530] sm:$0xff] }
  0x57   : > { %3024 = vmatprep.subr.bf16.mxu1 %v3023_v9  ;;  %2763 = vmatmul.mubr.msk.f32.gmra.mrb[2].mxu1 %vm306_vm0, %v682_v15  ;;  %v3051_v13 = vpack.c.bf16 %v2467_v5, %v2464_v4 }
  0x58   : > { %2395 = vmatmul.mubr.msk.f32.gmra.mrb[4].mxu0 %vm306_vm0, %v681_v12  ;;  %2789 = vmatprep.mubr.msk.f32.mxu1 %vm306_vm0, %v3834_v17  ;;  %v1157_v12 = vld [vmem:[%s3462_s25 + $0x4] sm:$0xff] }
  0x59   : > { %3002 = vmatpush1.bf16.msra.mxu0 %v3001_v16  ;;  %814 = vmatprep.mubr.f32.mxu0 %v3341_v7 }
  0x5a   : > { %3026 = vmatpush3.bf16.msra.mxu1 %v3023_v9  ;;  %3004 = vmatprep.subr.bf16.mxu0 %v3003_v18  ;;  %v2468_v9 = vld [vmem:[%s4508_s1 + $0x538] sm:$0xff]  ;;  %v2473_v18 = vld [vmem:[%s4508_s1 + $0x560] sm:$0xff] }
  0x5b   : > { %3028 = vmatprep.subr.bf16.mxu1 %v3027_v21  ;;  %v3075_v16 = vpack.c.bf16 %v2468_v9, %v2465_v8 }
  0x5c   : > { %2396 = vmatmul.mubr.msk.f32.gmra.mrb[6].mxu0 %vm306_vm0, %v682_v15  ;;  %v2466_v15 = vld [vmem:[%s4508_s1 + $0x528] sm:$0xff] }
  0x5d   : > { %3006 = vmatpush1.bf16.msra.mxu0 %v3005_v26  ;;  %1035 = vmatprep.mubr.f32.mxu0 %v3341_v7  ;;  %v2476_v26 = vld [vmem:[%s4508_s1 + $0x578] sm:$0xff] }
  0x5e   : > { %3030 = vmatpush3.bf16.msra.mxu1 %v3027_v21  ;;  %3008 = vmatprep.subr.bf16.mxu0 %v3007_v27  ;;  %v3053_v21 = vpack.c.bf16 %v2466_v15, %v2463_v14  ;;  %v2479_v27 = vld [vmem:[%s4508_s1 + $0x590] sm:$0xff] }
  0x5f   : > { %3032 = vmatprep.subr.bf16.mxu1 %v3031_v30  ;;  %v3059_v31 = vpack.c.bf16 %v2479_v27, %v2476_v26  ;;  %v2496_v26 = vld [vmem:[%s4510_s3 + $0x10] sm:$0xff] }
  0x60   : > { %v2523_v15 = vld [vmem:[%s4511_s4 + $0x2b0] sm:$0xff] }
  0x61   : > { %3010 = vmatpush1.bf16.msra.mxu0 %v3009_v35  ;;  %v3061_v35 = vpack.c.bf16 %v2478_v33, %v2475_v32 }
  0x62   : > { %3034 = vmatpush3.bf16.msra.mxu1 %v3031_v30  ;;  %3012 = vmatprep.subr.bf16.mxu0 %v3011_v36  ;;  %v3057_v30 = vpack.c.bf16 %v2472_v24, %v2469_v23  ;;  %v1158_v36 = vld [vmem:[%s3462_s25 + $0xc] sm:$0xff] }
  0x63   : > { %3036 = vmatprep.subr.bf16.mxu1 %v3035_v39  ;;  %v1438_v23 = vld [vmem:[%s4510_s3 + $0x8] sm:$0x3f] }
  0x65   : > { %3014 = vmatpush1.bf16.msra.mxu0 %v3013_v44  ;;  %v1400_v44 = vsub.s32 0, %v1399_v41 }
  0x66   : > { %3038 = vmatpush3.bf16.msra.mxu1 %v3035_v39  ;;  %3040 = vmatprep.subr.bf16.mxu0 %v3039_v45  ;;  %v4027_v39 = vld [vmem:[%s4510_s3] sm:$0xff]  ;;  %v1404_v45 = vsub.s32 1, %v1399_v41  ;;  %v1778_v41 = vld [vmem:[%s4511_s4 + $0x18] sm:$0xff] }
  0x67   : > { %3064 = vmatprep.subr.bf16.mxu1 %v3063_v48  ;;  %v1401_v47 = vrot.slane %v1396_v43, %v1400_v44  ;;  %v2511_v44 = vld [vmem:[%s4511_s4 + $0x250] sm:$0xff] }
  0x68   : > { %2437 = vmatmul.mubr.msk.f32.vlgmr.msra.gmra.mrb[0].mxu0 %vm306_vm0, %v3834_v17  ;;  %v2470_v17 = vld [vmem:[%s4508_s1 + $0x548] sm:$0xff]  ;;  %v1405_v49 = vrot.slane %v1396_v43, %v1404_v45  ;;  %v2513_v45 = vld [vmem:[%s4511_s4 + $0x260] sm:$0xff] }
  0x69   : > { %2790 = vmatmul.mubr.msk.f32.vlgmr.msra.gmra.mrb[0].mxu1 %vm306_vm0, %v919_v54  ;;  %3042 = vmatpush1.bf16.msra.mxu0 %v3041_v53  ;;  %v3055_v22 = vpack.c.bf16 %v2473_v18, %v2470_v17 }
  0x6a   : > { %3066 = vmatpush3.bf16.msra.mxu1 %v3063_v48  ;;  %3044 = vmatprep.subr.bf16.mxu0 %v3043_v55 }
  0x6b   : > { %3068 = vmatprep.subr.bf16.mxu1 %v3067_v58  ;;  %1041 = vmatprep.mubr.f32.mxu0 %v3341_v7 }
  0x6c   : > { %2438 = vmatmul.mubr.msk.f32.gmra.mrb[2].mxu0 %vm306_vm0, %v919_v54  ;;  %2792 = vmatprep.mubr.msk.f32.mxu1 %vm306_vm0, %v920_v6 }
  0x6d   : > { %3046 = vmatpush1.bf16.msra.mxu0 %v3045_v63  ;;  %1047 = vmatprep.mubr.f32.mxu0 %v3341_v7 }
  0x6e   : > { %3070 = vmatpush3.bf16.msra.mxu1 %v3067_v58  ;;  %3048 = vmatprep.subr.bf16.mxu0 %v3047_v0 }
  0x6f   : > { %3072 = vmatprep.subr.bf16.mxu1 %v3071_v3  ;;  %2793 = vmatmul.mubr.msk.f32.gmra.mrb[2].mxu1 %vm306_vm0, %v921_v10 }
  0x70   : > { %2439 = vmatmul.mubr.msk.f32.gmra.mrb[4].mxu0 %vm306_vm0, %v920_v6  ;;  %2819 = vmatprep.mubr.msk.f32.mxu1 %vm306_vm0, %v1157_v12 }
  0x71   : > { %3050 = vmatpush1.bf16.msra.mxu0 %v3049_v11  ;;  %1053 = vmatprep.mubr.f32.mxu0 %v3341_v7 }
  0x72   : > { %3074 = vmatpush3.bf16.msra.mxu1 %v3071_v3  ;;  %3052 = vmatprep.subr.bf16.mxu0 %v3051_v13 }
  0x73   : > { %3076 = vmatprep.subr.bf16.mxu1 %v3075_v16 }
  0x74   : > { %2440 = vmatmul.mubr.msk.f32.gmra.mrb[6].mxu0 %vm306_vm0, %v921_v10 }
  0x75   : > { %3054 = vmatpush1.bf16.msra.mxu0 %v3053_v21  ;;  %1274 = vmatprep.mubr.f32.mxu0 %v3341_v7 }
  0x76   : > { %3078 = vmatpush3.bf16.msra.mxu1 %v3075_v16  ;;  %3056 = vmatprep.subr.bf16.mxu0 %v3055_v22 }
  0x77   : > { %3080 = vmatprep.subr.bf16.mxu1 %v3079_v25 }
  0x79   : > { %3058 = vmatpush1.bf16.msra.mxu0 %v3057_v30  ;;  %v2510_v30 = vld [vmem:[%s4511_s4 + $0x248] sm:$0xff] }
  0x7a   : > { %3082 = vmatpush3.bf16.msra.mxu1 %v3079_v25  ;;  %3060 = vmatprep.subr.bf16.mxu0 %v3059_v31  ;;  %v3195_v33 = vpack.c.bf16 %v2510_v30, %v2508_v29  ;;  %v2532_v30 = vld [vmem:[%s4511_s4 + $0x2f8] sm:$0xff] }
  0x7b   : > { %3084 = vmatprep.subr.bf16.mxu1 %v3083_v34 }
  0x7d   : > { %3062 = vmatpush1.bf16.msra.mxu0 %v3061_v35  ;;  %v2509_v35 = vld [vmem:[%s4511_s4 + $0x240] sm:$0xff] }
  0x7e   : > { %3086 = vmatpush3.bf16.msra.mxu1 %v3083_v34  ;;  %v2507_v34 = vld [vmem:[%s4511_s4 + $0x230] sm:$0xff] }
  0x7f   : > { %v3197_v42 = vpack.c.bf16 %v2509_v35, %v2507_v34  ;;  %v1793_v34 = vld [vmem:[%s4511_s4 + $0x90] sm:$0xff]  ;;  %v1796_v35 = vld [vmem:[%s4511_s4 + $0xa8] sm:$0xff] }
  0x80   : > { %2481 = vmatmul.mubr.msk.f32.vlgmr.msra.gmra.mrb[0].mxu0 %vm306_vm0, %v1157_v12 }
  0x81   : > { %2820 = vmatmul.mubr.msk.f32.vlgmr.msra.gmra.mrb[0].mxu1 %vm306_vm0, %v1158_v36  ;;  %1280 = vmatprep.mubr.f32.mxu0 %v3341_v7 }
  0x82   : > { %2822 = vmatprep.mubr.msk.f32.mxu1 %vm306_vm0, %v1159_v37 }
  0x84   : > { %2482 = vmatmul.mubr.msk.f32.gmra.mrb[2].mxu0 %vm306_vm0, %v1158_v36  ;;  %v2512_v36 = vld [vmem:[%s4511_s4 + $0x258] sm:$0xff] }
  0x85   : > { %2823 = vmatmul.mubr.msk.f32.gmra.mrb[2].mxu1 %vm306_vm0, %v1160_v38  ;;  %1286 = vmatprep.mubr.f32.mxu0 %v3341_v7 }
  0x86   : > { %1520 = vmatprep.mubr.f32.mxu1 %v3341_v7 }
  0x88   : > { %2483 = vmatmul.mubr.msk.f32.gmra.mrb[4].mxu0 %vm306_vm0, %v1159_v37  ;;  %v2514_v37 = vld [vmem:[%s4511_s4 + $0x268] sm:$0xff] }
  0x89   : > { %1292 = vmatprep.mubr.f32.mxu0 %v3341_v7  ;;  %v3199_v43 = vpack.c.bf16 %v2514_v37, %v2512_v36  ;;  %v1798_v36 = vld [vmem:[%s4511_s4 + $0xb8] sm:$0xff] }
  0x8c   : > { %2484 = vmatmul.mubr.msk.f32.gmra.mrb[6].mxu0 %vm306_vm0, %v1160_v38  ;;  %v2497_v38 = vld [vmem:[%s4510_s3 + $0x18] sm:$0x3f] }
  0x8d   : > { %2833 = vmatprep.mubr.msk.f32.mxu0 %vm1439_vm1, %v4027_v39 }
 0x153   : > { %v1276_v48 = vpop.f32.mrb[0].mxu0 }
 0x154   : > { %v2821_v50 = vpop.f32.mrb[0].mxu1  ;;  %v1278_v51 = vpop.f32.mrb[1].mxu0  ;;  %v1413_v54 = vadd.f32 %v1401_v47, %v1276_v48  ;;  %v1775_v48 = vld [vmem:[%s4511_s4] sm:$0xff] }
 0x155   : > { %v1418_v52 = vadd.f32 %v2821_v50, %v1409_v46  ;;  %v1365_v53 = vpop.f32.mrb[1].mxu1  ;;  %v1414_v57 = vadd.f32 %v1405_v49, %v1278_v51  ;;  %v1780_v50 = vld [vmem:[%s4511_s4 + $0x28] sm:$0xff]  ;;  %v1782_v51 = vld [vmem:[%s4511_s4 + $0x38] sm:$0xff] }
 0x156   : > { %v1415_v55 = vadd.f32 %v1409_v46, %v1365_v53  ;;  %v1425_v2 = vmax.f32 %v1413_v54, 0.0  ;;  %v2515_v54 = vld [vmem:[%s4511_s4 + $0x270] sm:$0xff] }
 0x157   : > { %v1430_v56 = vmax.f32 %v1418_v52, 0.0  ;;  %v1282_v58 = vpop.f32.mrb[2].mxu0  ;;  %v1426_v6 = vmax.f32 %v1414_v57, 0.0  ;;  %v3201_v52 = vpack.c.bf16 %v2513_v45, %v2511_v44  ;;  %v2520_v57 = vld [vmem:[%s4511_s4 + $0x298] sm:$0xff]  ;;  %v2538_v44 = vld [vmem:[%s4511_s4 + $0x328] sm:$0xff]  ;;  %v3147_v45 = vpack.c.bf16 %v1798_v36, %v1796_v35  ;;  %v2551_v36 = vld [vmem:[%s4511_s4 + $0x390] sm:$0xff] }
 0x158   : > { %v1427_v59 = vmax.f32 %v1415_v55, 0.0  ;;  %v1416_v60 = vadd.f32 %v1401_v47, %v1282_v58  ;;  %v2824_v61 = vpop.f32.mrb[2].mxu1  ;;  %v1284_v62 = vpop.f32.mrb[3].mxu0  ;;  %v2517_v55 = vld [vmem:[%s4511_s4 + $0x280] sm:$0xff]  ;;  %v2522_v58 = vld [vmem:[%s4511_s4 + $0x2a8] sm:$0xff] }
 0x159   : > { %v1424_v63 = vadd.f32 %v2824_v61, %v1409_v46  ;;  %v1417_v0 = vadd.f32 %v1405_v49, %v1284_v62  ;;  %v1375_v1 = vpop.f32.mrb[3].mxu1  ;;  %v1781_v61 = vld [vmem:[%s4511_s4 + $0x30] sm:$0xff]  ;;  %v1784_v62 = vld [vmem:[%s4511_s4 + $0x48] sm:$0xff] }
 0x15a   : > { %v3097_v3 = vpack.c.bf16 %v1430_v56, %v1427_v59  ;;  %v1428_v4 = vmax.f32 %v1416_v60, 0.0  ;;  %v1421_v5 = vadd.f32 %v1409_v46, %v1375_v1  ;;  %v2516_v46 = vld [vmem:[%s4511_s4 + $0x278] sm:$0xff]  ;;  %v3131_v59 = vpack.c.bf16 %v1782_v51, %v1780_v50  ;;  %v1779_v60 = vld [vmem:[%s4511_s4 + $0x20] sm:$0xff]  ;;  %v2535_v51 = vld [vmem:[%s4511_s4 + $0x310] sm:$0xff] }
 0x15b   : > { %v1436_v8 = vmax.f32 %v1424_v63, 0.0  ;;  %v1429_v9 = vmax.f32 %v1417_v0, 0.0  ;;  %v1288_v10 = vpop.f32.mrb[4].mxu0  ;;  %v1786_v63 = vld [vmem:[%s4511_s4 + $0x58] sm:$0xff]  ;;  %v3205_v0 = vpack.c.bf16 %v2517_v55, %v2515_v54  ;;  %v3207_v1 = vpack.c.bf16 %v2522_v58, %v2520_v57  ;;  %v2542_v55 = vld [vmem:[%s4511_s4 + $0x348] sm:$0xff]  ;;  %v1799_v57 = vld [vmem:[%s4511_s4 + $0xc0] sm:$0xff] }
 0x15c   : > { %v3089_v11 = vpack.c.bf16 %v1428_v4, %v1425_v2  ;;  %v1433_v12 = vmax.f32 %v1421_v5, 0.0  ;;  %3098 = vmatprep.subr.bf16.mxu0 %v3097_v3  ;;  %v1290_v13 = vpop.f32.mrb[5].mxu0  ;;  %v1419_v17 = vadd.f32 %v1401_v47, %v1288_v10  ;;  %v2519_v2 = vld [vmem:[%s4511_s4 + $0x290] sm:$0xff]  ;;  %v3133_v4 = vpack.c.bf16 %v1781_v61, %v1779_v60  ;;  %v2524_v5 = vld [vmem:[%s4511_s4 + $0x2b8] sm:$0xff] }
 0x15d   : > { %v3087_v14 = vpack.c.bf16 %v1429_v9, %v1426_v6  ;;  %3100 = vmatpush3.bf16.msra.mxu0 %v3097_v3  ;;  %v1420_v18 = vadd.f32 %v1405_v49, %v1290_v13  ;;  %v2526_v6 = vld [vmem:[%s4511_s4 + $0x2c8] sm:$0xff]  ;;  %v1783_v9 = vld [vmem:[%s4511_s4 + $0x40] sm:$0xff]  ;;  %v1785_v10 = vld [vmem:[%s4511_s4 + $0x50] sm:$0xff] }
 0x15e   : > { %v3101_v16 = vpack.c.bf16 %v1436_v8, %v1433_v12  ;;  %v1431_v24 = vmax.f32 %v1419_v17, 0.0  ;;  %v3135_v8 = vpack.c.bf16 %v1786_v63, %v1784_v62  ;;  %v1790_v12 = vld [vmem:[%s4511_s4 + $0x78] sm:$0xff]  ;;  %v3137_v17 = vpack.c.bf16 %v1785_v10, %v1783_v9  ;;  %v1801_v58 = vld [vmem:[%s4511_s4 + $0xd0] sm:$0xff] }
 0x15f   : > { %v1294_v19 = vpop.f32.mrb[6].mxu0  ;;  %3088 = vmatprep.subr.bf16.mxu1 %v3087_v14  ;;  %v1432_v27 = vmax.f32 %v1420_v18, 0.0  ;;  %v2528_v18 = vld [vmem:[%s4511_s4 + $0x2d8] sm:$0xff]  ;;  %v2539_v63 = vld [vmem:[%s4511_s4 + $0x330] sm:$0xff] }
 0x160   : > { %v1422_v20 = vadd.f32 %v1401_v47, %v1294_v19  ;;  %3103 = vmatprep.subr.msk.bf16.mxu0 %vm4035_vm4, %v3101_v16  ;;  %v1296_v21 = vpop.f32.mrb[7].mxu0  ;;  %3090 = vmatpush1.bf16.msra.mxu1 %v3089_v11  ;;  %v3127_v47 = vpack.c.bf16 %v1778_v41, %v1776_v40  ;;  %v2530_v19 = vld [vmem:[%s4511_s4 + $0x2e8] sm:$0xff]  ;;  %v2531_v40 = vld [vmem:[%s4511_s4 + $0x2f0] sm:$0xff]  ;;  %v2533_v41 = vld [vmem:[%s4511_s4 + $0x300] sm:$0xff] }
 0x161   : > { %v1423_v22 = vadd.f32 %v1405_v49, %v1296_v21  ;;  %3106 = vmatpush3.bf16.msk.msra.mxu0 %vm4035_vm4, %v3101_v16  ;;  %v1777_v49 = vld [vmem:[%s4511_s4 + $0x10] sm:$0xff]  ;;  %v1787_v21 = vld [vmem:[%s4511_s4 + $0x60] sm:$0xff]  ;;  %v2540_v54 = vld [vmem:[%s4511_s4 + $0x338] sm:$0xff] }
 0x162   : > { %v1434_v25 = vmax.f32 %v1422_v20, 0.0  ;;  %3118 = vmatprep.subr.bf16.mxu0 %v3097_v3  ;;  %v3129_v56 = vpack.c.bf16 %v1777_v49, %v1775_v48  ;;  %v1802_v48 = vld [vmem:[%s4511_s4 + $0xd8] sm:$0xff]  ;;  %v3221_v49 = vpack.c.bf16 %v2533_v41, %v2531_v40  ;;  %v3227_v62 = vpack.c.bf16 %v2542_v55, %v2540_v54  ;;  %v2558_v41 = vld [vmem:[%s4511_s4 + $0x3c8] sm:$0xff] }
 0x163   : > { %v1435_v28 = vmax.f32 %v1423_v22, 0.0  ;;  %v1789_v22 = vld [vmem:[%s4511_s4 + $0x70] sm:$0xff]  ;;  %v1806_v60 = vld [vmem:[%s4511_s4 + $0xf8] sm:$0xff]  ;;  %v1824_v54 = vld [vmem:[%s4511_s4 + $0x188] sm:$0xff] }
 0x164   : > { %v3094_v31 = vpack.c.bf16 %v1434_v25, %v1431_v24  ;;  %2834 = vmatmul.mubr.msk.f32.vlgmr.msra.gmra.mrb[8].mxu0 %vm1439_vm1, %v1438_v23  ;;  %v1794_v24 = vld [vmem:[%s4511_s4 + $0x98] sm:$0xff]  ;;  %v3141_v29 = vpack.c.bf16 %v1789_v22, %v1787_v21 }
 0x165   : > { %v3091_v32 = vpack.c.bf16 %v1435_v28, %v1432_v27  ;;  %3120 = vmatpush3.bf16.msra.mxu0 %v3097_v3  ;;  %2844 = vmatprep.mubr.msk.f32.mxu0 %vm1439_vm1, %v2496_v26  ;;  %v2521_v3 = vld [vmem:[%s4511_s4 + $0x2a0] sm:$0xff]  ;;  %v2527_v27 = vld [vmem:[%s4511_s4 + $0x2d0] sm:$0xff]  ;;  %v1810_v9 = vld [vmem:[%s4511_s4 + $0x118] sm:$0xff] }
 0x166   : > { %3123 = vmatprep.subr.msk.bf16.mxu0 %vm4035_vm4, %v3101_v16  ;;  %v3209_v13 = vpack.c.bf16 %v2521_v3, %v2519_v2  ;;  %v2529_v28 = vld [vmem:[%s4511_s4 + $0x2e0] sm:$0xff]  ;;  %v2544_v2 = vld [vmem:[%s4511_s4 + $0x358] sm:$0xff]  ;;  %v2546_v3 = vld [vmem:[%s4511_s4 + $0x368] sm:$0xff] }
 0x167   : > { %3093 = vmatprep.subr.msk.bf16.mxu1 %vm4035_vm4, %v3091_v32  ;;  %v3217_v37 = vpack.c.bf16 %v2529_v28, %v2527_v27  ;;  %v1814_v21 = vld [vmem:[%s4511_s4 + $0x138] sm:$0xff]  ;;  %v2554_v28 = vld [vmem:[%s4511_s4 + $0x3a8] sm:$0xff] }
 0x168   : > { %3096 = vmatpush1.bf16.msk.msra.mxu1 %vm4035_vm4, %v3094_v31  ;;  %v2552_v27 = vld [vmem:[%s4511_s4 + $0x398] sm:$0xff] }
 0x169   : > { %3126 = vmatpush3.bf16.msk.msra.mxu0 %vm4035_vm4, %v3101_v16  ;;  %3108 = vmatprep.subr.bf16.mxu1 %v3087_v14  ;;  %v3211_v14 = vpack.c.bf16 %v2526_v6, %v2524_v5  ;;  %v2525_v16 = vld [vmem:[%s4511_s4 + $0x2c0] sm:$0xff]  ;;  %v1805_v6 = vld [vmem:[%s4511_s4 + $0xf0] sm:$0xff]  ;;  %v3239_v35 = vpack.c.bf16 %v2554_v28, %v2552_v27  ;;  %v2556_v40 = vld [vmem:[%s4511_s4 + $0x3b8] sm:$0xff] }
 0x16a   : > { %3196 = vmatprep.subr.bf16.mxu0 %v3195_v33  ;;  %v3213_v25 = vpack.c.bf16 %v2525_v16, %v2523_v15  ;;  %v1791_v33 = vld [vmem:[%s4511_s4 + $0x80] sm:$0xff]  ;;  %v2548_v15 = vld [vmem:[%s4511_s4 + $0x378] sm:$0xff]  ;;  %v2550_v16 = vld [vmem:[%s4511_s4 + $0x388] sm:$0xff] }
 0x16b   : > { %2491 = vmatmul.mubr.msk.f32.vlgmr.msra.gmra.mrb[4].mxu1 %vm1439_vm1, %v4027_v39  ;;  %v2518_v39 = vld [vmem:[%s4511_s4 + $0x288] sm:$0xff]  ;;  %v1803_v5 = vld [vmem:[%s4511_s4 + $0xe0] sm:$0xff]  ;;  %v1826_v55 = vld [vmem:[%s4511_s4 + $0x198] sm:$0xff] }
 0x16c   : > { %3110 = vmatpush1.bf16.msra.mxu1 %v3089_v11  ;;  %1526 = vmatprep.mubr.f32.mxu1 %v3341_v7  ;;  %v3203_v53 = vpack.c.bf16 %v2518_v39, %v2516_v46  ;;  %v1788_v11 = vld [vmem:[%s4511_s4 + $0x68] sm:$0xff]  ;;  %v1795_v46 = vld [vmem:[%s4511_s4 + $0xa0] sm:$0xff]  ;;  %v1797_v39 = vld [vmem:[%s4511_s4 + $0xb0] sm:$0xff] }
 0x16d   : > { %3113 = vmatprep.subr.msk.bf16.mxu1 %vm4035_vm4, %v3091_v32  ;;  %2845 = vmatmul.mubr.msk.f32.vlgmr.msra.gmra.mrb[10].mxu0 %vm1439_vm1, %v2497_v38  ;;  %v3139_v20 = vpack.c.bf16 %v1790_v12, %v1788_v11  ;;  %v3231_v11 = vpack.c.bf16 %v2546_v3, %v2544_v2  ;;  %v2543_v12 = vld [vmem:[%s4511_s4 + $0x350] sm:$0xff]  ;;  %v2562_v2 = vld [vmem:[%s4511_s4 + $0x3e8] sm:$0xff]  ;;  %v1827_v3 = vld [vmem:[%s4511_s4 + $0x1a0] sm:$0xff] }
 0x16e   : > { %3198 = vmatpush1.bf16.msra.mxu0 %v3197_v42  ;;  %v3145_v42 = vpack.c.bf16 %v1793_v34, %v1791_v33  ;;  %v1818_v33 = vld [vmem:[%s4511_s4 + $0x158] sm:$0xff]  ;;  %v2570_v27 = vld [vmem:[%s4511_s4 + $0x428] sm:$0xff]  ;;  %v1835_v28 = vld [vmem:[%s4511_s4 + $0x1e0] sm:$0xff] }
 0x16f   : > { %2492 = vmatmul.mubr.msk.f32.gmra.mrb[6].mxu1 %vm1439_vm1, %v1438_v23  ;;  %3200 = vmatprep.subr.bf16.mxu0 %v3199_v43  ;;  %v1792_v23 = vld [vmem:[%s4511_s4 + $0x88] sm:$0xff]  ;;  %v2536_v43 = vld [vmem:[%s4511_s4 + $0x318] sm:$0xff] }
 0x170   : > { %3116 = vmatpush1.bf16.msk.msra.mxu1 %vm4035_vm4, %v3094_v31  ;;  %1681 = vmatprep.mubr.f32.mxu1 %v3341_v7  ;;  %v2534_v31 = vld [vmem:[%s4511_s4 + $0x308] sm:$0xff]  ;;  %v3143_v32 = vpack.c.bf16 %v1794_v24, %v1792_v23  ;;  %v3223_v50 = vpack.c.bf16 %v2538_v44, %v2536_v43  ;;  %v3235_v23 = vpack.c.bf16 %v2550_v16, %v2548_v15  ;;  %v2547_v24 = vld [vmem:[%s4511_s4 + $0x370] sm:$0xff]  ;;  %v1815_v43 = vld [vmem:[%s4511_s4 + $0x140] sm:$0xff] }
 0x171   : > { %3128 = vmatprep.subr.bf16.mxu1 %v3127_v47  ;;  %v1800_v47 = vld [vmem:[%s4511_s4 + $0xc8] sm:$0xff]  ;;  %v1817_v44 = vld [vmem:[%s4511_s4 + $0x150] sm:$0xff]  ;;  %v1831_v16 = vld [vmem:[%s4511_s4 + $0x1c0] sm:$0xff] }
 0x172   : > { %3202 = vmatpush1.bf16.msra.mxu0 %v3201_v52  ;;  %v2537_v52 = vld [vmem:[%s4511_s4 + $0x320] sm:$0xff]  ;;  %v2566_v15 = vld [vmem:[%s4511_s4 + $0x408] sm:$0xff] }
 0x173   : > { %2500 = vmatmul.mubr.msk.f32.vlgmr.msra.gmra.mrb[8].mxu1 %vm1439_vm1, %v2496_v26  ;;  %3204 = vmatprep.subr.bf16.mxu0 %v3203_v53  ;;  %v3215_v26 = vpack.c.bf16 %v2530_v19, %v2528_v18  ;;  %v3149_v53 = vpack.c.bf16 %v1797_v39, %v1795_v46  ;;  %v3225_v61 = vpack.c.bf16 %v2537_v52, %v2535_v51  ;;  %v1807_v18 = vld [vmem:[%s4511_s4 + $0x100] sm:$0xff]  ;;  %v1809_v19 = vld [vmem:[%s4511_s4 + $0x110] sm:$0xff]  ;;  %v1822_v46 = vld [vmem:[%s4511_s4 + $0x178] sm:$0xff] }
 0x174   : > { %1687 = vmatprep.mubr.f32.mxu1 %v3341_v7  ;;  %3130 = vmatpush1.bf16.msra.mxu1 %v3129_v56  ;;  %v3151_v56 = vpack.c.bf16 %v1802_v48, %v1800_v47  ;;  %v3243_v47 = vpack.c.bf16 %v2558_v41, %v2556_v40  ;;  %v2555_v48 = vld [vmem:[%s4511_s4 + $0x3b0] sm:$0xff]  ;;  %v1819_v52 = vld [vmem:[%s4511_s4 + $0x160] sm:$0xff]  ;;  %v2574_v40 = vld [vmem:[%s4511_s4 + $0x448] sm:$0xff] }
 0x175   : > { %3132 = vmatprep.subr.bf16.mxu1 %v3131_v59  ;;  %v1804_v59 = vld [vmem:[%s4511_s4 + $0xe8] sm:$0xff] }
 0x176   : > { %3206 = vmatpush1.bf16.msra.mxu0 %v3205_v0  ;;  %v2541_v0 = vld [vmem:[%s4511_s4 + $0x340] sm:$0xff] }
 0x177   : > { %2501 = vmatmul.mubr.msk.f32.gmra.mrb[10].mxu1 %vm1439_vm1, %v2497_v38  ;;  %3208 = vmatprep.subr.bf16.mxu0 %v3207_v1  ;;  %v3219_v38 = vpack.c.bf16 %v2534_v31, %v2532_v30  ;;  %v3153_v1 = vpack.c.bf16 %v1801_v58, %v1799_v57  ;;  %v3229_v10 = vpack.c.bf16 %v2541_v0, %v2539_v63  ;;  %v1811_v30 = vld [vmem:[%s4511_s4 + $0x120] sm:$0xff]  ;;  %v1813_v31 = vld [vmem:[%s4511_s4 + $0x130] sm:$0xff]  ;;  %v1830_v63 = vld [vmem:[%s4511_s4 + $0x1b8] sm:$0xff] }
 0x178   : > { %3134 = vmatpush1.bf16.msra.mxu1 %v3133_v4  ;;  %v3155_v4 = vpack.c.bf16 %v1806_v60, %v1804_v59  ;;  %v3175_v58 = vpack.c.bf16 %v1826_v55, %v1824_v54  ;;  %v1823_v59 = vld [vmem:[%s4511_s4 + $0x180] sm:$0xff]  ;;  %v1825_v60 = vld [vmem:[%s4511_s4 + $0x190] sm:$0xff]  ;;  %v2560_v0 = vld [vmem:[%s4511_s4 + $0x3d8] sm:$0xff] }
 0x179   : > { %3136 = vmatprep.subr.bf16.mxu1 %v3135_v8  ;;  %v1808_v8 = vld [vmem:[%s4511_s4 + $0x108] sm:$0xff]  ;;  %v2573_v54 = vld [vmem:[%s4511_s4 + $0x440] sm:$0xff] }
 0x17a   : > { %3210 = vmatpush1.bf16.msra.mxu0 %v3209_v13  ;;  %v2545_v13 = vld [vmem:[%s4511_s4 + $0x360] sm:$0xff] }
 0x17b   : > { %3212 = vmatprep.subr.bf16.mxu0 %v3211_v14  ;;  %v3157_v14 = vpack.c.bf16 %v1805_v6, %v1803_v5  ;;  %v3233_v22 = vpack.c.bf16 %v2545_v13, %v2543_v12  ;;  %v3247_v5 = vpack.c.bf16 %v2562_v2, %v2560_v0  ;;  %v1834_v12 = vld [vmem:[%s4511_s4 + $0x1d8] sm:$0xff] }
 0x17c   : > { %3138 = vmatpush1.bf16.msra.mxu1 %v3137_v17  ;;  %v3159_v17 = vpack.c.bf16 %v1810_v9, %v1808_v8  ;;  %v2559_v8 = vld [vmem:[%s4511_s4 + $0x3d0] sm:$0xff]  ;;  %v2561_v9 = vld [vmem:[%s4511_s4 + $0x3e0] sm:$0xff]  ;;  %v2564_v13 = vld [vmem:[%s4511_s4 + $0x3f8] sm:$0xff] }
 0x17d   : > { %3140 = vmatprep.subr.bf16.mxu1 %v3139_v20  ;;  %v1812_v20 = vld [vmem:[%s4511_s4 + $0x128] sm:$0xff] }
 0x17e   : > { %3214 = vmatpush1.bf16.msra.mxu0 %v3213_v25  ;;  %v2549_v25 = vld [vmem:[%s4511_s4 + $0x380] sm:$0xff] }
 0x17f   : > { %3216 = vmatprep.subr.bf16.mxu0 %v3215_v26  ;;  %v3161_v26 = vpack.c.bf16 %v1809_v19, %v1807_v18  ;;  %v3237_v34 = vpack.c.bf16 %v2549_v25, %v2547_v24  ;;  %v3251_v18 = vpack.c.bf16 %v2566_v15, %v2564_v13  ;;  %v1838_v24 = vld [vmem:[%s4511_s4 + $0x1f8] sm:$0xff] }
 0x180   : > { %3142 = vmatpush1.bf16.msra.mxu1 %v3141_v29  ;;  %v3163_v29 = vpack.c.bf16 %v1814_v21, %v1812_v20  ;;  %v2563_v20 = vld [vmem:[%s4511_s4 + $0x3f0] sm:$0xff]  ;;  %v2565_v21 = vld [vmem:[%s4511_s4 + $0x400] sm:$0xff]  ;;  %v2568_v25 = vld [vmem:[%s4511_s4 + $0x418] sm:$0xff] }
 0x181   : > { %3144 = vmatprep.subr.bf16.mxu1 %v3143_v32  ;;  %v1816_v32 = vld [vmem:[%s4511_s4 + $0x148] sm:$0xff] }
 0x182   : > { %3218 = vmatpush1.bf16.msra.mxu0 %v3217_v37  ;;  %v2553_v37 = vld [vmem:[%s4511_s4 + $0x3a0] sm:$0xff] }
 0x183   : > { %3220 = vmatprep.subr.bf16.mxu0 %v3219_v38  ;;  %v3165_v38 = vpack.c.bf16 %v1813_v31, %v1811_v30  ;;  %v3241_v39 = vpack.c.bf16 %v2553_v37, %v2551_v36  ;;  %v3255_v30 = vpack.c.bf16 %v2570_v27, %v2568_v25  ;;  %v1842_v36 = vld [vmem:[%s4511_s4 + $0x218] sm:$0xff] }
 0x184   : > { %3146 = vmatpush1.bf16.msra.mxu1 %v3145_v42  ;;  %v3167_v42 = vpack.c.bf16 %v1818_v33, %v1816_v32  ;;  %v2567_v32 = vld [vmem:[%s4511_s4 + $0x410] sm:$0xff]  ;;  %v2569_v33 = vld [vmem:[%s4511_s4 + $0x420] sm:$0xff]  ;;  %v2572_v37 = vld [vmem:[%s4511_s4 + $0x438] sm:$0xff] }
 0x185   : > { %3148 = vmatprep.subr.bf16.mxu1 %v3147_v45  ;;  %v1820_v45 = vld [vmem:[%s4511_s4 + $0x168] sm:$0xff]  ;;  %v3259_v41 = vpack.c.bf16 %v2574_v40, %v2572_v37 }
 0x186   : > { %3222 = vmatpush1.bf16.msra.mxu0 %v3221_v49  ;;  %v2557_v49 = vld [vmem:[%s4511_s4 + $0x3c0] sm:$0xff]  ;;  %v3171_v51 = vpack.c.bf16 %v1822_v46, %v1820_v45 }
 0x187   : > { %3224 = vmatprep.subr.bf16.mxu0 %v3223_v50  ;;  %v3169_v50 = vpack.c.bf16 %v1817_v44, %v1815_v43 }
 0x188   : > { %3150 = vmatpush1.bf16.msra.mxu1 %v3149_v53  ;;  %v1821_v53 = vld [vmem:[%s4511_s4 + $0x170] sm:$0xff] }
 0x189   : > { %3152 = vmatprep.subr.bf16.mxu1 %v3151_v56  ;;  %v3245_v56 = vpack.c.bf16 %v2557_v49, %v2555_v48  ;;  %v3173_v57 = vpack.c.bf16 %v1821_v53, %v1819_v52  ;;  %v1841_v52 = vld [vmem:[%s4511_s4 + $0x210] sm:$0xff] }
 0x18a   : > { %3226 = vmatpush1.bf16.msra.mxu0 %v3225_v61  ;;  %v3177_v61 = vpack.c.bf16 %v1825_v60, %v1823_v59  ;;  %v2571_v53 = vld [vmem:[%s4511_s4 + $0x430] sm:$0xff] }
 0x18b   : > { %3228 = vmatprep.subr.bf16.mxu0 %v3227_v62  ;;  %v1828_v62 = vld [vmem:[%s4511_s4 + $0x1a8] sm:$0xff]  ;;  %v3261_v60 = vpack.c.bf16 %v2573_v54, %v2571_v53 }
 0x18c   : > { %3154 = vmatpush1.bf16.msra.mxu1 %v3153_v1  ;;  %v3179_v1 = vpack.c.bf16 %v1830_v63, %v1828_v62  ;;  %v1844_v62 = vld [vmem:[%s4511_s4 + $0x228] sm:$0xff]  ;;  %v2576_v63 = vld [vmem:[%s4511_s4 + $0x458] sm:$0xff] }
 0x18d   : > { %3156 = vmatprep.subr.bf16.mxu1 %v3155_v4  ;;  %v1829_v4 = vld [vmem:[%s4511_s4 + $0x1b0] sm:$0xff] }
 0x18e   : > { %3230 = vmatpush1.bf16.msra.mxu0 %v3229_v10  ;;  %v3181_v6 = vpack.c.bf16 %v1829_v4, %v1827_v3  ;;  %v3249_v10 = vpack.c.bf16 %v2561_v9, %v2559_v8  ;;  %v1843_v3 = vld [vmem:[%s4511_s4 + $0x220] sm:$0xff]  ;;  %v2575_v4 = vld [vmem:[%s4511_s4 + $0x450] sm:$0xff] }
 0x18f   : > { %3232 = vmatprep.subr.bf16.mxu0 %v3231_v11  ;;  %v1832_v11 = vld [vmem:[%s4511_s4 + $0x1c8] sm:$0xff] }
 0x190   : > { %3158 = vmatpush1.bf16.msra.mxu1 %v3157_v14  ;;  %v3183_v14 = vpack.c.bf16 %v1834_v12, %v1832_v11 }
 0x191   : > { %3160 = vmatprep.subr.bf16.mxu1 %v3159_v17  ;;  %v1833_v17 = vld [vmem:[%s4511_s4 + $0x1d0] sm:$0xff] }
 0x192   : > { %3234 = vmatpush1.bf16.msra.mxu0 %v3233_v22  ;;  %v3185_v19 = vpack.c.bf16 %v1833_v17, %v1831_v16  ;;  %v3253_v22 = vpack.c.bf16 %v2565_v21, %v2563_v20 }
 0x193   : > { %3236 = vmatprep.subr.bf16.mxu0 %v3235_v23  ;;  %v1836_v23 = vld [vmem:[%s4511_s4 + $0x1e8] sm:$0xff] }
 0x194   : > { %3162 = vmatpush1.bf16.msra.mxu1 %v3161_v26  ;;  %v3187_v26 = vpack.c.bf16 %v1838_v24, %v1836_v23 }
 0x195   : > { %3164 = vmatprep.subr.bf16.mxu1 %v3163_v29  ;;  %v1837_v29 = vld [vmem:[%s4511_s4 + $0x1f0] sm:$0xff] }
 0x196   : > { %3238 = vmatpush1.bf16.msra.mxu0 %v3237_v34  ;;  %v3189_v31 = vpack.c.bf16 %v1837_v29, %v1835_v28  ;;  %v3257_v34 = vpack.c.bf16 %v2569_v33, %v2567_v32 }
 0x197   : > { %3240 = vmatprep.subr.bf16.mxu0 %v3239_v35  ;;  %v1840_v35 = vld [vmem:[%s4511_s4 + $0x208] sm:$0xff] }
 0x198   : > { %3166 = vmatpush1.bf16.msra.mxu1 %v3165_v38  ;;  %v3191_v38 = vpack.c.bf16 %v1842_v36, %v1840_v35 }
 0x199   : > { %3168 = vmatprep.subr.bf16.mxu1 %v3167_v42 }
 0x19a   : > { %3242 = vmatpush1.bf16.msra.mxu0 %v3241_v39 }
 0x19b   : > { %3244 = vmatprep.subr.bf16.mxu0 %v3243_v47 }
 0x19c   : > { %3170 = vmatpush1.bf16.msra.mxu1 %v3169_v50 }
 0x19d   : > { %3172 = vmatprep.subr.bf16.mxu1 %v3171_v51  ;;  %v1839_v51 = vld [vmem:[%s4511_s4 + $0x200] sm:$0xff] }
 0x19e   : > { %3246 = vmatpush1.bf16.msra.mxu0 %v3245_v56  ;;  %v3193_v59 = vpack.c.bf16 %v1841_v52, %v1839_v51 }
 0x19f   : > { %3248 = vmatprep.subr.bf16.mxu0 %v3247_v5 }
 0x1a0   : > { %3174 = vmatpush1.bf16.msra.mxu1 %v3173_v57 }
 0x1a1   : > { %3176 = vmatprep.subr.bf16.mxu1 %v3175_v58 }
 0x1a2   : > { %3250 = vmatpush1.bf16.msra.mxu0 %v3249_v10 }
 0x1a3   : > { %3252 = vmatprep.subr.bf16.mxu0 %v3251_v18 }
 0x1a4   : > { %3178 = vmatpush1.bf16.msra.mxu1 %v3177_v61 }
 0x1a5   : > { %3180 = vmatprep.subr.bf16.mxu1 %v3179_v1 }
 0x1a6   : > { %3254 = vmatpush1.bf16.msra.mxu0 %v3253_v22 }
 0x1a7   : > { %3256 = vmatprep.subr.bf16.mxu0 %v3255_v30 }
 0x1a8   : > { %3182 = vmatpush1.bf16.msra.mxu1 %v3181_v6 }
 0x1a9   : > { %3184 = vmatprep.subr.bf16.mxu1 %v3183_v14 }
 0x1aa   : > { %3258 = vmatpush1.bf16.msra.mxu0 %v3257_v34 }
 0x1ab   : > { %3260 = vmatprep.subr.bf16.mxu0 %v3259_v41 }
 0x1ac   : > { %3186 = vmatpush1.bf16.msra.mxu1 %v3185_v19 }
 0x1ad   : > { %3188 = vmatprep.subr.bf16.mxu1 %v3187_v26 }
 0x1b0   : > { %3190 = vmatpush1.bf16.msra.mxu1 %v3189_v31 }
 0x1b1   : > { %3192 = vmatprep.subr.bf16.mxu1 %v3191_v38 }
 0x237   : > { %v2835_v42 = vpop.f32.mrb[8].mxu0 }
 0x238   : > { %v1599_v43 = vpop.f32.mrb[9].mxu0 }
 0x23e   : > { %v1522_v44 = vpop.f32.mrb[4].mxu1 }
 0x23f   : > { %v1524_v45 = vpop.f32.mrb[5].mxu1 }
 0x240   : > { %v2846_v46 = vpop.f32.mrb[10].mxu0 }
 0x241   : > { %v1774_v39 = vmax.f32 %v2835_v42, %v2846_v46  ;;  %v1760_v47 = vpop.f32.mrb[11].mxu0 }
 0x242   : > { %v1528_v48 = vpop.f32.mrb[6].mxu1  ;;  %v1771_v49 = vmax.f32 %v1599_v43, %v1760_v47 }
 0x243   : > { %v1530_v50 = vpop.f32.mrb[7].mxu1 }
 0x246   : > { %v1683_v55 = vpop.f32.mrb[8].mxu1 }
 0x247   : > { %v1769_v56 = vmax.f32 %v1522_v44, %v1683_v55  ;;  %v1685_v57 = vpop.f32.mrb[9].mxu1 }
 0x248   : > { %v1770_v58 = vmax.f32 %v1524_v45, %v1685_v57 }
 0x24a   : > { %v1689_v61 = vpop.f32.mrb[10].mxu1  ;;  %1916 = vmatprep.mubr.f32.mxu1 %v1770_v58  ;;  %2141 = vmatprep.mubr.f32.mxu0 %v1770_v58 }
 0x24b   : > { %v1772_v0 = vmax.f32 %v1528_v48, %v1689_v61  ;;  %v1691_v1 = vpop.f32.mrb[11].mxu1  ;;  %1917 = vmatmul.mubr.f32.vlgmr.msra.gmra.mrb[12].mxu1 %v1769_v56  ;;  %2142 = vmatmul.mubr.f32.vlgmr.msra.gmra.mrb[12].mxu0 %v1769_v56 }
 0x24c   : > { %v1773_v2 = vmax.f32 %v1530_v50, %v1691_v1  ;;  %3194 = vmatpush1.bf16.msra.mxu1 %v3193_v59  ;;  %3262 = vmatpush1.bf16.msra.mxu0 %v3261_v60 }
 0x24d   : > { %1933 = vmatprep.subr.mxu1 %v1844_v62  ;;  %2158 = vmatprep.subr.mxu0 %v2576_v63 }
 0x24e   : > { %1922 = vmatprep.mubr.f32.mxu1 %v1773_v2  ;;  %2147 = vmatprep.mubr.f32.mxu0 %v1773_v2 }
 0x24f   : > { %1923 = vmatmul.mubr.f32.gmra.mrb[14].mxu1 %v1772_v0  ;;  %2148 = vmatmul.mubr.f32.gmra.mrb[14].mxu0 %v1772_v0 }
 0x250   : > { %1934 = vmatpush1.msra.mxu1 %v1843_v3  ;;  %1993 = vmatprep.mubr.f32.mxu1 %v3341_v7 }
 0x251   : > { %2159 = vmatpush1.msra.mxu0 %v2575_v4  ;;  %2218 = vmatprep.mubr.f32.mxu0 %v3341_v7 }
 0x252   : > { %3263 = vmatprep.subr.bf16.mxu1 %v3259_v41 }
 0x253   : > { %2505 = vmatmul.mubr.msk.f32.vlgmr.msra.gmra.mrb[12].mxu1 %vm1845_vm5, %v1771_v49  ;;  %2577 = vmatmul.mubr.msk.f32.vlgmr.msra.gmra.mrb[12].mxu0 %vm1845_vm5, %v1771_v49 }
 0x254   : > { %3265 = vmatpush1.bf16.msra.mxu1 %v3261_v60  ;;  %1999 = vmatprep.mubr.f32.mxu1 %v3341_v7 }
 0x255   : > { %3264 = vmatprep.subr.mxu1 %v2576_v63 }
 0x257   : > { %2506 = vmatmul.mubr.msk.f32.gmra.mrb[14].mxu1 %vm1845_vm5, %v1774_v39 }
 0x258   : > { %3266 = vmatpush1.msra.mxu1 %v2575_v4  ;;  %2224 = vmatprep.mubr.f32.mxu1 %v3341_v7 }
 0x25b   : > { %2578 = vmatmul.mubr.msk.f32.vlgmr.msra.gmra.mrb[16].mxu1 %vm1845_vm5, %v1774_v39 }
 0x322   : > { %v2149_v5 = vpop.f32.mrb[14].mxu0 }
 0x323   : > { %v2151_v6 = vpop.f32.mrb[15].mxu0 }
 0x326   : > { %v1995_v8 = vpop.f32.mrb[12].mxu1  ;;  %v2220_v9 = vpop.f32.mrb[12].mxu0 }
 0x327   : > { %v2231_v10 = vmax.f32 %v1995_v8, %v2220_v9  ;;  %v1997_v11 = vpop.f32.mrb[13].mxu1  ;;  %v2222_v12 = vpop.f32.mrb[13].mxu0 }
 0x328   : > { %v2232_v13 = vmax.f32 %v1997_v11, %v2222_v12 }
 0x329   : > { %2235 = vst [vmem:[%s224_s28] sm:$0xff] %v2231_v10 }
 0x32a   : > { %2237 = vst.msk [vmem:[%s224_s28 + $0x8] sm:$0xff] %vm2236_vm6, %v2232_v13  ;;  %v2001_v14 = vpop.f32.mrb[14].mxu1 }
 0x32b   : > { %v2003_v15 = vpop.f32.mrb[15].mxu1 }
 0x32e   : > { %v2226_v7 = vpop.f32.mrb[16].mxu1 }
 0x32f   : > { %v2227_v16 = vadd.f32 %v2226_v7, %v2149_v5  ;;  %v2228_v17 = vpop.f32.mrb[17].mxu1 }
 0x330   : > { %v2229_v18 = vadd.f32 %v2228_v17, %v2151_v6 }
 0x331   : > { %v2233_v19 = vmax.f32 %v2001_v14, %v2227_v16 }
 0x332   : > { %v2234_v20 = vmax.f32 %v2003_v15, %v2229_v18 }
 0x333   : > { %2238 = vst [vmem:[%s224_s28 + $0x10] sm:$0x3f] %v2233_v19 }
 0x334   : > { %2240 = vst.msk [vmem:[%s224_s28 + $0x18] sm:$0x3f] %vm2239_vm7, %v2234_v20 }
 0x335 PF: > { %s15_s18 = sadd.s32 1, %s3339_s18  }
 0x336   : > { %p12_p4 = scmp.ge.s32.totalorder %s15_s18, 4  }
 0x338   :  { %14 = sbr.rel (!%p12_p4) target bundleno = 1 (0x1), region = 76 }

</bundles_post_ra>
